<compile_context>
chip_gen: v5e
topology: v5e:2x2
jax: 0.10.0
libtpu: 0.0.40
codegen_flags: <defaults>
</compile_context>

<pallas_src>
import functools

import jax
import jax.numpy as jnp
from jax.experimental import pallas as pl
from jax.experimental.pallas import tpu as pltpu


def _round_up(x, m):
    return m * pl.cdiv(x, m)


def _device_kind():
    try:
        return jax.devices()[0].device_kind.lower()
    except Exception:
        return ""


def _supports_bf16_vpu():
    # bf16 VALU exists on v6e / v7x; keep elementwise math f32 on v5e and older.
    kind = _device_kind()
    return ("v6" in kind) or ("v7" in kind)


def _select_tiling(B):
    """Pick (tm, B_pad, n_tiles) minimizing batch padding, per chip generation."""
    kind = _device_kind()
    if "v7" in kind:
        # Dual-TC chip: keep an even grid >= 2 so both TensorCores get work.
        n_tiles = 2
        while B > n_tiles * 512:
            n_tiles += 2
    else:
        # Single-TC chip (v5e / v6e / ...): one tile for small batches.
        n_tiles = max(1, pl.cdiv(B, 1024))
    tm = _round_up(pl.cdiv(B, n_tiles), 8)
    B_pad = tm * n_tiles
    return tm, B_pad, n_tiles


# ---------------------------------------------------------------------------
# Kernel
# ---------------------------------------------------------------------------
def actor_discrete_kernel(x_ref, w1_ref, b1_ref, w2_ref, b2_ref, w3_ref, b3_ref,
                          o_ref, *, bf16_layer1):
    x = x_ref[...]                                   # (tm, ds)   f32
    w1 = w1_ref[...]                                 # (ds, H)    f32
    b1 = b1_ref[...]                                 # (1, H)     f32
    tm = x.shape[0]
    ds = w1.shape[0]
    hidden = w1.shape[1]

    # ---- lin1 + ReLU: K = ds is tiny (=4) -> unrolled VPU broadcast-FMA, skip MXU.
    # Accumulator starts from the broadcast bias (saves a full VALU add pass).
    if bf16_layer1:                                  # bf16 VPU (v6e/v7x) halves VALU work
        x = x.astype(jnp.bfloat16)
        w1 = w1.astype(jnp.bfloat16)
        b1 = b1.astype(jnp.bfloat16)
    h = jnp.broadcast_to(b1, (tm, hidden))
    for k in range(ds):                              # ds is static: fully unrolled
        h = h + x[:, k:k + 1] * w1[k:k + 1, :]
    h = jnp.maximum(h, 0.0)

    # ---- lin2 + ReLU: bf16 MXU inputs, f32 accumulate, f32 elementwise.
    h2_in = h if bf16_layer1 else h.astype(jnp.bfloat16)
    h = jnp.dot(h2_in, w2_ref[...], preferred_element_type=jnp.float32)   # (tm, H)
    h = jnp.maximum(h + b2_ref[...], 0.0)

    # ---- out layer (lane-padded to 128): bf16 MXU inputs, f32 accumulate.
    logits = jnp.dot(h.astype(jnp.bfloat16), w3_ref[...],
                     preferred_element_type=jnp.float32)                  # (tm, da_pad)
    logits = logits + b3_ref[...]                    # padded lanes carry -1e30 -> exp == 0

    # ---- numerically stable softmax over the (padded) action dimension.
    m = jnp.max(logits, axis=-1, keepdims=True)
    e = jnp.exp(logits - m)
    denom = jnp.sum(e, axis=-1, keepdims=True)
    o_ref[...] = (e / denom).astype(o_ref.dtype)     # exact division: denom is (tm,1), ~free


# ---------------------------------------------------------------------------
# One-time parameter prep (hoisted out of the per-call forward)
# ---------------------------------------------------------------------------
def prepare_actor_params(params):
    """bf16 casts + lane padding, done ONCE at init (not per forward call)."""
    w1, b1, w2, b2, w3, b3 = params
    da = w3.shape[1]
    da_pad = _round_up(da, 128)
    # NOTE: -1e30 bias padding is correct only because w3's padded lanes are zero.
    w3p = jnp.pad(w3, ((0, 0), (0, da_pad - da))).astype(jnp.bfloat16)
    b3p = jnp.pad(b3, ((0, 0), (0, da_pad - da)), constant_values=-1e30)
    w2b = w2.astype(jnp.bfloat16)
    prepared = (w1, b1, w2b, b2, w3p, b3p)
    return prepared, da


# ---------------------------------------------------------------------------
# Forward
# ---------------------------------------------------------------------------
def actor_discrete_forward(state, prepared_params, *, da, bf16_layer1=None):
    """state: (B, ds) f32 -> (B, da) f32 softmax probabilities."""
    w1, b1, w2b, b2, w3p, b3p = prepared_params
    B, ds = state.shape
    hidden = w1.shape[1]
    da_pad = w3p.shape[1]

    if bf16_layer1 is None:
        bf16_layer1 = _supports_bf16_vpu()

    tm, B_pad, n_tiles = _select_tiling(B)
    if B_pad != B:
        state = jnp.pad(state, ((0, B_pad - B), (0, 0)))

    kernel = functools.partial(actor_discrete_kernel, bf16_layer1=bf16_layer1)

    probs_padded = pl.pallas_call(
        kernel,
        out_shape=jax.ShapeDtypeStruct((B_pad, da_pad), jnp.float32),
        grid_spec=pltpu.PrefetchScalarGridSpec(
            num_scalar_prefetch=0,
            grid=(n_tiles,),
            in_specs=[
                pl.BlockSpec((tm, ds), lambda i: (i, 0)),          # state: tiled over batch
                pl.BlockSpec((ds, hidden), lambda i: (0, 0)),      # w1: VMEM-resident
                pl.BlockSpec((1, hidden), lambda i: (0, 0)),       # b1
                pl.BlockSpec((hidden, hidden), lambda i: (0, 0)),  # w2 (bf16)
                pl.BlockSpec((1, hidden), lambda i: (0, 0)),       # b2
                pl.BlockSpec((hidden, da_pad), lambda i: (0, 0)),  # w3 (bf16, lane-padded)
                pl.BlockSpec((1, da_pad), lambda i: (0, 0)),       # b3 (lane-padded, -1e30)
            ],
            out_specs=pl.BlockSpec((tm, da_pad), lambda i: (i, 0)),
        ),
        compiler_params=pltpu.CompilerParams(
            dimension_semantics=("parallel",),
        ),
    )(state, w1, b1, w2b, b2, w3p, b3p)

    # TODO(synk): for very large batched rollouts return the padded (B_pad, 128)
    # layout (and/or bf16 probs) to avoid this slice-copy; negligible at B=400.
    return probs_padded[:B, :da]


# ---------------------------------------------------------------------------
# Init / references
# ---------------------------------------------------------------------------
def init_linear_params(key, fan_in, fan_out):
    """PyTorch-style nn.Linear init: U(-1/sqrt(fan_in), 1/sqrt(fan_in))."""
    kw, kb = jax.random.split(key)
    bound = 1.0 / jnp.sqrt(jnp.float32(fan_in))
    w = jax.random.uniform(kw, (fan_in, fan_out), jnp.float32, -bound, bound)
    b = jax.random.uniform(kb, (1, fan_out), jnp.float32, -bound, bound)
    return w, b


def reference_forward_f32(state, params):
    w1, b1, w2, b2, w3, b3 = params
    h = jnp.maximum(state @ w1 + b1, 0.0)
    h = jnp.maximum(h @ w2 + b2, 0.0)
    logits = h @ w3 + b3
    return jax.nn.softmax(logits, axis=-1)


def reference_forward_mixed(state, params, bf16_layer1):
    """Mirrors the kernel's mixed precision (bf16 MXU inputs, f32 accumulate)."""
    w1, b1, w2, b2, w3, b3 = params
    if bf16_layer1:
        h = jnp.maximum(
            state.astype(jnp.bfloat16) @ w1.astype(jnp.bfloat16)
            + b1.astype(jnp.bfloat16), 0.0)
    else:
        h = jnp.maximum(state @ w1 + b1, 0.0).astype(jnp.bfloat16)
    h = jnp.maximum(
        jnp.dot(h, w2.astype(jnp.bfloat16), preferred_element_type=jnp.float32) + b2, 0.0)
    logits = jnp.dot(h.astype(jnp.bfloat16), w3.astype(jnp.bfloat16),
                     preferred_element_type=jnp.float32) + b3
    return jax.nn.softmax(logits, axis=-1)


if __name__ == "__main__":
    # Batch states across envs / timesteps so the MXU sees real work:
    # B=400 -> single 400-row tile on v5e/v6e, two 200-row tiles on v7x (no padding).
    B, ds, hidden, da = 400, 4, 256, 6

    root = jax.random.PRNGKey(0)
    k_state, k1, k2, k3 = jax.random.split(root, 4)

    state = jax.random.normal(k_state, (B, ds), jnp.float32)
    w1, b1 = init_linear_params(k1, ds, hidden)
    w2, b2 = init_linear_params(k2, hidden, hidden)
    w3, b3 = init_linear_params(k3, hidden, da)
    params = (w1, b1, w2, b2, w3, b3)

    # One-time parameter prep (bf16 casts + lane padding) -- NOT per call.
    prepared, da_out = prepare_actor_params(params)
    prepared = jax.block_until_ready(prepared)

    bf16_l1 = _supports_bf16_vpu()
    fwd = jax.jit(functools.partial(actor_discrete_forward, da=da_out, bf16_layer1=bf16_l1))
    probs = jax.block_until_ready(fwd(state, prepared))

    ref_mixed = reference_forward_mixed(state, params, bf16_l1)
    ref_f32 = reference_forward_f32(state, params)

    assert probs.shape == (B, da)
    assert bool(jnp.all(jnp.isfinite(probs)))
    # exact division -> tight sum-to-1
    assert jnp.allclose(jnp.sum(probs, axis=-1), 1.0, atol=1e-5)
    # against a reference mirroring the kernel's mixed precision
    assert jnp.allclose(probs, ref_mixed, atol=1e-2, rtol=1e-2)
    # against the pure-f32 reference (bf16 weight cast -> looser tolerance)
    assert jnp.allclose(probs, ref_f32, atol=3e-2, rtol=3e-2)

    print("KERNEL_OK")
</pallas_src>

<mosaic_0001>
module attributes {stable_mosaic.version = 11 : i64} {
  func.func @actor_discrete_kernel(%arg0: i32, %arg1: memref<400x4xf32, #tpu.memory_space<vmem>>, %arg2: memref<4x256xf32, #tpu.memory_space<vmem>>, %arg3: memref<1x256xf32, #tpu.memory_space<vmem>>, %arg4: memref<256x256xbf16, #tpu.memory_space<vmem>>, %arg5: memref<1x256xf32, #tpu.memory_space<vmem>>, %arg6: memref<256x128xbf16, #tpu.memory_space<vmem>>, %arg7: memref<1x128xf32, #tpu.memory_space<vmem>>, %arg8: memref<400x128xf32, #tpu.memory_space<vmem>>) attributes {dimension_semantics = [#tpu.dimension_semantics<parallel>], iteration_bounds = array<i64: 1>, scalar_prefetch = 0 : i64, scratch_operands = 0 : i64, tpu.core_type = #tpu.core_type<tc>, window_params = [{transform_indices = @transform_0, window_bounds = array<i64: 400, 4>}, {pipeline_mode = #tpu.pipeline_mode<synchronous>, transform_indices = @transform_1, window_bounds = array<i64: 4, 256>}, {pipeline_mode = #tpu.pipeline_mode<synchronous>, transform_indices = @transform_2, window_bounds = array<i64: 1, 256>}, {pipeline_mode = #tpu.pipeline_mode<synchronous>, transform_indices = @transform_3, window_bounds = array<i64: 256, 256>}, {pipeline_mode = #tpu.pipeline_mode<synchronous>, transform_indices = @transform_4, window_bounds = array<i64: 1, 256>}, {pipeline_mode = #tpu.pipeline_mode<synchronous>, transform_indices = @transform_5, window_bounds = array<i64: 256, 128>}, {pipeline_mode = #tpu.pipeline_mode<synchronous>, transform_indices = @transform_6, window_bounds = array<i64: 1, 128>}, {transform_indices = @transform_7, window_bounds = array<i64: 400, 128>}]} {
    %c0 = arith.constant 0 : index
    %c0_0 = arith.constant 0 : index
    %0 = vector.load %arg1[%c0, %c0_0] : memref<400x4xf32, #tpu.memory_space<vmem>>, vector<400x4xf32>
    %c0_1 = arith.constant 0 : index
    %c0_2 = arith.constant 0 : index
    %1 = vector.load %arg2[%c0_1, %c0_2] : memref<4x256xf32, #tpu.memory_space<vmem>>, vector<4x256xf32>
    %c0_3 = arith.constant 0 : index
    %c0_4 = arith.constant 0 : index
    %2 = vector.load %arg3[%c0_3, %c0_4] : memref<1x256xf32, #tpu.memory_space<vmem>>, vector<1x256xf32>
    %3 = vector.shape_cast %2 : vector<1x256xf32> to vector<1x256xf32>
    %4 = vector.broadcast %3 : vector<1x256xf32> to vector<400x256xf32>
    %5 = vector.extract_strided_slice %0 {offsets = [0, 0], sizes = [400, 1], strides = [1, 1]} : vector<400x4xf32> to vector<400x1xf32>
    %6 = vector.extract_strided_slice %1 {offsets = [0, 0], sizes = [1, 256], strides = [1, 1]} : vector<4x256xf32> to vector<1x256xf32>
    %7 = vector.broadcast %5 : vector<400x1xf32> to vector<400x256xf32>
    %8 = vector.broadcast %6 : vector<1x256xf32> to vector<400x256xf32>
    %9 = arith.mulf %7, %8 : vector<400x256xf32>
    %10 = arith.addf %4, %9 : vector<400x256xf32>
    %11 = vector.extract_strided_slice %0 {offsets = [0, 1], sizes = [400, 1], strides = [1, 1]} : vector<400x4xf32> to vector<400x1xf32>
    %12 = vector.extract_strided_slice %1 {offsets = [1, 0], sizes = [1, 256], strides = [1, 1]} : vector<4x256xf32> to vector<1x256xf32>
    %13 = vector.broadcast %11 : vector<400x1xf32> to vector<400x256xf32>
    %14 = vector.broadcast %12 : vector<1x256xf32> to vector<400x256xf32>
    %15 = arith.mulf %13, %14 : vector<400x256xf32>
    %16 = arith.addf %10, %15 : vector<400x256xf32>
    %17 = vector.extract_strided_slice %0 {offsets = [0, 2], sizes = [400, 1], strides = [1, 1]} : vector<400x4xf32> to vector<400x1xf32>
    %18 = vector.extract_strided_slice %1 {offsets = [2, 0], sizes = [1, 256], strides = [1, 1]} : vector<4x256xf32> to vector<1x256xf32>
    %19 = vector.broadcast %17 : vector<400x1xf32> to vector<400x256xf32>
    %20 = vector.broadcast %18 : vector<1x256xf32> to vector<400x256xf32>
    %21 = arith.mulf %19, %20 : vector<400x256xf32>
    %22 = arith.addf %16, %21 : vector<400x256xf32>
    %23 = vector.extract_strided_slice %0 {offsets = [0, 3], sizes = [400, 1], strides = [1, 1]} : vector<400x4xf32> to vector<400x1xf32>
    %24 = vector.extract_strided_slice %1 {offsets = [3, 0], sizes = [1, 256], strides = [1, 1]} : vector<4x256xf32> to vector<1x256xf32>
    %25 = vector.broadcast %23 : vector<400x1xf32> to vector<400x256xf32>
    %26 = vector.broadcast %24 : vector<1x256xf32> to vector<400x256xf32>
    %27 = arith.mulf %25, %26 : vector<400x256xf32>
    %28 = arith.addf %22, %27 : vector<400x256xf32>
    %cst = arith.constant 0.000000e+00 : f32
    %29 = vector.broadcast %cst : f32 to vector<400x256xf32>
    %30 = arith.maximumf %28, %29 : vector<400x256xf32>
    %31 = arith.truncf %30 : vector<400x256xf32> to vector<400x256xbf16>
    %c0_5 = arith.constant 0 : index
    %c0_6 = arith.constant 0 : index
    %32 = vector.load %arg4[%c0_5, %c0_6] : memref<256x256xbf16, #tpu.memory_space<vmem>>, vector<256x256xbf16>
    %cst_7 = arith.constant dense<0.000000e+00> : vector<400x256xf32>
    %33 = tpu.matmul %31, %32, %cst_7 {dimension_numbers = #tpu.dot_dimension_numbers<[1], [0], [0], [1], [0, 0, 1, 1], [], []>} : vector<400x256xbf16>, vector<256x256xbf16>, vector<400x256xf32> -> vector<400x256xf32>
    %c0_8 = arith.constant 0 : index
    %c0_9 = arith.constant 0 : index
    %34 = vector.load %arg5[%c0_8, %c0_9] : memref<1x256xf32, #tpu.memory_space<vmem>>, vector<1x256xf32>
    %35 = vector.broadcast %34 : vector<1x256xf32> to vector<400x256xf32>
    %36 = arith.addf %33, %35 : vector<400x256xf32>
    %cst_10 = arith.constant 0.000000e+00 : f32
    %37 = vector.broadcast %cst_10 : f32 to vector<400x256xf32>
    %38 = arith.maximumf %36, %37 : vector<400x256xf32>
    %39 = arith.truncf %38 : vector<400x256xf32> to vector<400x256xbf16>
    %c0_11 = arith.constant 0 : index
    %c0_12 = arith.constant 0 : index
    %40 = vector.load %arg6[%c0_11, %c0_12] : memref<256x128xbf16, #tpu.memory_space<vmem>>, vector<256x128xbf16>
    %cst_13 = arith.constant dense<0.000000e+00> : vector<400x128xf32>
    %41 = tpu.matmul %39, %40, %cst_13 {dimension_numbers = #tpu.dot_dimension_numbers<[1], [0], [0], [1], [0, 0, 1, 1], [], []>} : vector<400x256xbf16>, vector<256x128xbf16>, vector<400x128xf32> -> vector<400x128xf32>
    %c0_14 = arith.constant 0 : index
    %c0_15 = arith.constant 0 : index
    %42 = vector.load %arg7[%c0_14, %c0_15] : memref<1x128xf32, #tpu.memory_space<vmem>>, vector<1x128xf32>
    %43 = vector.broadcast %42 : vector<1x128xf32> to vector<400x128xf32>
    %44 = arith.addf %41, %43 : vector<400x128xf32>
    %cst_16 = arith.constant dense<0xFF800000> : vector<400xf32>
    %45 = vector.multi_reduction <maximumf>, %44, %cst_16 [1] : vector<400x128xf32> to vector<400xf32>
    %46 = vector.shape_cast %45 : vector<400xf32> to vector<400x1xf32>
    %47 = vector.broadcast %46 : vector<400x1xf32> to vector<400x128xf32>
    %48 = arith.subf %44, %47 : vector<400x128xf32>
    %49 = math.exp %48 : vector<400x128xf32>
    %cst_17 = arith.constant dense<0.000000e+00> : vector<400xf32>
    %50 = vector.multi_reduction <add>, %49, %cst_17 [1] : vector<400x128xf32> to vector<400xf32>
    %51 = vector.shape_cast %50 : vector<400xf32> to vector<400x1xf32>
    %52 = vector.broadcast %51 : vector<400x1xf32> to vector<400x128xf32>
    %53 = arith.divf %49, %52 : vector<400x128xf32>
    %c0_18 = arith.constant 0 : index
    %c0_19 = arith.constant 0 : index
    %54 = vector.load %arg8[%c0_18, %c0_19] : memref<400x128xf32, #tpu.memory_space<vmem>>, vector<400x128xf32>
    tpu.vector_store %arg8[%c0_18, %c0_19], %53 {strides = array<i32>} : memref<400x128xf32, #tpu.memory_space<vmem>>, vector<400x128xf32>,
    return
  }
  func.func @transform_0(%arg0: i32) -> (i32, i32) {
    %c0_i32 = arith.constant 0 : i32
    %c0_i32_0 = arith.constant 0 : i32
    return %arg0, %c0_i32 : i32, i32
  }
  func.func @transform_1(%arg0: i32) -> (i32, i32) {
    %c0_i32 = arith.constant 0 : i32
    %c0_i32_0 = arith.constant 0 : i32
    %c0_i32_1 = arith.constant 0 : i32
    return %c0_i32, %c0_i32_0 : i32, i32
  }
  func.func @transform_2(%arg0: i32) -> (i32, i32) {
    %c0_i32 = arith.constant 0 : i32
    %c0_i32_0 = arith.constant 0 : i32
    %c0_i32_1 = arith.constant 0 : i32
    return %c0_i32, %c0_i32_0 : i32, i32
  }
  func.func @transform_3(%arg0: i32) -> (i32, i32) {
    %c0_i32 = arith.constant 0 : i32
    %c0_i32_0 = arith.constant 0 : i32
    %c0_i32_1 = arith.constant 0 : i32
    return %c0_i32, %c0_i32_0 : i32, i32
  }
  func.func @transform_4(%arg0: i32) -> (i32, i32) {
    %c0_i32 = arith.constant 0 : i32
    %c0_i32_0 = arith.constant 0 : i32
    %c0_i32_1 = arith.constant 0 : i32
    return %c0_i32, %c0_i32_0 : i32, i32
  }
  func.func @transform_5(%arg0: i32) -> (i32, i32) {
    %c0_i32 = arith.constant 0 : i32
    %c0_i32_0 = arith.constant 0 : i32
    %c0_i32_1 = arith.constant 0 : i32
    return %c0_i32, %c0_i32_0 : i32, i32
  }
  func.func @transform_6(%arg0: i32) -> (i32, i32) {
    %c0_i32 = arith.constant 0 : i32
    %c0_i32_0 = arith.constant 0 : i32
    %c0_i32_1 = arith.constant 0 : i32
    return %c0_i32, %c0_i32_0 : i32, i32
  }
  func.func @transform_7(%arg0: i32) -> (i32, i32) {
    %c0_i32 = arith.constant 0 : i32
    %c0_i32_0 = arith.constant 0 : i32
    return %arg0, %c0_i32 : i32, i32
  }
}

</mosaic_0001>

<bundles_post_ra>
// kernel: actor_discrete_forward.1
= control target key start
LH: loop header
LB: loop body
LE: loop exit
PB: predicated region body
PF: predicated region fallthrough
CT: control target
= control target key end

     0   :  { %v4937_v0 = vmov 0   ;;  %v7884_v60 = vmov 1   ;;  %s7874_s0 = inlined_call_operand.vmem [shape: f32[400,4], index: 0, kind: input, shape index: {}]   ;;  %s7875_s3 = inlined_call_operand.vmem [shape: bf16[256,256], index: 3, kind: input, shape index: {}]   ;;  %s7876_s1 = inlined_call_operand.vmem [shape: f32[4,256], index: 1, kind: input, shape index: {}]   ;;  %s7877_s2 = inlined_call_operand.vmem [shape: f32[1,256], index: 2, kind: input, shape index: {}]   ;;  %s7878_s4 = inlined_call_operand.vmem [shape: f32[1,256], index: 4, kind: input, shape index: {}]   ;;  %s7879_s5 = inlined_call_operand.vmem [shape: bf16[256,128], index: 5, kind: input, shape index: {}]   ;;  %s7880_s6 = inlined_call_operand.vmem [shape: f32[1,128], index: 6, kind: input, shape index: {}]   ;;  %s7881_s7 = inlined_call_operand.vmem [shape: f32[400,128], index: 7, kind: output, shape index: {}]  }
   0x1   :  { %4608 = vset.pattern.permute.xlu2 %v4937_v0  ;;  %4607 = vset.pattern.permute.xlu1 %v4937_v0  ;;  %v4984_v1 = vld [vmem:[%s7874_s0 + $0x20] sm:$0xff]  ;;  %v4989_v2 = vld [vmem:[%s7874_s0 + $0x10] sm:$0xff]  ;;  %v5002_v4 = vld [vmem:[%s7874_s0 + $0x28] sm:$0xff] }
   0x2   :  { %v4994_v3 = vld [vmem:[%s7874_s0] sm:$0xff]  ;;  %4606 = vset.pattern.permute.xlu0 %v4937_v0  ;;  %105 = vperm.xlu2 %4608, %v4984_v1   ;;  %v5007_v5 = vld [vmem:[%s7874_s0 + $0x18] sm:$0xff]  ;;  %v5012_v6 = vld [vmem:[%s7874_s0 + $0x8] sm:$0xff] }
   0x3   :  { %95 = vperm.xlu1 %4607, %v4989_v2   ;;  %85 = vperm.xlu0 %4606, %v4994_v3   ;;  %v5020_v7 = vld [vmem:[%s7874_s0 + $0x40] sm:$0xff]  ;;  %v5025_v8 = vld [vmem:[%s7874_s0 + $0x38] sm:$0xff]  ;;  %v5030_v9 = vld [vmem:[%s7874_s0 + $0x30] sm:$0xff] }
   0x4   :  { %v5038_v10 = vld [vmem:[%s7874_s0 + $0x58] sm:$0xff]  ;;  %v5043_v11 = vld [vmem:[%s7874_s0 + $0x50] sm:$0xff]  ;;  %v5048_v12 = vld [vmem:[%s7874_s0 + $0x48] sm:$0xff] }
   0x5   :  { %v5056_v13 = vld [vmem:[%s7874_s0 + $0x70] sm:$0xff]  ;;  %v5061_v14 = vld [vmem:[%s7874_s0 + $0x68] sm:$0xff]  ;;  %v5066_v15 = vld [vmem:[%s7874_s0 + $0x60] sm:$0xff] }
   0x6   :  { %v5074_v16 = vld [vmem:[%s7874_s0 + $0x88] sm:$0xff]  ;;  %v5079_v17 = vld [vmem:[%s7874_s0 + $0x80] sm:$0xff]  ;;  %v5084_v18 = vld [vmem:[%s7874_s0 + $0x78] sm:$0xff] }
   0x7   :  { %v5092_v19 = vld [vmem:[%s7874_s0 + $0xa0] sm:$0xff]  ;;  %v5097_v20 = vld [vmem:[%s7874_s0 + $0x98] sm:$0xff]  ;;  %v5102_v21 = vld [vmem:[%s7874_s0 + $0x90] sm:$0xff] }
   0x8   :  { %v5110_v22 = vld [vmem:[%s7874_s0 + $0xb8] sm:$0xff]  ;;  %v5115_v23 = vld [vmem:[%s7874_s0 + $0xb0] sm:$0xff]  ;;  %v5120_v24 = vld [vmem:[%s7874_s0 + $0xa8] sm:$0xff] }
   0x9   :  { %v5128_v25 = vld [vmem:[%s7874_s0 + $0xd0] sm:$0xff]  ;;  %v5133_v26 = vld [vmem:[%s7874_s0 + $0xc8] sm:$0xff]  ;;  %v5138_v27 = vld [vmem:[%s7874_s0 + $0xc0] sm:$0xff] }
   0xa   :  { %110 = vperm.xlu2 %4608, %v5002_v4   ;;  %v5146_v28 = vld [vmem:[%s7874_s0 + $0xe8] sm:$0xff]  ;;  %v5151_v29 = vld [vmem:[%s7874_s0 + $0xe0] sm:$0xff]  ;;  %v5156_v30 = vld [vmem:[%s7874_s0 + $0xd8] sm:$0xff] }
   0xb   :  { %100 = vperm.xlu1 %4607, %v5007_v5   ;;  %90 = vperm.xlu0 %4606, %v5012_v6   ;;  %v5164_v31 = vld [vmem:[%s7874_s0 + $0x100] sm:$0xff]  ;;  %v5169_v32 = vld [vmem:[%s7874_s0 + $0xf8] sm:$0xff]  ;;  %v5174_v33 = vld [vmem:[%s7874_s0 + $0xf0] sm:$0xff] }
   0xc   :  { %v5182_v34 = vld [vmem:[%s7874_s0 + $0x118] sm:$0xff]  ;;  %v5187_v35 = vld [vmem:[%s7874_s0 + $0x110] sm:$0xff]  ;;  %v5192_v36 = vld [vmem:[%s7874_s0 + $0x108] sm:$0xff] }
   0xd   :  { %v5202_v38 = vld [vmem:[%s7874_s0 + $0x130] sm:$0xff]  ;;  %v5207_v39 = vld [vmem:[%s7874_s0 + $0x128] sm:$0xff]  ;;  %v5212_v40 = vld [vmem:[%s7874_s0 + $0x120] sm:$0xff] }
   0xe   :  { %v5222_v42 = vld [vmem:[%s7874_s0 + $0x148] sm:$0xff]  ;;  %v5227_v43 = vld [vmem:[%s7874_s0 + $0x140] sm:$0xff]  ;;  %v5232_v44 = vld [vmem:[%s7874_s0 + $0x138] sm:$0xff] }
   0xf   :  { %v5242_v46 = vld [vmem:[%s7874_s0 + $0x160] sm:$0xff]  ;;  %v5247_v47 = vld [vmem:[%s7874_s0 + $0x158] sm:$0xff]  ;;  %v5252_v48 = vld [vmem:[%s7874_s0 + $0x150] sm:$0xff] }
  0x10   :  { %v5266_v52 = vld [vmem:[%s7874_s0 + $0x178] sm:$0xff]  ;;  %v5271_v53 = vld [vmem:[%s7874_s0 + $0x170] sm:$0xff]  ;;  %v5276_v54 = vld [vmem:[%s7874_s0 + $0x168] sm:$0xff] }
  0x11   :  { %v5290_v58 = vld [vmem:[%s7874_s0 + $0x188] sm:$0xff]  ;;  %v5295_v59 = vld [vmem:[%s7874_s0 + $0x180] sm:$0xff] }
  0x12   :  { %125 = vperm.xlu2 %4608, %v5020_v7  }
  0x13   :  { %120 = vperm.xlu1 %4607, %v5025_v8   ;;  %115 = vperm.xlu0 %4606, %v5030_v9  }
  0x1a   :  { %140 = vperm.xlu2 %4608, %v5038_v10  }
  0x1b   :  { %135 = vperm.xlu1 %4607, %v5043_v11   ;;  %130 = vperm.xlu0 %4606, %v5048_v12  }
  0x22   :  { %155 = vperm.xlu2 %4608, %v5056_v13  }
  0x23   :  { %150 = vperm.xlu1 %4607, %v5061_v14   ;;  %145 = vperm.xlu0 %4606, %v5066_v15  }
  0x2a   :  { %170 = vperm.xlu2 %4608, %v5074_v16  }
  0x2b   :  { %165 = vperm.xlu1 %4607, %v5079_v17   ;;  %160 = vperm.xlu0 %4606, %v5084_v18  }
  0x32   :  { %185 = vperm.xlu2 %4608, %v5092_v19  }
  0x33   :  { %180 = vperm.xlu1 %4607, %v5097_v20   ;;  %175 = vperm.xlu0 %4606, %v5102_v21  }
  0x3a   :  { %200 = vperm.xlu2 %4608, %v5110_v22  }
  0x3b   :  { %195 = vperm.xlu1 %4607, %v5115_v23   ;;  %190 = vperm.xlu0 %4606, %v5120_v24  }
  0x42   :  { %215 = vperm.xlu2 %4608, %v5128_v25  }
  0x43   :  { %210 = vperm.xlu1 %4607, %v5133_v26   ;;  %205 = vperm.xlu0 %4606, %v5138_v27  }
  0x4a   :  { %230 = vperm.xlu2 %4608, %v5146_v28  }
  0x4b   :  { %225 = vperm.xlu1 %4607, %v5151_v29   ;;  %220 = vperm.xlu0 %4606, %v5156_v30  }
  0x52   :  { %245 = vperm.xlu2 %4608, %v5164_v31  }
  0x53   :  { %240 = vperm.xlu1 %4607, %v5169_v32   ;;  %235 = vperm.xlu0 %4606, %v5174_v33  }
  0x5a   :  { %260 = vperm.xlu2 %4608, %v5182_v34  }
  0x5b   :  { %255 = vperm.xlu1 %4607, %v5187_v35   ;;  %250 = vperm.xlu0 %4606, %v5192_v36  }
  0x5c   :  { %v5197_v37 = vpop.permute.xlu2 %105 }
  0x5d   :  { %7964 = vst [vmem:[#allocation2_spill] sm:$0xff] %v5197_v37 }
  0x62   :  { %275 = vperm.xlu2 %4608, %v5202_v38  }
  0x63   :  { %270 = vperm.xlu1 %4607, %v5207_v39   ;;  %265 = vperm.xlu0 %4606, %v5212_v40  }
  0x64   :  { %v5217_v41 = vpop.permute.xlu2 %110 }
  0x65   :  { %7965 = vst [vmem:[#allocation3_spill] sm:$0xff] %v5217_v41 }
  0x6a   :  { %290 = vperm.xlu2 %4608, %v5222_v42  }
  0x6b   :  { %285 = vperm.xlu1 %4607, %v5227_v43   ;;  %280 = vperm.xlu0 %4606, %v5232_v44  }
  0x6c   :  { %v5237_v45 = vpop.permute.xlu2 %125 }
  0x6d   :  { %7966 = vst [vmem:[#allocation4_spill] sm:$0xff] %v5237_v45 }
  0x72   :  { %305 = vperm.xlu2 %4608, %v5242_v46  }
  0x73   :  { %300 = vperm.xlu1 %4607, %v5247_v47   ;;  %295 = vperm.xlu0 %4606, %v5252_v48  }
  0x74   :  { %v5257_v49 = vpop.permute.xlu2 %140 }
  0x75   :  { %7967 = vst [vmem:[#allocation5_spill] sm:$0xff] %v5257_v49  ;;  %v5259_v50 = vpop.permute.xlu1 %95  ;;  %v5261_v51 = vpop.permute.xlu0 %85 }
  0x76   :  { %7968 = vst [vmem:[#allocation6_spill] sm:$0xff] %v5259_v50 }
  0x77   :  { %7969 = vst [vmem:[#allocation7_spill] sm:$0xff] %v5261_v51 }
  0x7a   :  { %320 = vperm.xlu2 %4608, %v5266_v52  }
  0x7b   :  { %315 = vperm.xlu1 %4607, %v5271_v53   ;;  %310 = vperm.xlu0 %4606, %v5276_v54  }
  0x7c   :  { %v5281_v55 = vpop.permute.xlu2 %155 }
  0x7d   :  { %7970 = vst [vmem:[#allocation8_spill] sm:$0xff] %v5281_v55  ;;  %v5283_v56 = vpop.permute.xlu1 %100  ;;  %v5285_v57 = vpop.permute.xlu0 %90 }
  0x7e   :  { %7971 = vst [vmem:[#allocation9_spill] sm:$0xff] %v5283_v56 }
  0x7f   :  { %7972 = vst [vmem:[#allocation10_spill] sm:$0xff] %v5285_v57 }
  0x82   :  { %4609 = vset.pattern.permute.xlu2 %v7884_v60 }
  0x83   :  { %330 = vperm.xlu1 %4607, %v5290_v58   ;;  %325 = vperm.xlu0 %4606, %v5295_v59  }
  0x84   :  { %541 = vperm.xlu2 %4609, %v4994_v3   ;;  %v5301_v61 = vpop.permute.xlu2 %170 }
  0x85   :  { %7973 = vst [vmem:[#allocation11_spill] sm:$0xff] %v5301_v61  ;;  %v5303_v62 = vpop.permute.xlu1 %120  ;;  %v5305_v63 = vpop.permute.xlu0 %115 }
  0x86   :  { %7974 = vst [vmem:[#allocation12_spill] sm:$0xff] %v5303_v62  ;;  %v4460_v62 = vld [vmem:[%s7875_s3 + $0xe0] sm:$0xf] }
  0x87   :  { %7975 = vst [vmem:[#allocation13_spill] sm:$0xff] %v5305_v63 }
  0x8b   :  { %4611 = vset.pattern.permute.xlu1 %v7884_v60  ;;  %4610 = vset.pattern.permute.xlu0 %v7884_v60 }
  0x8c   :  { %549 = vperm.xlu1 %4611, %v4989_v2   ;;  %553 = vperm.xlu2 %4609, %v5007_v5   ;;  %v5311_v0 = vpop.permute.xlu2 %185 }
  0x8d   :  { %7976 = vst [vmem:[#allocation14_spill] sm:$0xff] %v5311_v0  ;;  %545 = vperm.xlu0 %4610, %v5012_v6   ;;  %v5314_v55 = vpop.permute.xlu1 %135  ;;  %v5316_v3 = vpop.permute.xlu0 %130 }
  0x8e   :  { %7977 = vst [vmem:[#allocation15_spill] sm:$0xff] %v5314_v55 }
  0x8f   :  { %7978 = vst [vmem:[#allocation16_spill] sm:$0xff] %v5316_v3 }
  0x94   :  { %557 = vperm.xlu1 %4611, %v4984_v1   ;;  %561 = vperm.xlu2 %4609, %v5002_v4   ;;  %v5320_v61 = vpop.permute.xlu2 %200 }
  0x95   :  { %7979 = vst [vmem:[#allocation17_spill] sm:$0xff] %v5320_v61  ;;  %565 = vperm.xlu0 %4610, %v5030_v9   ;;  %v5323_v60 = vpop.permute.xlu1 %150  ;;  %v5325_v2 = vpop.permute.xlu0 %145  ;;  %v7898_v61 = vmov 3  }
  0x96   :  { %7980 = vst [vmem:[#allocation18_spill] sm:$0xff] %v5323_v60  ;;  %v8006_v60 = vmov 3  }
  0x97   :  { %7981 = vst [vmem:[#allocation19_spill] sm:$0xff] %v5325_v2 }
  0x9c   :  { %569 = vperm.xlu1 %4611, %v5025_v8   ;;  %573 = vperm.xlu2 %4609, %v5020_v7   ;;  %v5329_v5 = vpop.permute.xlu2 %215 }
  0x9d   :  { %577 = vperm.xlu0 %4610, %v5048_v12   ;;  %v5332_v6 = vpop.permute.xlu1 %165  ;;  %v5334_v1 = vpop.permute.xlu0 %160 }
  0x9e   :  { %7982 = vst [vmem:[#allocation20_spill] sm:$0xff] %v5332_v6 }
  0x9f   :  { %7983 = vst [vmem:[#allocation21_spill] sm:$0xff] %v5334_v1 }
  0xa4   :  { %581 = vperm.xlu1 %4611, %v5043_v11   ;;  %585 = vperm.xlu2 %4609, %v5038_v10   ;;  %v5338_v4 = vpop.permute.xlu2 %230 }
  0xa5   :  { %589 = vperm.xlu0 %4610, %v5066_v15   ;;  %v5341_v9 = vpop.permute.xlu1 %180  ;;  %v5343_v8 = vpop.permute.xlu0 %175 }
  0xa6   :  { %7984 = vst [vmem:[#allocation22_spill] sm:$0xff] %v5341_v9  ;;  %v7999_v9 = vmov 2  }
  0xa7   :  { %7985 = vst [vmem:[#allocation23_spill] sm:$0xff] %v5343_v8 }
  0xac   :  { %593 = vperm.xlu1 %4611, %v5061_v14   ;;  %597 = vperm.xlu2 %4609, %v5056_v13   ;;  %v5347_v7 = vpop.permute.xlu2 %245 }
  0xad   :  { %601 = vperm.xlu0 %4610, %v5084_v18   ;;  %v5350_v12 = vpop.permute.xlu1 %195  ;;  %v5352_v11 = vpop.permute.xlu0 %190 }
  0xae   :  { %7986 = vst [vmem:[#allocation24_spill] sm:$0xff] %v5350_v12 }
  0xaf   :  { %7987 = vst [vmem:[#allocation25_spill] sm:$0xff] %v5352_v11 }
  0xb4   :  { %605 = vperm.xlu1 %4611, %v5079_v17   ;;  %609 = vperm.xlu2 %4609, %v5074_v16   ;;  %v5356_v10 = vpop.permute.xlu2 %260 }
  0xb5   :  { %613 = vperm.xlu0 %4610, %v5102_v21   ;;  %v5359_v15 = vpop.permute.xlu1 %210  ;;  %v5361_v14 = vpop.permute.xlu0 %205 }
  0xb6   :  { %7988 = vst [vmem:[#allocation26_spill] sm:$0xff] %v5359_v15 }
  0xb7   :  { %7989 = vst [vmem:[#allocation27_spill] sm:$0xff] %v5361_v14 }
  0xbc   :  { %617 = vperm.xlu1 %4611, %v5097_v20   ;;  %621 = vperm.xlu2 %4609, %v5092_v19   ;;  %v5365_v13 = vpop.permute.xlu2 %275 }
  0xbd   :  { %625 = vperm.xlu0 %4610, %v5120_v24   ;;  %v5368_v18 = vpop.permute.xlu1 %225  ;;  %v5370_v17 = vpop.permute.xlu0 %220 }
  0xc4   :  { %629 = vperm.xlu1 %4611, %v5115_v23   ;;  %633 = vperm.xlu2 %4609, %v5110_v22   ;;  %v5374_v16 = vpop.permute.xlu2 %290 }
  0xc5   :  { %7990 = vst [vmem:[#allocation28_spill] sm:$0xff] %v5374_v16  ;;  %637 = vperm.xlu0 %4610, %v5138_v27   ;;  %v5377_v21 = vpop.permute.xlu1 %240  ;;  %v5379_v20 = vpop.permute.xlu0 %235  ;;  %v7892_v27 = vmov 2  }
  0xcc   :  { %641 = vperm.xlu1 %4611, %v5133_v26   ;;  %645 = vperm.xlu2 %4609, %v5128_v25   ;;  %v5383_v19 = vpop.permute.xlu2 %305 }
  0xcd   :  { %7991 = vst [vmem:[#allocation29_spill] sm:$0xff] %v5383_v19  ;;  %649 = vperm.xlu0 %4610, %v5156_v30   ;;  %v5386_v24 = vpop.permute.xlu1 %255  ;;  %v5388_v23 = vpop.permute.xlu0 %250 }
  0xd4   :  { %653 = vperm.xlu1 %4611, %v5151_v29   ;;  %657 = vperm.xlu2 %4609, %v5146_v28   ;;  %v5392_v22 = vpop.permute.xlu2 %320 }
  0xd5   :  { %7992 = vst [vmem:[#allocation30_spill] sm:$0xff] %v5392_v22  ;;  %4613 = vset.pattern.permute.xlu0 %v7892_v27  ;;  %v5395_v26 = vpop.permute.xlu1 %270  ;;  %v5397_v15 = vpop.permute.xlu0 %265 }
  0xd6   :  { %1055 = vperm.xlu0 %4613, %v5156_v30  }
  0xdc   :  { %665 = vperm.xlu1 %4611, %v5169_v32   ;;  %4612 = vset.pattern.permute.xlu2 %v7892_v27 }
  0xdd   :  { %v5402_v14 = vpop.permute.xlu1 %285  ;;  %1051 = vperm.xlu2 %4612, %v5128_v25   ;;  %v5405_v12 = vpop.permute.xlu0 %280 }
  0xde   :  { %7993 = vst [vmem:[#allocation31_spill] sm:$0xff] %v5402_v14  ;;  %4618 = vset.pattern.permute.xlu0 %v7898_v61  ;;  %v5408_v0 = vpop.permute.xlu2 %541 }
  0xdf   :  { %7994 = vst [vmem:[#allocation32_spill] sm:$0xff] %v5405_v12  ;;  %1465 = vperm.xlu0 %4618, %v5151_v29  }
  0xe0   :  { %7995 = vst [vmem:[#allocation33_spill] sm:$0xff] %v5408_v0 }
  0xe4   :  { %4614 = vset.pattern.permute.xlu1 %v7898_v61 }
  0xe5   :  { %1457 = vperm.xlu1 %4614, %v5128_v25   ;;  %v5413_v11 = vpop.permute.xlu1 %300  ;;  %4615 = vset.pattern.permute.xlu2 %v7898_v61  ;;  %v5416_v27 = vpop.permute.xlu0 %295  ;;  %v8003_v61 = vmov 1  }
  0xe6   :  { %7996 = vst [vmem:[#allocation34_spill] sm:$0xff] %v5413_v11  ;;  %1461 = vperm.xlu2 %4615, %v5156_v30   ;;  %v5419_v8 = vpop.permute.xlu2 %553 }
  0xe7   :  { %7997 = vst [vmem:[#allocation35_spill] sm:$0xff] %v5416_v27  ;;  %1477 = vperm.xlu0 %4618, %v5169_v32  }
  0xe8   :  { %7998 = vst [vmem:[#allocation36_spill] sm:$0xff] %v5419_v8 }
  0xed   :  { %4616 = vset.pattern.permute.xlu1 %v7999_v9  ;;  %v5423_v6 = vpop.permute.xlu1 %315  ;;  %v5425_v1 = vpop.permute.xlu0 %310 }
  0xee   :  { %8000 = vst [vmem:[#allocation37_spill] sm:$0xff] %v5423_v6  ;;  %1059 = vperm.xlu1 %4616, %v5151_v29   ;;  %v5428_v25 = vpop.permute.xlu2 %561  ;;  %4617 = vset.pattern.permute.xlu2 %v7999_v9 }
  0xef   :  { %8001 = vst [vmem:[#allocation38_spill] sm:$0xff] %v5425_v1  ;;  %4622 = vset.pattern.permute.xlu0 %v8003_v61  ;;  %1063 = vperm.xlu2 %4617, %v5146_v28  }
  0xf0   :  { %8002 = vst [vmem:[#allocation39_spill] sm:$0xff] %v5428_v25  ;;  %661 = vperm.xlu0 %4622, %v5174_v33   ;;  %v4547_v25 = vld [vmem:[%s7875_s3 + $0x44] sm:$0xf0] }
  0xf5   :  { %v5434_v30 = vpop.permute.xlu1 %330  ;;  %v5436_v2 = vpop.permute.xlu0 %325 }
  0xf6   :  { %8004 = vst [vmem:[#allocation40_spill] sm:$0xff] %v5434_v30  ;;  %4619 = vset.pattern.permute.xlu1 %v8006_v60  ;;  %v5439_v55 = vpop.permute.xlu2 %573 }
  0xf7   :  { %8005 = vst [vmem:[#allocation41_spill] sm:$0xff] %v5436_v2  ;;  %1469 = vperm.xlu1 %4619, %v5146_v28   ;;  %1067 = vperm.xlu2 %4617, %v5174_v33  }
  0xf8   :  { %8007 = vst [vmem:[#allocation42_spill] sm:$0xff] %v5439_v55  ;;  %681 = vperm.xlu0 %4622, %v5182_v34  }
  0xfe   :  { %v5444_v29 = vpop.permute.xlu1 %549  ;;  %v5446_v49 = vpop.permute.xlu2 %585 }
  0xff   :  { %8008 = vst [vmem:[#allocation43_spill] sm:$0xff] %v5444_v29  ;;  %v5448_v3 = vpop.permute.xlu0 %545  ;;  %4620 = vset.pattern.permute.xlu1 %v7999_v9  ;;  %4621 = vset.pattern.permute.xlu2 %v8006_v60 }
 0x100   :  { %8009 = vst [vmem:[#allocation44_spill] sm:$0xff] %v5446_v49  ;;  %1071 = vperm.xlu1 %4620, %v5169_v32   ;;  %685 = vperm.xlu0 %4622, %v5212_v40  }
 0x101   :  { %8010 = vst [vmem:[#allocation45_spill] sm:$0xff] %v5448_v3  ;;  %1473 = vperm.xlu2 %4621, %v5174_v33  }
 0x106   :  { %v5455_v28 = vpop.permute.xlu1 %557  ;;  %v5457_v55 = vpop.permute.xlu2 %597 }
 0x107   :  { %8011 = vst [vmem:[#allocation46_spill] sm:$0xff] %v5455_v28  ;;  %v5459_v45 = vpop.permute.xlu0 %565 }
 0x108   :  { %8012 = vst [vmem:[#allocation47_spill] sm:$0xff] %v5457_v55  ;;  %4623 = vset.pattern.permute.xlu1 %v8003_v61  ;;  %4633 = vset.pattern.permute.xlu0 %v7999_v9 }
 0x109   :  { %8013 = vst [vmem:[#allocation48_spill] sm:$0xff] %v5459_v45  ;;  %4624 = vset.pattern.permute.xlu2 %v8003_v61  ;;  %1075 = vperm.xlu0 %4633, %v5164_v31  }
 0x10a   :  { %669 = vperm.xlu1 %4623, %v5164_v31   ;;  %673 = vperm.xlu2 %4624, %v5192_v36  }
 0x10e   :  { %v5467_v32 = vpop.permute.xlu1 %569  ;;  %v5469_v33 = vpop.permute.xlu2 %609 }
 0x10f   :  { %8014 = vst [vmem:[#allocation49_spill] sm:$0xff] %v5467_v32  ;;  %v5471_v49 = vpop.permute.xlu0 %577  ;;  %v4551_v32 = vld [vmem:[%s7875_s3 + $0x64] sm:$0xf0] }
 0x110   :  { %8015 = vst [vmem:[#allocation50_spill] sm:$0xff] %v5469_v33 }
 0x111   :  { %8016 = vst [vmem:[#allocation51_spill] sm:$0xff] %v5471_v49  ;;  %1095 = vperm.xlu0 %4633, %v5207_v39  }
 0x112   :  { %4625 = vset.pattern.permute.xlu1 %v7999_v9  ;;  %4626 = vset.pattern.permute.xlu2 %v8006_v60 }
 0x113   :  { %1079 = vperm.xlu1 %4625, %v5192_v36   ;;  %1481 = vperm.xlu2 %4626, %v5164_v31  }
 0x116   :  { %v5478_v55 = vpop.permute.xlu1 %581  ;;  %v5480_v45 = vpop.permute.xlu2 %621 }
 0x117   :  { %8017 = vst [vmem:[#allocation52_spill] sm:$0xff] %v5478_v55  ;;  %v5482_v63 = vpop.permute.xlu0 %589  ;;  %v4396_v55 = vld [vmem:[%s7875_s3 + $0x60] sm:$0xf] }
 0x118   :  { %8018 = vst [vmem:[#allocation53_spill] sm:$0xff] %v5480_v45  ;;  %v4404_v45 = vld [vmem:[%s7875_s3 + $0x70] sm:$0xf] }
 0x119   :  { %8019 = vst [vmem:[#allocation54_spill] sm:$0xff] %v5482_v63  ;;  %1099 = vperm.xlu0 %4633, %v5202_v38   ;;  %v4553_v63 = vld [vmem:[%s7875_s3 + $0x74] sm:$0xf0] }
 0x11b   :  { %4627 = vset.pattern.permute.xlu1 %v8006_v60  ;;  %4628 = vset.pattern.permute.xlu2 %v8003_v61 }
 0x11c   :  { %1485 = vperm.xlu1 %4627, %v5192_v36   ;;  %677 = vperm.xlu2 %4628, %v5187_v35   ;;  %v4468_v36 = vld [vmem:[%s7875_s3 + $0xf0] sm:$0xf] }
 0x11e   :  { %v5489_v33 = vpop.permute.xlu1 %593  ;;  %v5491_v49 = vpop.permute.xlu2 %633 }
 0x11f   :  { %8020 = vst [vmem:[#allocation55_spill] sm:$0xff] %v5489_v33  ;;  %v5493_v31 = vpop.permute.xlu0 %601  ;;  %v4569_v33 = vld [vmem:[%s7875_s3 + $0xf4] sm:$0xf0] }
 0x120   :  { %8021 = vst [vmem:[#allocation56_spill] sm:$0xff] %v5491_v49  ;;  %v4405_v49 = vor.u32 %v4553_v63, %v4404_v45  ;;  %v4397_v45 = vor.u32 %v4551_v32, %v4396_v55  ;;  %v4567_v63 = vld [vmem:[%s7875_s3 + $0xe4] sm:$0xf0]  ;;  %v4388_v55 = vld [vmem:[%s7875_s3 + $0x50] sm:$0xf] }
 0x121   :  { %8022 = vst [vmem:[#allocation57_spill] sm:$0xff] %v5493_v31  ;;  %4642 = vset.pattern.permute.xlu0 %v8006_v60  ;;  %v4469_v31 = vor.u32 %v4569_v33, %v4468_v36  ;;  %v4461_v30 = vor.u32 %v4567_v63, %v4460_v62  ;;  %v4549_v32 = vld [vmem:[%s7875_s3 + $0x54] sm:$0xf0] }
 0x122   :  { %1509 = vperm.xlu0 %4642, %v5232_v44   ;;  %4586 = vmatpush.bf16.msra.mxu2 %v4405_v49  ;;  %v4565_v62 = vld [vmem:[%s7875_s3 + $0xd4] sm:$0xf0] }
 0x123   :  { %4594 = vmatpush.bf16.msra.mxu3 %v4469_v31  ;;  %2106 = vmatpush.bf16.msra.mxu0 %v4405_v49  ;;  %v4389_v49 = vor.u32 %v4549_v32, %v4388_v55 }
 0x124   :  { %4629 = vset.pattern.permute.xlu1 %v7999_v9  ;;  %4630 = vset.pattern.permute.xlu2 %v7999_v9 }
 0x125   :  { %1083 = vperm.xlu1 %4629, %v5187_v35   ;;  %1087 = vperm.xlu2 %4630, %v5182_v34  }
 0x126   :  { %v5525_v33 = vpop.permute.xlu1 %605  ;;  %v5527_v36 = vpop.permute.xlu2 %645  ;;  %4587 = vmatpush.bf16.msra.mxu2 %v4397_v45  ;;  %2240 = vmatpush.bf16.msra.mxu1 %v4469_v31  ;;  %v4444_v31 = vld [vmem:[%s7875_s3 + $0xc0] sm:$0xf] }
 0x127   :  { %8023 = vst [vmem:[#allocation58_spill] sm:$0xff] %v5525_v33  ;;  %v5529_v2 = vpop.permute.xlu0 %613  ;;  %4595 = vmatpush.bf16.msra.mxu3 %v4461_v30  ;;  %v4452_v33 = vld [vmem:[%s7875_s3 + $0xd0] sm:$0xf]  ;;  %2107 = vmatpush.bf16.msra.mxu0 %v4397_v45  ;;  %v4563_v45 = vld [vmem:[%s7875_s3 + $0xc4] sm:$0xf0] }
 0x128   :  { %8024 = vst [vmem:[#allocation59_spill] sm:$0xff] %v5529_v2  ;;  %v4453_v63 = vor.u32 %v4565_v62, %v4452_v33  ;;  %v4380_v2 = vld [vmem:[%s7875_s3 + $0x40] sm:$0xf]  ;;  %v4445_v32 = vor.u32 %v4563_v45, %v4444_v31 }
 0x129   :  { %v4381_v33 = vor.u32 %v4547_v25, %v4380_v2  ;;  %v4372_v2 = vld [vmem:[%s7875_s3 + $0x30] sm:$0xf]  ;;  %v4545_v25 = vld [vmem:[%s7875_s3 + $0x34] sm:$0xf0]  ;;  %v4364_v45 = vld [vmem:[%s7875_s3 + $0x20] sm:$0xf] }
 0x12a   :  { %4649 = vset.pattern.permute.xlu0 %v8003_v61  ;;  %4588 = vmatpush.bf16.msra.mxu2 %v4389_v49 }
 0x12b   :  { %713 = vperm.xlu0 %4649, %v5247_v47   ;;  %4596 = vmatpush.bf16.msra.mxu3 %v4453_v63 }
 0x12c   :  { %2241 = vmatpush.bf16.msra.mxu1 %v4461_v30  ;;  %v4436_v30 = vld [vmem:[%s7875_s3 + $0xb0] sm:$0xf]  ;;  %2108 = vmatpush.bf16.msra.mxu0 %v4389_v49  ;;  %v4428_v49 = vld [vmem:[%s7875_s3 + $0xa0] sm:$0xf] }
 0x12d   :  { %4631 = vset.pattern.permute.xlu1 %v8006_v60  ;;  %4632 = vset.pattern.permute.xlu2 %v8006_v60 }
 0x12e   :  { %v5559_v55 = vpop.permute.xlu1 %617  ;;  %1489 = vperm.xlu1 %4631, %v5187_v35   ;;  %1493 = vperm.xlu2 %4632, %v5182_v34   ;;  %v5565_v28 = vpop.permute.xlu2 %657  ;;  %v4373_v34 = vor.u32 %v4545_v25, %v4372_v2  ;;  %v4561_v35 = vld [vmem:[%s7875_s3 + $0xb4] sm:$0xf0] }
 0x12f   :  { %8025 = vst [vmem:[#allocation60_spill] sm:$0xff] %v5559_v55  ;;  %v5563_v62 = vpop.permute.xlu0 %625  ;;  %4589 = vmatpush.bf16.msra.mxu2 %v4381_v33  ;;  %4597 = vmatpush.bf16.msra.mxu3 %v4445_v32  ;;  %v4437_v31 = vor.u32 %v4561_v35, %v4436_v30  ;;  %v4557_v35 = vld [vmem:[%s7875_s3 + $0x94] sm:$0xf0]  ;;  %v4412_v55 = vld [vmem:[%s7875_s3 + $0x80] sm:$0xf] }
 0x130   :  { %8026 = vst [vmem:[#allocation61_spill] sm:$0xff] %v5563_v62  ;;  %2242 = vmatpush.bf16.msra.mxu1 %v4453_v63  ;;  %v4543_v62 = vld [vmem:[%s7875_s3 + $0x24] sm:$0xf0]  ;;  %2109 = vmatpush.bf16.msra.mxu0 %v4381_v33  ;;  %v4541_v33 = vld [vmem:[%s7875_s3 + $0x14] sm:$0xf0] }
 0x131   :  { %v4365_v2 = vor.u32 %v4543_v62, %v4364_v45  ;;  %v4559_v63 = vld [vmem:[%s7875_s3 + $0xa4] sm:$0xf0]  ;;  %v4356_v62 = vld [vmem:[%s7875_s3 + $0x10] sm:$0xf] }
 0x132   :  { %v4429_v25 = vor.u32 %v4559_v63, %v4428_v49  ;;  %v4357_v49 = vor.u32 %v4541_v33, %v4356_v62 }
 0x133   :  { %721 = vperm.xlu0 %4649, %v5276_v54   ;;  %4590 = vmatpush.bf16.msra.mxu2 %v4373_v34 }
 0x134   :  { %4598 = vmatpush.bf16.msra.mxu3 %v4437_v31  ;;  %2243 = vmatpush.bf16.msra.mxu1 %v4445_v32  ;;  %v4420_v32 = vld [vmem:[%s7875_s3 + $0x90] sm:$0xf] }
 0x135   :  { %2110 = vmatpush.bf16.msra.mxu0 %v4373_v34  ;;  %v4421_v63 = vor.u32 %v4557_v35, %v4420_v32  ;;  %v4555_v34 = vld [vmem:[%s7875_s3 + $0x84] sm:$0xf0]  ;;  %v76_v35 = vld [vmem:[%s7876_s1] sm:$0xff] }
 0x136   :  { %v5592_v54 = vpop.permute.xlu1 %629  ;;  %4634 = vset.pattern.permute.xlu1 %v8003_v61  ;;  %4635 = vset.pattern.permute.xlu2 %v7999_v9  ;;  %v4413_v33 = vor.u32 %v4555_v34, %v4412_v55  ;;  %v334_v55 = vperm.slane %v76_v35, 0  ;;  %v1147_v34 = vperm.slane %v76_v35, 6  ;;  %v1552_v41 = vperm.slane %v76_v35, 3 }
 0x137   :  { %8027 = vst [vmem:[#allocation62_spill] sm:$0xff] %v5592_v54  ;;  %v5596_v30 = vpop.permute.xlu0 %637  ;;  %689 = vperm.xlu1 %4634, %v5207_v39   ;;  %1091 = vperm.xlu2 %4635, %v5212_v40   ;;  %v5612_v45 = vpop.permute.xlu2 %1051  ;;  %v4539_v54 = vld [vmem:[%s7875_s3 + $0x4] sm:$0xf0]  ;;  %v1553_v37 = vperm.slane %v76_v35, 7 }
 0x138   :  { %8028 = vst [vmem:[#allocation63_spill] sm:$0xff] %v5596_v30  ;;  %4591 = vmatpush.bf16.msra.mxu2 %v4365_v2  ;;  %4599 = vmatpush.bf16.msra.mxu3 %v4429_v25  ;;  %v4348_v30 = vld [vmem:[%s7875_s3] sm:$0xf]  ;;  %v5680_v3 = vperm.slane %v1552_v41, 3 }
 0x139   :  { %2244 = vmatpush.bf16.msra.mxu1 %v4437_v31  ;;  %v4349_v62 = vor.u32 %v4539_v54, %v4348_v30  ;;  %2111 = vmatpush.bf16.msra.mxu0 %v4365_v2  ;;  %v335_v2 = vperm.slane %v76_v35, 4 }
 0x13b   :  { %4655 = vset.pattern.permute.xlu0 %v8006_v60  ;;  %v5642_v30 = vperm.slane %v335_v2, 0 }
 0x13c   :  { %1513 = vperm.xlu0 %4655, %v5227_v43   ;;  %4592 = vmatpush.bf16.msra.mxu2 %v4357_v49 }
 0x13d   :  { %4600 = vmatpush.bf16.msra.mxu3 %v4421_v63  ;;  %2245 = vmatpush.bf16.msra.mxu1 %v4429_v25  ;;  %v741_v25 = vperm.slane %v76_v35, 5  ;;  %v393_v1 = vmul.f32 %v5642_v30, %v5329_v5 }
 0x13e   :  { %v5628_v31 = vpop.permute.xlu1 %641  ;;  %2112 = vmatpush.bf16.msra.mxu0 %v4357_v49  ;;  %v77_v49 = vld [vmem:[%s7877_s2] sm:$0x3] }
 0x13f   :  { %8029 = vst [vmem:[#allocation64_spill] sm:$0xff] %v5628_v31  ;;  %4636 = vset.pattern.permute.xlu1 %v8006_v60  ;;  %4637 = vset.pattern.permute.xlu2 %v8006_v60  ;;  %v650_v32 = vpop.permute.xlu0 %649  ;;  %v5657_v31 = vperm.slane %v741_v25, 1  ;;  %v5661_v29 = vperm.slane %v77_v49, 0  ;;  %v5663_v8 = vperm.slane %v77_v49, 1 }
 0x140   :  { %1497 = vperm.xlu1 %4636, %v5212_v40   ;;  %1501 = vperm.xlu2 %4637, %v5207_v39   ;;  %v1462_v22 = vpop.permute.xlu2 %1461  ;;  %v740_v40 = vperm.slane %v76_v35, 1  ;;  %v5640_v39 = vperm.slane %v334_v55, 0 }
 0x141   :  { %4593 = vmatpush.bf16.msra.mxu2 %v4349_v62  ;;  %4601 = vmatpush.bf16.msra.mxu3 %v4413_v33  ;;  %v801_v25 = vmul.f32 %v5657_v31, %v650_v32  ;;  %v799_v0 = vmul.f32 %v5657_v31, %v5527_v36 }
 0x142   :  { %2246 = vmatpush.bf16.msra.mxu1 %v4421_v63  ;;  %2113 = vmatpush.bf16.msra.mxu0 %v4349_v62  ;;  %v1146_v63 = vperm.slane %v76_v35, 2  ;;  %v394_v62 = vmul.f32 %v5640_v39, %v5370_v17  ;;  %v5655_v2 = vperm.slane %v740_v40, 1  ;;  %v392_v56 = vmul.f32 %v5640_v39, %v5329_v5 }
 0x144   :  { %1521 = vperm.xlu0 %4655, %v5252_v48   ;;  %v5668_v50 = vperm.slane %v1146_v63, 2  ;;  %v800_v40 = vmul.f32 %v5655_v2, %v650_v32  ;;  %v494_v49 = vadd.f32 %v394_v62, %v5661_v29  ;;  %v798_v32 = vmul.f32 %v5655_v2, %v5527_v36 }
 0x145   :  { %v492_v5 = vadd.f32 %v392_v56, %v5661_v29  ;;  %v1612_v56 = vmul.f32 %v5680_v3, %v1462_v22 }
 0x146   :  { %v5638_v54 = vpop.permute.xlu1 %653  ;;  %2247 = vmatpush.bf16.msra.mxu1 %v4413_v33  ;;  %v395_v33 = vmul.f32 %v5642_v30, %v5370_v17  ;;  %v5670_v17 = vperm.slane %v1147_v34, 2  ;;  %v900_v57 = vadd.f32 %v800_v40, %v494_v49  ;;  %v1204_v41 = vmul.f32 %v5668_v50, %v5612_v45 }
 0x148   :  { %4638 = vset.pattern.permute.xlu1 %v8003_v61  ;;  %4639 = vset.pattern.permute.xlu2 %v8003_v61  ;;  %v1056_v55 = vpop.permute.xlu0 %1055  ;;  %v495_v19 = vadd.f32 %v395_v33, %v5663_v8  ;;  %v1205_v33 = vmul.f32 %v5670_v17, %v5612_v45 }
 0x149   :  { %693 = vperm.xlu1 %4638, %v5202_v38   ;;  %697 = vperm.xlu2 %4639, %v5232_v44   ;;  %v5659_v6 = vpop.permute.xlu2 %1063  ;;  %v1206_v63 = vmul.f32 %v5668_v50, %v1056_v55  ;;  %v1207_v34 = vmul.f32 %v5670_v17, %v1056_v55 }
 0x14a   :  { %v901_v62 = vadd.f32 %v801_v25, %v495_v19 }
 0x14b   :  { %v1306_v55 = vadd.f32 %v1206_v63, %v900_v57 }
 0x14c   :  { %1529 = vperm.xlu0 %4655, %v5242_v46   ;;  %v5682_v46 = vperm.slane %v1553_v37, 3  ;;  %v493_v37 = vadd.f32 %v393_v1, %v5663_v8  ;;  %v1307_v40 = vadd.f32 %v1207_v34, %v901_v62  ;;  %v898_v1 = vadd.f32 %v798_v32, %v492_v5 }
 0x14d   :  { %v1712_v27 = vadd.f32 %v1612_v56, %v1306_v55 }
 0x14e   :  { %v5674_v35 = vpop.permute.xlu1 %665  ;;  %v1613_v19 = vmul.f32 %v5682_v46, %v1462_v22  ;;  %v899_v49 = vadd.f32 %v799_v0, %v493_v37  ;;  %v1304_v11 = vadd.f32 %v1204_v41, %v898_v1  ;;  %v1211_v1 = vmul.f32 %v5670_v17, %v5659_v6 }
 0x14f   :  { %v1812_v57 = vmax.f32 %v1712_v27, 0.0  ;;  %v803_v27 = vmul.f32 %v5657_v31, %v5638_v54 }
 0x150   :  { %v1305_v51 = vadd.f32 %v1205_v33, %v899_v49  ;;  %v1713_v16 = vadd.f32 %v1613_v19, %v1307_v40  ;;  %v804_v33 = vmul.f32 %v5655_v2, %v5565_v28  ;;  %v1210_v40 = vmul.f32 %v5668_v50, %v5659_v6 }
 0x151   :  { %4640 = vset.pattern.permute.xlu1 %v7999_v9  ;;  %4641 = vset.pattern.permute.xlu2 %v8006_v60  ;;  %v1466_v36 = vpop.permute.xlu0 %1465  ;;  %v5702_v25 = vpop.permute.xlu2 %1067 }
 0x152   :  { %1103 = vperm.xlu1 %4640, %v5232_v44   ;;  %1505 = vperm.xlu2 %4641, %v5202_v38   ;;  %v1813_v22 = vmax.f32 %v1713_v16, 0.0  ;;  %v802_v16 = vmul.f32 %v5655_v2, %v5638_v54  ;;  %v805_v54 = vmul.f32 %v5657_v31, %v5565_v28  ;;  %v1614_v28 = vmul.f32 %v5680_v3, %v1466_v36 }
 0x153   :  { %v1615_v49 = vmul.f32 %v5682_v46, %v1466_v36  ;;  %v402_v36 = vmul.f32 %v5640_v39, %v5377_v21 }
 0x154   :  { %1537 = vperm.xlu0 %4655, %v5271_v53  }
 0x157   :  { %v1458_v45 = vpop.permute.xlu1 %1457 }
 0x158   :  { %v1610_v44 = vmul.f32 %v5680_v3, %v1458_v45  ;;  %v1611_v38 = vmul.f32 %v5682_v46, %v1458_v45 }
 0x159   :  { %v5711_v63 = vpop.permute.xlu0 %1477 }
 0x15a   :  { %v1710_v14 = vadd.f32 %v1610_v44, %v1304_v11  ;;  %v1711_v12 = vadd.f32 %v1611_v38, %v1305_v51  ;;  %4643 = vset.pattern.permute.xlu1 %v8003_v61  ;;  %4644 = vset.pattern.permute.xlu2 %v8003_v61  ;;  %v396_v11 = vmul.f32 %v5640_v39, %v5368_v18 }
 0x15b   :  { %701 = vperm.xlu1 %4643, %v5227_v43   ;;  %705 = vperm.xlu2 %4644, %v5222_v42   ;;  %v397_v51 = vmul.f32 %v5642_v30, %v5368_v18  ;;  %v5718_v34 = vpop.permute.xlu2 %1473 }
 0x15c   :  { %v1810_v53 = vmax.f32 %v1710_v14, 0.0  ;;  %v1811_v0 = vmax.f32 %v1711_v12, 0.0  ;;  %4663 = vset.pattern.permute.xlu0 %v8003_v61  ;;  %v398_v12 = vmul.f32 %v5640_v39, %v5338_v4  ;;  %v496_v18 = vadd.f32 %v396_v11, %v5661_v29 }
 0x15d   :  { %729 = vperm.xlu0 %4663, %v5266_v52   ;;  %v399_v52 = vmul.f32 %v5642_v30, %v5338_v4  ;;  %v497_v62 = vadd.f32 %v397_v51, %v5663_v8 }
 0x15e   :  { %v5721_v32 = vpack.c.bf16 %v1812_v57, %v1810_v53  ;;  %v5723_v14 = vpack.c.bf16 %v1813_v22, %v1811_v0  ;;  %v498_v56 = vadd.f32 %v398_v12, %v5661_v29  ;;  %v902_v19 = vadd.f32 %v802_v16, %v496_v18 }
 0x15f   :  { %v903_v55 = vadd.f32 %v803_v27, %v497_v62  ;;  %v499_v4 = vadd.f32 %v399_v52, %v5663_v8  ;;  %v400_v27 = vmul.f32 %v5640_v39, %v5379_v20  ;;  %v808_v62 = vmul.f32 %v5655_v2, %v5674_v35 }
 0x160   :  { %v1060_v5 = vpop.permute.xlu1 %1059  ;;  %2179 = vmatmul.bf16.vlgmr.msra.gmra.mxu2 %v5721_v32  ;;  %2313 = vmatmul.bf16.vlgmr.msra.gmra.mxu3 %v5723_v14  ;;  %v904_v38 = vadd.f32 %v804_v33, %v498_v56  ;;  %v502_v56 = vadd.f32 %v402_v36, %v5661_v29  ;;  %v1619_v36 = vmul.f32 %v5682_v46, %v5718_v34 }
 0x161   :  { %v1208_v37 = vmul.f32 %v5668_v50, %v1060_v5  ;;  %v1209_v41 = vmul.f32 %v5670_v17, %v1060_v5  ;;  %v905_v53 = vadd.f32 %v805_v54, %v499_v4  ;;  %v401_v5 = vmul.f32 %v5642_v30, %v5379_v20 }
 0x162   :  { %v662_v57 = vpop.permute.xlu0 %661  ;;  %v1310_v22 = vadd.f32 %v1210_v40, %v904_v38 }
 0x163   :  { %4645 = vset.pattern.permute.xlu1 %v7999_v9  ;;  %4646 = vset.pattern.permute.xlu2 %v7999_v9  ;;  %v1308_v45 = vadd.f32 %v1208_v37, %v902_v19  ;;  %v1309_v44 = vadd.f32 %v1209_v41, %v903_v55  ;;  %v1311_v11 = vadd.f32 %v1211_v1, %v905_v53 }
 0x164   :  { %1107 = vperm.xlu1 %4645, %v5227_v43   ;;  %1111 = vperm.xlu2 %4646, %v5222_v42   ;;  %v5756_v0 = vpop.permute.xlu2 %673  ;;  %v809_v37 = vmul.f32 %v5657_v31, %v5674_v35  ;;  %v806_v41 = vmul.f32 %v5655_v2, %v662_v57  ;;  %v807_v19 = vmul.f32 %v5657_v31, %v662_v57 }
 0x165   :  { %737 = vperm.xlu0 %4663, %v5290_v58   ;;  %v1714_v12 = vadd.f32 %v1614_v28, %v1308_v45  ;;  %v1715_v16 = vadd.f32 %v1615_v49, %v1309_v44  ;;  %v403_v58 = vmul.f32 %v5642_v30, %v5377_v21  ;;  %v500_v55 = vadd.f32 %v400_v27, %v5661_v29  ;;  %v5816_v27 = vld [vmem:[%s7874_s0 + $0x48] sm:$0xff] }
 0x166   :  { %v501_v1 = vadd.f32 %v401_v5, %v5663_v8  ;;  %v908_v28 = vadd.f32 %v808_v62, %v502_v56  ;;  %v1212_v44 = vmul.f32 %v5668_v50, %v5702_v25 }
 0x167   :  { %v1814_v21 = vmax.f32 %v1714_v12, 0.0  ;;  %v1815_v33 = vmax.f32 %v1715_v16, 0.0  ;;  %v503_v35 = vadd.f32 %v403_v58, %v5663_v8  ;;  %v906_v38 = vadd.f32 %v806_v41, %v500_v55 }
 0x168   :  { %v907_v57 = vadd.f32 %v807_v19, %v501_v1  ;;  %v1618_v16 = vmul.f32 %v5680_v3, %v5718_v34  ;;  %v404_v19 = vmul.f32 %v5640_v39, %v5347_v7  ;;  %v5841_v1 = vld [vmem:[%s7874_s0 + $0x50] sm:$0xff] }
 0x169   :  { %v1470_v6 = vpop.permute.xlu1 %1469  ;;  %v909_v45 = vadd.f32 %v809_v37, %v503_v35  ;;  %v405_v35 = vmul.f32 %v5642_v30, %v5347_v7 }
 0x16a   :  { %v1616_v43 = vmul.f32 %v5680_v3, %v1470_v6  ;;  %v1617_v51 = vmul.f32 %v5682_v46, %v1470_v6  ;;  %v5790_v49 = vpop.permute.xlu0 %681  ;;  %v1620_v6 = vmul.f32 %v5680_v3, %v5711_v63 }
 0x16c   :  { %v1716_v52 = vadd.f32 %v1616_v43, %v1310_v22  ;;  %v1717_v18 = vadd.f32 %v1617_v51, %v1311_v11  ;;  %4647 = vset.pattern.permute.xlu1 %v8006_v60  ;;  %4648 = vset.pattern.permute.xlu2 %v8003_v61  ;;  %v1621_v43 = vmul.f32 %v5682_v46, %v5711_v63 }
 0x16d   :  { %1517 = vperm.xlu1 %4647, %v5222_v42   ;;  %709 = vperm.xlu2 %4648, %v5252_v48   ;;  %v5782_v4 = vpop.permute.xlu2 %1481 }
 0x16e   :  { %v1816_v20 = vmax.f32 %v1716_v52, 0.0  ;;  %v1817_v54 = vmax.f32 %v1717_v18, 0.0  ;;  %4669 = vset.pattern.permute.xlu0 %v8006_v60 }
 0x16f   :  { %1545 = vperm.xlu0 %4669, %v5295_v59   ;;  %v1213_v59 = vmul.f32 %v5670_v17, %v5702_v25  ;;  %v1312_v25 = vadd.f32 %v1212_v44, %v906_v38  ;;  %v504_v38 = vadd.f32 %v404_v19, %v5661_v29 }
 0x170   :  { %v5785_v42 = vpack.c.bf16 %v1816_v20, %v1814_v21  ;;  %v5787_v40 = vpack.c.bf16 %v1817_v54, %v1815_v33  ;;  %v4898_v20 = vld [vmem:[%s7874_s0] sm:$0xff]  ;;  %v4899_v33 = vld [vmem:[%s7874_s0 + $0x8] sm:$0xff] }
 0x171   :  { %v1313_v58 = vadd.f32 %v1213_v59, %v907_v57  ;;  %v1718_v18 = vadd.f32 %v1618_v16, %v1312_v25  ;;  %v406_v59 = vmul.f32 %v5640_v39, %v5388_v23  ;;  %v813_v25 = vmul.f32 %v5657_v31, %v5756_v0 }
 0x172   :  { %v1072_v53 = vpop.permute.xlu1 %1071  ;;  %2184 = vmatmul.bf16.gmra.mxu2 %v5785_v42  ;;  %2318 = vmatmul.bf16.gmra.mxu3 %v5787_v40  ;;  %v5821_v34 = vpop.permute.xlu0 %685 }
 0x173   :  { %v1214_v22 = vmul.f32 %v5668_v50, %v1072_v53  ;;  %v1215_v11 = vmul.f32 %v5670_v17, %v1072_v53  ;;  %v1818_v21 = vmax.f32 %v1718_v18, 0.0  ;;  %v505_v53 = vadd.f32 %v405_v35, %v5663_v8 }
 0x174   :  { %v506_v16 = vadd.f32 %v406_v59, %v5661_v29 }
 0x175   :  { %v1314_v51 = vadd.f32 %v1214_v22, %v908_v28  ;;  %v1315_v12 = vadd.f32 %v1215_v11, %v909_v45  ;;  %4650 = vset.pattern.permute.xlu1 %v7999_v9  ;;  %4651 = vset.pattern.permute.xlu2 %v7999_v9 }
 0x176   :  { %1115 = vperm.xlu1 %4650, %v5252_v48   ;;  %1119 = vperm.xlu2 %4651, %v5247_v47   ;;  %v5819_v52 = vpop.permute.xlu2 %677  ;;  %v1719_v48 = vadd.f32 %v1619_v36, %v1313_v58  ;;  %v1622_v36 = vmul.f32 %v5680_v3, %v5782_v4  ;;  %v5871_v58 = vld [vmem:[%s7874_s0 + $0x68] sm:$0xff] }
 0x177   :  { %4673 = vset.pattern.permute.xlu0 %v7999_v9  ;;  %v1720_v63 = vadd.f32 %v1620_v6, %v1314_v51  ;;  %v1721_v5 = vadd.f32 %v1621_v43, %v1315_v12  ;;  %v407_v51 = vmul.f32 %v5642_v30, %v5388_v23  ;;  %v812_v12 = vmul.f32 %v5655_v2, %v5756_v0 }
 0x178   :  { %983 = vperm.xlu0 %4673, %v5816_v27   ;;  %v1819_v54 = vmax.f32 %v1719_v48, 0.0 }
 0x179   :  { %v1820_v62 = vmax.f32 %v1720_v63, 0.0  ;;  %v1821_v41 = vmax.f32 %v1721_v5, 0.0  ;;  %v507_v18 = vadd.f32 %v407_v51, %v5663_v8  ;;  %v912_v48 = vadd.f32 %v812_v12, %v506_v16 }
 0x17a   :  { %v816_v16 = vmul.f32 %v5655_v2, %v5790_v49 }
 0x17b   :  { %v5829_v56 = vpack.c.bf16 %v1820_v62, %v1818_v21  ;;  %v5836_v55 = vpack.c.bf16 %v1821_v41, %v1819_v54  ;;  %v1076_v44 = vpop.permute.xlu0 %1075  ;;  %v913_v62 = vadd.f32 %v813_v25, %v507_v18  ;;  %v817_v25 = vmul.f32 %v5657_v31, %v5790_v49 }
 0x17c   :  { %v670_v37 = vpop.permute.xlu1 %669  ;;  %v1216_v57 = vmul.f32 %v5668_v50, %v1076_v44  ;;  %v1217_v43 = vmul.f32 %v5670_v17, %v1076_v44  ;;  %v814_v18 = vmul.f32 %v5655_v2, %v5819_v52 }
 0x17d   :  { %v810_v28 = vmul.f32 %v5655_v2, %v670_v37  ;;  %v811_v45 = vmul.f32 %v5657_v31, %v670_v37 }
 0x17e   :  { %947 = vperm.xlu1 %4650, %v4898_v20   ;;  %951 = vperm.xlu2 %4651, %v4899_v33  }
 0x17f   :  { %v5848_v7 = vpop.permute.xlu2 %1087  ;;  %v910_v11 = vadd.f32 %v810_v28, %v504_v38  ;;  %v911_v6 = vadd.f32 %v811_v45, %v505_v53  ;;  %v4902_v28 = vld [vmem:[%s7874_s0 + $0x160] sm:$0xff]  ;;  %v5888_v45 = vld [vmem:[%s7874_s0 + $0x70] sm:$0xff] }
 0x180   :  { %4677 = vset.pattern.permute.xlu0 %v8006_v60  ;;  %v1222_v49 = vmul.f32 %v5668_v50, %v5848_v7 }
 0x181   :  { %1393 = vperm.xlu0 %4677, %v5841_v1   ;;  %v1316_v23 = vadd.f32 %v1216_v57, %v910_v11  ;;  %v1317_v63 = vadd.f32 %v1217_v43, %v911_v6  ;;  %v411_v43 = vmul.f32 %v5642_v30, %v5356_v10 }
 0x182   :  { %2189 = vmatmul.bf16.gmra.mxu2 %v5829_v56  ;;  %2323 = vmatmul.bf16.gmra.mxu3 %v5836_v55 }
 0x185   :  { %v1080_v22 = vpop.permute.xlu1 %1079 }
 0x186   :  { %4652 = vset.pattern.permute.xlu1 %v8006_v60  ;;  %4653 = vset.pattern.permute.xlu2 %v8006_v60  ;;  %v1218_v5 = vmul.f32 %v5668_v50, %v1080_v22  ;;  %v1219_v0 = vmul.f32 %v5670_v17, %v1080_v22  ;;  %v410_v22 = vmul.f32 %v5640_v39, %v5356_v10 }
 0x187   :  { %1525 = vperm.xlu1 %4652, %v5247_v47   ;;  %1353 = vperm.xlu2 %4653, %v4898_v20   ;;  %v1623_v47 = vmul.f32 %v5682_v46, %v5782_v4  ;;  %v1722_v20 = vadd.f32 %v1622_v36, %v1316_v23  ;;  %v408_v10 = vmul.f32 %v5640_v39, %v5386_v24 }
 0x188   :  { %v1494_v37 = vpop.permute.xlu2 %1493  ;;  %v1318_v41 = vadd.f32 %v1218_v5, %v912_v48  ;;  %v1319_v19 = vadd.f32 %v1219_v0, %v913_v62  ;;  %v510_v36 = vadd.f32 %v410_v22, %v5661_v29  ;;  %v511_v23 = vadd.f32 %v411_v43, %v5663_v8  ;;  %v4904_v5 = vld [vmem:[%s7874_s0 + $0x168] sm:$0xff] }
 0x189   :  { %1405 = vperm.xlu0 %4677, %v5871_v58   ;;  %v1723_v54 = vadd.f32 %v1623_v47, %v1317_v63  ;;  %v1822_v53 = vmax.f32 %v1722_v20, 0.0  ;;  %v409_v47 = vmul.f32 %v5642_v30, %v5386_v24  ;;  %v1223_v63 = vmul.f32 %v5670_v17, %v5848_v7  ;;  %v4905_v24 = vld [vmem:[%s7874_s0 + $0x88] sm:$0xff] }
 0x18a   :  { %v815_v0 = vmul.f32 %v5657_v31, %v5819_v52  ;;  %v916_v48 = vadd.f32 %v816_v16, %v510_v36  ;;  %v917_v62 = vadd.f32 %v817_v25, %v511_v23  ;;  %v1628_v7 = vmul.f32 %v5680_v3, %v1494_v37  ;;  %v4552_v52 = vld [vmem:[%s7875_s3 + $0x74] sm:$0xf] }
 0x18b   :  { %v1823_v57 = vmax.f32 %v1723_v54, 0.0  ;;  %v509_v20 = vadd.f32 %v409_v47, %v5663_v8  ;;  %v4568_v36 = vld [vmem:[%s7875_s3 + $0xf4] sm:$0xf]  ;;  %v4907_v47 = vld [vmem:[%s7874_s0 + $0x18] sm:$0xff] }
 0x18e   :  { %v1486_v21 = vpop.permute.xlu1 %1485 }
 0x18f   :  { %v1624_v35 = vmul.f32 %v5680_v3, %v1486_v21  ;;  %v1625_v4 = vmul.f32 %v5682_v46, %v1486_v21  ;;  %1357 = vperm.xlu1 %4652, %v4899_v33   ;;  %4654 = vset.pattern.permute.xlu2 %v8003_v61  ;;  %v508_v21 = vadd.f32 %v408_v10, %v5661_v29  ;;  %v4470_v10 = vld [vmem:[%s7875_s3 + $0xf8] sm:$0xf0] }
 0x190   :  { %717 = vperm.xlu2 %4654, %v4902_v28   ;;  %v4473_v23 = vor.u32 %v4568_v36, %v4470_v10 }
 0x191   :  { %1409 = vperm.xlu0 %4677, %v5888_v45   ;;  %v1724_v44 = vadd.f32 %v1624_v35, %v1318_v41  ;;  %v1725_v38 = vadd.f32 %v1625_v4, %v1319_v19  ;;  %v5899_v51 = vpop.permute.xlu2 %1091  ;;  %v1629_v41 = vmul.f32 %v5682_v46, %v1494_v37  ;;  %v1322_v35 = vadd.f32 %v1222_v49, %v916_v48  ;;  %v4908_v49 = vld [vmem:[%s7874_s0 + $0x90] sm:$0xff] }
 0x192   :  { %v1323_v4 = vadd.f32 %v1223_v63, %v917_v62  ;;  %v915_v37 = vadd.f32 %v815_v0, %v509_v20  ;;  %v415_v0 = vmul.f32 %v5642_v30, %v5395_v26  ;;  %2508 = vmatpush.bf16.msrb.mxu3 %v4473_v23 }
 0x193   :  { %v1824_v59 = vmax.f32 %v1724_v44, 0.0  ;;  %v1825_v33 = vmax.f32 %v1725_v38, 0.0  ;;  %v914_v44 = vadd.f32 %v814_v18, %v508_v21  ;;  %v414_v18 = vmul.f32 %v5640_v39, %v5395_v26 }
 0x194   :  { %v1729_v22 = vadd.f32 %v1629_v41, %v1323_v4  ;;  %v515_v4 = vadd.f32 %v415_v0, %v5663_v8  ;;  %v413_v26 = vmul.f32 %v5642_v30, %v5397_v15 }
 0x195   :  { %v5893_v11 = vpack.c.bf16 %v1824_v59, %v1822_v53  ;;  %v5895_v6 = vpack.c.bf16 %v1825_v33, %v1823_v57  ;;  %v4906_v57 = vld [vmem:[%s7874_s0 + $0x10] sm:$0xff]  ;;  %v1728_v33 = vadd.f32 %v1628_v7, %v1322_v35  ;;  %v514_v35 = vadd.f32 %v414_v18, %v5661_v29 }
 0x196   :  { %v1829_v41 = vmax.f32 %v1729_v22, 0.0 }
 0x197   :  { %v1084_v12 = vpop.permute.xlu1 %1083  ;;  %4656 = vset.pattern.permute.xlu1 %v7999_v9  ;;  %2194 = vmatmul.bf16.gmra.mxu2 %v5893_v11  ;;  %v1828_v62 = vmax.f32 %v1728_v33, 0.0  ;;  %v819_v33 = vmul.f32 %v5657_v31, %v5821_v34 }
 0x198   :  { %2328 = vmatmul.bf16.gmra.mxu3 %v5895_v6  ;;  %1123 = vperm.xlu1 %4656, %v4902_v28   ;;  %v1220_v54 = vmul.f32 %v5668_v50, %v1084_v12  ;;  %v1221_v19 = vmul.f32 %v5670_v17, %v1084_v12  ;;  %v4406_v28 = vld [vmem:[%s7875_s3 + $0x78] sm:$0xf0] }
 0x199   :  { %4657 = vset.pattern.permute.xlu2 %v7999_v9  ;;  %4683 = vset.pattern.permute.xlu0 %v7999_v9  ;;  %v4409_v53 = vor.u32 %v4552_v52, %v4406_v28 }
 0x19a   :  { %1127 = vperm.xlu2 %4657, %v4904_v5   ;;  %1015 = vperm.xlu0 %4683, %v4905_v24   ;;  %v1502_v38 = vpop.permute.xlu2 %1501  ;;  %v1320_v43 = vadd.f32 %v1220_v54, %v914_v44  ;;  %v1321_v12 = vadd.f32 %v1221_v19, %v915_v37  ;;  %v412_v54 = vmul.f32 %v5640_v39, %v5397_v15  ;;  %v1096_v19 = vpop.permute.xlu0 %1095  ;;  %v4909_v15 = vld [vmem:[%s7874_s0 + $0xa8] sm:$0xff] }
 0x19b   :  { %2374 = vmatpush.bf16.msrb.mxu2 %v4409_v53  ;;  %v1226_v44 = vmul.f32 %v5668_v50, %v1096_v19  ;;  %v1632_v36 = vmul.f32 %v5680_v3, %v1502_v38  ;;  %v1633_v23 = vmul.f32 %v5682_v46, %v1502_v38 }
 0x1a0   :  { %v1490_v59 = vpop.permute.xlu1 %1489  ;;  %955 = vperm.xlu1 %4656, %v4906_v57  }
 0x1a1   :  { %v1626_v16 = vmul.f32 %v5680_v3, %v1490_v59  ;;  %v1627_v25 = vmul.f32 %v5682_v46, %v1490_v59  ;;  %v1227_v59 = vmul.f32 %v5670_v17, %v1096_v19 }
 0x1a2   :  { %959 = vperm.xlu2 %4657, %v4907_v47   ;;  %4687 = vset.pattern.permute.xlu0 %v8006_v60 }
 0x1a3   :  { %1425 = vperm.xlu0 %4687, %v4908_v49   ;;  %v1726_v63 = vadd.f32 %v1626_v16, %v1320_v43  ;;  %v1727_v24 = vadd.f32 %v1627_v25, %v1321_v12  ;;  %v5975_v52 = vpop.permute.xlu2 %697  ;;  %v512_v12 = vadd.f32 %v412_v54, %v5661_v29  ;;  %v513_v16 = vadd.f32 %v413_v26, %v5663_v8  ;;  %v1100_v54 = vpop.permute.xlu0 %1099  ;;  %v4398_v26 = vld [vmem:[%s7875_s3 + $0x68] sm:$0xf0] }
 0x1a4   :  { %v1225_v25 = vmul.f32 %v5670_v17, %v5899_v51 }
 0x1a5   :  { %v1826_v48 = vmax.f32 %v1726_v63, 0.0  ;;  %v1827_v7 = vmax.f32 %v1727_v24, 0.0 }
 0x1a7   :  { %v5964_v21 = vpack.c.bf16 %v1828_v62, %v1826_v48  ;;  %v5966_v20 = vpack.c.bf16 %v1829_v41, %v1827_v7 }
 0x1a8   :  { %4658 = vset.pattern.permute.xlu1 %v8006_v60 }
 0x1a9   :  { %v690_v28 = vpop.permute.xlu1 %689  ;;  %1533 = vperm.xlu1 %4658, %v4904_v5   ;;  %2199 = vmatmul.bf16.gmra.mxu2 %v5964_v21  ;;  %v818_v5 = vmul.f32 %v5655_v2, %v5821_v34  ;;  %v919_v34 = vadd.f32 %v819_v33, %v513_v16 }
 0x1aa   :  { %v820_v37 = vmul.f32 %v5655_v2, %v690_v28  ;;  %v821_v53 = vmul.f32 %v5657_v31, %v690_v28  ;;  %4659 = vset.pattern.permute.xlu2 %v8006_v60  ;;  %2333 = vmatmul.bf16.gmra.mxu3 %v5966_v20 }
 0x1ab   :  { %1361 = vperm.xlu2 %4659, %v4906_v57   ;;  %1437 = vperm.xlu0 %4687, %v4909_v15   ;;  %v1224_v57 = vmul.f32 %v5668_v50, %v5899_v51  ;;  %v918_v63 = vadd.f32 %v818_v5, %v512_v12  ;;  %v1325_v0 = vadd.f32 %v1225_v25, %v919_v34  ;;  %v4910_v51 = vld [vmem:[%s7874_s0 + $0xb0] sm:$0xff]  ;;  %v4462_v12 = vld [vmem:[%s7875_s3 + $0xe8] sm:$0xf0] }
 0x1ac   :  { %v920_v22 = vadd.f32 %v820_v37, %v514_v35  ;;  %v921_v43 = vadd.f32 %v821_v53, %v515_v4  ;;  %v5999_v24 = vpop.permute.xlu2 %1505  ;;  %v4550_v4 = vld [vmem:[%s7875_s3 + $0x64] sm:$0xf]  ;;  %v416_v15 = vmul.f32 %v5640_v39, %v5365_v13  ;;  %v417_v5 = vmul.f32 %v5642_v30, %v5365_v13  ;;  %v8031_v34 = vld [vmem:[#allocation32_spill] sm:$0xff] }
 0x1ad   :  { %v1324_v18 = vadd.f32 %v1224_v57, %v918_v63  ;;  %v4913_v63 = vld [vmem:[%s7874_s0 + $0x178] sm:$0xff] }
 0x1ae   :  { %v1326_v10 = vadd.f32 %v1226_v44, %v920_v22  ;;  %v1327_v49 = vadd.f32 %v1227_v59, %v921_v43  ;;  %v4401_v59 = vor.u32 %v4550_v4, %v4398_v26  ;;  %v4566_v43 = vld [vmem:[%s7875_s3 + $0xe4] sm:$0xf]  ;;  %v1635_v26 = vmul.f32 %v5682_v46, %v5999_v24 }
 0x1af   :  { %v4465_v57 = vor.u32 %v4566_v43, %v4462_v12  ;;  %v4914_v4 = vld [vmem:[%s7874_s0 + $0x20] sm:$0xff] }
 0x1b0   :  { %v1732_v62 = vadd.f32 %v1632_v36, %v1326_v10  ;;  %v1733_v38 = vadd.f32 %v1633_v23, %v1327_v49  ;;  %2375 = vmatpush.bf16.msrb.mxu2 %v4401_v59  ;;  %v4912_v10 = vld [vmem:[%s7874_s0 + $0xc8] sm:$0xff]  ;;  %v516_v23 = vadd.f32 %v416_v15, %v5661_v29  ;;  %v517_v49 = vadd.f32 %v417_v5, %v5663_v8 }
 0x1b1   :  { %1365 = vperm.xlu1 %4658, %v4907_v47   ;;  %v4911_v47 = vld [vmem:[%s7874_s0 + $0x170] sm:$0xff]  ;;  %2509 = vmatpush.bf16.msrb.mxu3 %v4465_v57 }
 0x1b2   :  { %v1498_v48 = vpop.permute.xlu1 %1497  ;;  %v1832_v44 = vmax.f32 %v1732_v62, 0.0  ;;  %v1833_v53 = vmax.f32 %v1733_v38, 0.0  ;;  %v1229_v62 = vmul.f32 %v5670_v17, %v1100_v54  ;;  %v824_v38 = vmul.f32 %v5655_v2, %v5975_v52 }
 0x1b3   :  { %v1630_v7 = vmul.f32 %v5680_v3, %v1498_v48  ;;  %v1631_v41 = vmul.f32 %v5682_v46, %v1498_v48  ;;  %4660 = vset.pattern.permute.xlu2 %v8003_v61  ;;  %1441 = vperm.xlu0 %4687, %v4910_v51   ;;  %v1228_v48 = vmul.f32 %v5668_v50, %v1100_v54 }
 0x1b4   :  { %725 = vperm.xlu2 %4660, %v4911_v47   ;;  %v1634_v54 = vmul.f32 %v5680_v3, %v5999_v24  ;;  %v4915_v24 = vld [vmem:[%s7874_s0 + $0x28] sm:$0xff] }
 0x1b5   :  { %v1730_v19 = vadd.f32 %v1630_v7, %v1324_v18  ;;  %v1731_v35 = vadd.f32 %v1631_v41, %v1325_v0  ;;  %v6031_v16 = vpop.permute.xlu2 %705  ;;  %v418_v18 = vmul.f32 %v5640_v39, %v8031_v34  ;;  %v419_v0 = vmul.f32 %v5642_v30, %v8031_v34  ;;  %v1510_v7 = vpop.permute.xlu0 %1509 }
 0x1b7   :  { %v1830_v28 = vmax.f32 %v1730_v19, 0.0  ;;  %v1831_v37 = vmax.f32 %v1731_v35, 0.0  ;;  %v518_v19 = vadd.f32 %v418_v18, %v5661_v29  ;;  %v519_v35 = vadd.f32 %v419_v0, %v5663_v8 }
 0x1b9   :  { %4661 = vset.pattern.permute.xlu1 %v7999_v9  ;;  %v6021_v33 = vpack.c.bf16 %v1832_v44, %v1830_v28  ;;  %v6023_v22 = vpack.c.bf16 %v1833_v53, %v1831_v37  ;;  %v1636_v37 = vmul.f32 %v5680_v3, %v1510_v7  ;;  %v924_v59 = vadd.f32 %v824_v38, %v518_v19  ;;  %v4390_v38 = vld [vmem:[%s7875_s3 + $0x58] sm:$0xf0] }
 0x1ba   :  { %1131 = vperm.xlu1 %4661, %v4911_v47   ;;  %v825_v47 = vmul.f32 %v5657_v31, %v5975_v52  ;;  %v1637_v52 = vmul.f32 %v5682_v46, %v1510_v7 }
 0x1bb   :  { %8030 = vst [vmem:[#allocation65_spill] sm:$0xff] %v6023_v22  ;;  %4693 = vset.pattern.permute.xlu0 %v7999_v9  ;;  %v694_v13 = vpop.permute.xlu1 %693  ;;  %2204 = vmatmul.bf16.gmra.mxu2 %v6021_v33 }
 0x1bc   :  { %v822_v25 = vmul.f32 %v5655_v2, %v694_v13  ;;  %v823_v36 = vmul.f32 %v5657_v31, %v694_v13  ;;  %4662 = vset.pattern.permute.xlu2 %v7999_v9  ;;  %1047 = vperm.xlu0 %4693, %v4912_v10   ;;  %v925_v15 = vadd.f32 %v825_v47, %v519_v35  ;;  %v4564_v47 = vld [vmem:[%s7875_s3 + $0xd4] sm:$0xf]  ;;  %v4454_v35 = vld [vmem:[%s7875_s3 + $0xd8] sm:$0xf0] }
 0x1bd   :  { %2338 = vmatmul.bf16.gmra.mxu3 %v6023_v22  ;;  %1135 = vperm.xlu2 %4662, %v4913_v63   ;;  %v6076_v10 = vpop.permute.xlu0 %713 }
 0x1be   :  { %v922_v41 = vadd.f32 %v822_v25, %v516_v23  ;;  %v923_v51 = vadd.f32 %v823_v36, %v517_v49  ;;  %v6069_v5 = vpop.permute.xlu2 %1111 }
 0x1c0   :  { %v1328_v28 = vadd.f32 %v1228_v48, %v922_v41  ;;  %v1329_v44 = vadd.f32 %v1229_v62, %v923_v51 }
 0x1c2   :  { %963 = vperm.xlu1 %4661, %v4914_v4   ;;  %v1734_v25 = vadd.f32 %v1634_v54, %v1328_v28  ;;  %v1735_v36 = vadd.f32 %v1635_v26, %v1329_v44  ;;  %v8034_v26 = vld [vmem:[#allocation31_spill] sm:$0xff] }
 0x1c3   :  { %v420_v28 = vmul.f32 %v5640_v39, %v8034_v26  ;;  %v421_v44 = vmul.f32 %v5642_v30, %v8034_v26 }
 0x1c4   :  { %v1104_v53 = vpop.permute.xlu1 %1103  ;;  %4695 = vset.pattern.permute.xlu0 %v8006_v60  ;;  %v1834_v34 = vmax.f32 %v1734_v25, 0.0  ;;  %v1835_v0 = vmax.f32 %v1735_v36, 0.0 }
 0x1c5   :  { %v1230_v43 = vmul.f32 %v5668_v50, %v1104_v53  ;;  %v1231_v12 = vmul.f32 %v5670_v17, %v1104_v53  ;;  %967 = vperm.xlu2 %4662, %v4915_v24   ;;  %v6100_v54 = vpop.permute.xlu0 %721 }
 0x1c7   :  { %v1330_v13 = vadd.f32 %v1230_v43, %v924_v59  ;;  %v1331_v57 = vadd.f32 %v1231_v12, %v925_v15  ;;  %v6084_v51 = vpop.permute.xlu2 %709  ;;  %v4916_v59 = vld [vmem:[%s7874_s0 + $0x180] sm:$0xff]  ;;  %v8035_v15 = vld [vmem:[#allocation28_spill] sm:$0xff] }
 0x1c8   :  { %v422_v43 = vmul.f32 %v5640_v39, %v8035_v15  ;;  %v423_v12 = vmul.f32 %v5642_v30, %v8035_v15 }
 0x1c9   :  { %v1736_v23 = vadd.f32 %v1636_v37, %v1330_v13  ;;  %v1737_v49 = vadd.f32 %v1637_v52, %v1331_v57 }
 0x1ca   :  { %4664 = vset.pattern.permute.xlu1 %v8006_v60 }
 0x1cb   :  { %1541 = vperm.xlu1 %4664, %v4913_v63   ;;  %v1836_v18 = vmax.f32 %v1736_v23, 0.0  ;;  %v1837_v48 = vmax.f32 %v1737_v49, 0.0  ;;  %v4548_v63 = vld [vmem:[%s7875_s3 + $0x54] sm:$0xf]  ;;  %v828_v49 = vmul.f32 %v5655_v2, %v6031_v16 }
 0x1cc   :  { %v4393_v19 = vor.u32 %v4548_v63, %v4390_v38  ;;  %v1940_v38 = vld [vmem:[%s7878_s4] sm:$0x3] }
 0x1cd   :  { %4665 = vset.pattern.permute.xlu2 %v8006_v60  ;;  %v702_v62 = vpop.permute.xlu1 %701  ;;  %v6080_v7 = vpack.c.bf16 %v1836_v18, %v1834_v34  ;;  %v6082_v41 = vpack.c.bf16 %v1837_v48, %v1835_v0  ;;  %v1514_v23 = vpop.permute.xlu0 %1513  ;;  %v829_v34 = vmul.f32 %v5657_v31, %v6031_v16  ;;  %v522_v0 = vadd.f32 %v422_v43, %v5661_v29 }
 0x1ce   :  { %1369 = vperm.xlu2 %4665, %v4914_v4   ;;  %v4457_v4 = vor.u32 %v4564_v47, %v4454_v35  ;;  %2376 = vmatpush.bf16.msrb.mxu2 %v4393_v19  ;;  %v826_v37 = vmul.f32 %v5655_v2, %v702_v62  ;;  %v827_v53 = vmul.f32 %v5657_v31, %v702_v62 }
 0x1cf   :  { %8032 = vst [vmem:[#allocation32_spill] sm:$0xff] %v6080_v7  ;;  %2209 = vmatmul.bf16.gmra.mxu2 %v6080_v7  ;;  %2343 = vmatmul.bf16.gmra.mxu3 %v6082_v41  ;;  %v523_v48 = vadd.f32 %v423_v12, %v5663_v8  ;;  %v1638_v62 = vmul.f32 %v5680_v3, %v1514_v23 }
 0x1d0   :  { %8033 = vst [vmem:[#allocation66_spill] sm:$0xff] %v6082_v41  ;;  %2510 = vmatpush.bf16.msrb.mxu3 %v4457_v4  ;;  %v6119_v57 = vpop.permute.xlu2 %1119  ;;  %v1639_v47 = vmul.f32 %v5682_v46, %v1514_v23  ;;  %v1234_v16 = vmul.f32 %v5668_v50, %v6069_v5  ;;  %v1235_v19 = vmul.f32 %v5670_v17, %v6069_v5  ;;  %v4918_v23 = vld [vmem:[%s7874_s0 + $0x30] sm:$0xff] }
 0x1d1   :  { %v928_v4 = vadd.f32 %v828_v49, %v522_v0  ;;  %v929_v26 = vadd.f32 %v829_v34, %v523_v48 }
 0x1d3   :  { %1373 = vperm.xlu1 %4664, %v4915_v24   ;;  %v520_v24 = vadd.f32 %v420_v28, %v5661_v29  ;;  %v1334_v15 = vadd.f32 %v1234_v16, %v928_v4  ;;  %v1335_v5 = vadd.f32 %v1235_v19, %v929_v26  ;;  %v4919_v19 = vld [vmem:[%s7874_s0 + $0x38] sm:$0xff]  ;;  %v4562_v4 = vld [vmem:[%s7875_s3 + $0xc4] sm:$0xf]  ;;  %v4446_v26 = vld [vmem:[%s7875_s3 + $0xc8] sm:$0xf0] }
 0x1d5   :  { %v926_v36 = vadd.f32 %v826_v37, %v520_v24 }
 0x1d6   :  { %4666 = vset.pattern.permute.xlu2 %v8003_v61  ;;  %v1108_v52 = vpop.permute.xlu1 %1107  ;;  %v521_v61 = vadd.f32 %v421_v44, %v5663_v8  ;;  %v6139_v44 = vperm.slane %v1940_v38, 0 }
 0x1d7   :  { %733 = vperm.xlu2 %4666, %v4916_v59   ;;  %v1232_v13 = vmul.f32 %v5668_v50, %v1108_v52  ;;  %v1233_v25 = vmul.f32 %v5670_v17, %v1108_v52 }
 0x1d8   :  { %v927_v18 = vadd.f32 %v827_v53, %v521_v61  ;;  %v4917_v53 = vld [vmem:[%s7874_s0 + $0x188] sm:$0xff]  ;;  %v6146_v24 = vpop.permute.xlu2 %951 }
 0x1d9   :  { %v1332_v63 = vadd.f32 %v1232_v13, %v926_v36 }
 0x1da   :  { %v1333_v35 = vadd.f32 %v1233_v25, %v927_v18 }
 0x1db   :  { %4667 = vset.pattern.permute.xlu1 %v7999_v9 }
 0x1dc   :  { %1139 = vperm.xlu1 %4667, %v4916_v59   ;;  %v1738_v59 = vadd.f32 %v1638_v62, %v1332_v63  ;;  %v1739_v43 = vadd.f32 %v1639_v47, %v1333_v35  ;;  %v4546_v62 = vld [vmem:[%s7875_s3 + $0x44] sm:$0xf]  ;;  %v4382_v63 = vld [vmem:[%s7875_s3 + $0x48] sm:$0xf0] }
 0x1dd   :  { %v4385_v16 = vor.u32 %v4546_v62, %v4382_v63 }
 0x1de   :  { %v1838_v49 = vmax.f32 %v1738_v59, 0.0  ;;  %v1839_v0 = vmax.f32 %v1739_v43, 0.0  ;;  %v8040_v59 = vld [vmem:[#allocation35_spill] sm:$0xff] }
 0x1df   :  { %4668 = vset.pattern.permute.xlu2 %v7999_v9  ;;  %v1518_v28 = vpop.permute.xlu1 %1517  ;;  %2377 = vmatpush.bf16.msrb.mxu2 %v4385_v16  ;;  %v8042_v43 = vld [vmem:[#allocation7_spill] sm:$0xff]  ;;  %v8044_v16 = vld [vmem:[#allocation10_spill] sm:$0xff] }
 0x1e0   :  { %v1640_v37 = vmul.f32 %v5680_v3, %v1518_v28  ;;  %v1641_v52 = vmul.f32 %v5682_v46, %v1518_v28  ;;  %1143 = vperm.xlu2 %4668, %v4917_v53   ;;  %v4449_v28 = vor.u32 %v4562_v4, %v4446_v26  ;;  %v342_v4 = vmul.f32 %v5640_v39, %v8044_v16 }
 0x1e2   :  { %v1740_v25 = vadd.f32 %v1640_v37, %v1334_v15  ;;  %v1741_v36 = vadd.f32 %v1641_v52, %v1335_v5  ;;  %v6175_v37 = vpop.permute.xlu2 %1353  ;;  %2511 = vmatpush.bf16.msrb.mxu3 %v4449_v28  ;;  %v424_v15 = vmul.f32 %v5640_v39, %v8040_v59  ;;  %v343_v28 = vmul.f32 %v5642_v30, %v8044_v16 }
 0x1e3   :  { %v2180_v12 = vpop.f32.mrf.mxu2  ;;  %v2314_v61 = vpop.f32.mrf.mxu3  ;;  %v1239_v16 = vmul.f32 %v5670_v17, %v6119_v57 }
 0x1e4   :  { %v2181_v13 = vadd.f32 %v2180_v12, %v6139_v44  ;;  %971 = vperm.xlu1 %4667, %v4918_v23   ;;  %v1840_v18 = vmax.f32 %v1740_v25, 0.0  ;;  %v1841_v48 = vmax.f32 %v1741_v36, 0.0  ;;  %v340_v12 = vmul.f32 %v5640_v39, %v8042_v43  ;;  %v8043_v25 = vld [vmem:[#allocation34_spill] sm:$0xff] }
 0x1e5   :  { %v426_v36 = vmul.f32 %v5640_v39, %v8043_v25 }
 0x1e6   :  { %v6152_v34 = vadd.f32 %v2314_v61, %v2181_v13  ;;  %v6160_v38 = vpack.c.bf16 %v1840_v18, %v1838_v49  ;;  %v6162_v47 = vpack.c.bf16 %v1841_v48, %v1839_v0  ;;  %v425_v13 = vmul.f32 %v5642_v30, %v8040_v59 }
 0x1e7   :  { %v830_v61 = vmul.f32 %v5655_v2, %v6084_v51  ;;  %v427_v49 = vmul.f32 %v5642_v30, %v8043_v25  ;;  %v831_v18 = vmul.f32 %v5657_v31, %v6084_v51  ;;  %v341_v0 = vmul.f32 %v5642_v30, %v8042_v43  ;;  %v1522_v43 = vpop.permute.xlu0 %1521 }
 0x1e8   :  { %8036 = vst [vmem:[#allocation31_spill] sm:$0xff] %v6152_v34  ;;  %975 = vperm.xlu2 %4668, %v4919_v19   ;;  %v1116_v35 = vpop.permute.xlu1 %1115  ;;  %2214 = vmatmul.bf16.gmra.mxu2 %v6160_v38  ;;  %v524_v48 = vadd.f32 %v424_v15, %v5661_v29  ;;  %v440_v63 = vadd.f32 %v340_v12, %v5661_v29 }
 0x1e9   :  { %8037 = vst [vmem:[#allocation28_spill] sm:$0xff] %v6160_v38  ;;  %2348 = vmatmul.bf16.gmra.mxu3 %v6162_v47  ;;  %v1236_v62 = vmul.f32 %v5668_v50, %v1116_v35  ;;  %v525_v26 = vadd.f32 %v425_v13, %v5663_v8  ;;  %v1237_v51 = vmul.f32 %v5670_v17, %v1116_v35 }
 0x1ea   :  { %8038 = vst [vmem:[#allocation67_spill] sm:$0xff] %v6162_v47  ;;  %v832_v59 = vmul.f32 %v5655_v2, %v6076_v10  ;;  %v833_v15 = vmul.f32 %v5657_v31, %v6076_v10  ;;  %v526_v12 = vadd.f32 %v426_v36, %v5661_v29  ;;  %v527_v25 = vadd.f32 %v427_v49, %v5663_v8  ;;  %v6219_v47 = vpop.permute.xlu2 %717  ;;  %v8045_v49 = vld [vmem:[#allocation33_spill] sm:$0xff] }
 0x1eb   :  { %v6178_v52 = vpop.f32.mrf.mxu2  ;;  %v6182_v5 = vpop.f32.mrf.mxu3  ;;  %v1642_v34 = vmul.f32 %v5680_v3, %v1522_v43  ;;  %v931_v13 = vadd.f32 %v831_v18, %v525_v26  ;;  %v1238_v35 = vmul.f32 %v5668_v50, %v6119_v57  ;;  %v441_v36 = vadd.f32 %v341_v0, %v5663_v8 }
 0x1ec   :  { %4670 = vset.pattern.permute.xlu1 %v8006_v60  ;;  %8039 = vst [vmem:[#allocation68_spill] sm:$0xff] %v6178_v52  ;;  %v1643_v18 = vmul.f32 %v5682_v46, %v1522_v43  ;;  %v747_v38 = vmul.f32 %v5657_v31, %v8045_v49  ;;  %v932_v41 = vadd.f32 %v832_v59, %v526_v12  ;;  %v8047_v12 = vld [vmem:[#allocation45_spill] sm:$0xff] }
 0x1ed   :  { %8041 = vst [vmem:[#allocation35_spill] sm:$0xff] %v6182_v5  ;;  %1549 = vperm.xlu1 %4670, %v4917_v53   ;;  %v1337_v26 = vadd.f32 %v1237_v51, %v931_v13  ;;  %v933_v57 = vadd.f32 %v833_v15, %v527_v25  ;;  %v748_v25 = vmul.f32 %v5655_v2, %v8047_v12 }
 0x1ee   :  { %v847_v15 = vadd.f32 %v747_v38, %v441_v36  ;;  %v1559_v38 = vmul.f32 %v5682_v46, %v6175_v37 }
 0x1ef   :  { %v1339_v7 = vadd.f32 %v1239_v16, %v933_v57 }
 0x1f0   :  { %4671 = vset.pattern.permute.xlu2 %v8006_v60  ;;  %v948_v53 = vpop.permute.xlu1 %947 }
 0x1f1   :  { %1377 = vperm.xlu2 %4671, %v4918_v23   ;;  %v930_v23 = vadd.f32 %v830_v61, %v524_v48  ;;  %v746_v48 = vmul.f32 %v5655_v2, %v8045_v49  ;;  %v1152_v0 = vmul.f32 %v5668_v50, %v948_v53  ;;  %v1153_v51 = vmul.f32 %v5670_v17, %v948_v53 }
 0x1f3   :  { %v1336_v52 = vadd.f32 %v1236_v62, %v930_v23  ;;  %v1338_v23 = vadd.f32 %v1238_v35, %v932_v41  ;;  %v846_v41 = vadd.f32 %v746_v48, %v440_v63  ;;  %v1558_v63 = vmul.f32 %v5680_v3, %v6175_v37  ;;  %v4374_v37 = vld [vmem:[%s7875_s3 + $0x38] sm:$0xf0] }
 0x1f4   :  { %v1253_v49 = vadd.f32 %v1153_v51, %v847_v15  ;;  %v4438_v15 = vld [vmem:[%s7875_s3 + $0xb8] sm:$0xf0] }
 0x1f5   :  { %v2185_v5 = vpop.f32.mrf.mxu2  ;;  %1381 = vperm.xlu1 %4670, %v4919_v19   ;;  %v2319_v61 = vpop.f32.mrf.mxu3  ;;  %v442_v19 = vadd.f32 %v342_v4, %v5661_v29  ;;  %v1742_v43 = vadd.f32 %v1642_v34, %v1336_v52  ;;  %v4920_v4 = vld [vmem:[%s7874_s0 + $0x40] sm:$0xff]  ;;  %v749_v34 = vmul.f32 %v5657_v31, %v8047_v12  ;;  %v1154_v52 = vmul.f32 %v5668_v50, %v6146_v24 }
 0x1f6   :  { %v2186_v10 = vadd.f32 %v2185_v5, %v6139_v44  ;;  %v443_v5 = vadd.f32 %v343_v28, %v5663_v8  ;;  %v1743_v28 = vadd.f32 %v1643_v18, %v1337_v26  ;;  %v6256_v12 = vpop.permute.xlu2 %1127 }
 0x1f7   :  { %v1842_v36 = vmax.f32 %v1742_v43, 0.0 }
 0x1f8   :  { %v6228_v62 = vadd.f32 %v2319_v61, %v2186_v10  ;;  %v1252_v10 = vadd.f32 %v1152_v0, %v846_v41  ;;  %v1843_v18 = vmax.f32 %v1743_v28, 0.0  ;;  %v849_v57 = vadd.f32 %v749_v34, %v443_v5  ;;  %v4560_v41 = vld [vmem:[%s7875_s3 + $0xb4] sm:$0xf] }
 0x1f9   :  { %4672 = vset.pattern.permute.xlu2 %v7999_v9  ;;  %v1526_v22 = vpop.permute.xlu1 %1525  ;;  %v1659_v28 = vadd.f32 %v1559_v38, %v1253_v49 }
 0x1fa   :  { %8046 = vst [vmem:[#allocation7_spill] sm:$0xff] %v6228_v62  ;;  %v1644_v13 = vmul.f32 %v5680_v3, %v1526_v22  ;;  %v1645_v59 = vmul.f32 %v5682_v46, %v1526_v22  ;;  %979 = vperm.xlu2 %4672, %v4920_v4   ;;  %v1155_v22 = vmul.f32 %v5670_v17, %v6146_v24 }
 0x1fb   :  { %v848_v24 = vadd.f32 %v748_v25, %v442_v19  ;;  %v1658_v19 = vadd.f32 %v1558_v63, %v1252_v10  ;;  %v4441_v25 = vor.u32 %v4560_v41, %v4438_v15  ;;  %v1759_v10 = vmax.f32 %v1659_v28, 0.0 }
 0x1fc   :  { %v1744_v35 = vadd.f32 %v1644_v13, %v1338_v23  ;;  %v1745_v16 = vadd.f32 %v1645_v59, %v1339_v7  ;;  %v4544_v7 = vld [vmem:[%s7875_s3 + $0x34] sm:$0xf]  ;;  %v1255_v13 = vadd.f32 %v1155_v22, %v849_v57 }
 0x1fd   :  { %v6248_v53 = vpop.f32.mrf.mxu2  ;;  %1385 = vperm.xlu1 %4670, %v4920_v4   ;;  %v6254_v61 = vpop.f32.mrf.mxu3  ;;  %v4377_v43 = vor.u32 %v4544_v7, %v4374_v37  ;;  %v1254_v51 = vadd.f32 %v1154_v52, %v848_v24  ;;  %2512 = vmatpush.bf16.msrb.mxu3 %v4441_v25  ;;  %v1758_v63 = vmax.f32 %v1658_v19, 0.0  ;;  %v8053_v24 = vld [vmem:[#allocation29_spill] sm:$0xff]  ;;  %v834_v37 = vmul.f32 %v5655_v2, %v6219_v47 }
 0x1fe   :  { %8048 = vst [vmem:[#allocation34_spill] sm:$0xff] %v6248_v53  ;;  %v1844_v48 = vmax.f32 %v1744_v35, 0.0  ;;  %v1845_v26 = vmax.f32 %v1745_v16, 0.0  ;;  %v428_v57 = vmul.f32 %v5640_v39, %v8053_v24  ;;  %v429_v7 = vmul.f32 %v5642_v30, %v8053_v24 }
 0x1ff   :  { %8049 = vst [vmem:[#allocation10_spill] sm:$0xff] %v6254_v61  ;;  %2378 = vmatpush.bf16.msrb.mxu2 %v4377_v43  ;;  %v8054_v43 = vld [vmem:[#allocation38_spill] sm:$0xff] }
 0x200   :  { %v6264_v23 = vpack.c.bf16 %v1844_v48, %v1842_v36  ;;  %v6266_v0 = vpack.c.bf16 %v1845_v26, %v1843_v18  ;;  %v6289_v18 = vpop.permute.xlu2 %959  ;;  %v528_v28 = vadd.f32 %v428_v57, %v5661_v29  ;;  %v1530_v57 = vpop.permute.xlu0 %1529 }
 0x201   :  { %v1358_v59 = vpop.permute.xlu1 %1357 }
 0x202   :  { %8050 = vst [vmem:[#allocation33_spill] sm:$0xff] %v6264_v23  ;;  %v1560_v5 = vmul.f32 %v5680_v3, %v1358_v59  ;;  %v1561_v4 = vmul.f32 %v5682_v46, %v1358_v59  ;;  %4674 = vset.pattern.permute.xlu2 %v8006_v60  ;;  %2219 = vmatmul.bf16.gmra.mxu2 %v6264_v23 }
 0x203   :  { %8051 = vst [vmem:[#allocation45_spill] sm:$0xff] %v6266_v0  ;;  %1389 = vperm.xlu2 %4674, %v5816_v27   ;;  %2353 = vmatmul.bf16.gmra.mxu3 %v6266_v0  ;;  %v835_v59 = vmul.f32 %v5657_v31, %v6219_v47  ;;  %v529_v47 = vadd.f32 %v429_v7, %v5663_v8 }
 0x204   :  { %v1660_v52 = vadd.f32 %v1560_v5, %v1254_v51  ;;  %v1661_v22 = vadd.f32 %v1561_v4, %v1255_v13  ;;  %v430_v51 = vmul.f32 %v5640_v39, %v8054_v43  ;;  %v431_v13 = vmul.f32 %v5642_v30, %v8054_v43  ;;  %v8055_v5 = vld [vmem:[#allocation6_spill] sm:$0xff] }
 0x205   :  { %v2190_v34 = vpop.f32.mrf.mxu2  ;;  %4675 = vset.pattern.permute.xlu1 %v7999_v9  ;;  %v2324_v16 = vpop.f32.mrf.mxu3  ;;  %v344_v4 = vmul.f32 %v5640_v39, %v8055_v5  ;;  %v935_v7 = vadd.f32 %v835_v59, %v529_v47  ;;  %v1646_v43 = vmul.f32 %v5680_v3, %v1530_v57 }
 0x206   :  { %v2191_v35 = vadd.f32 %v2190_v34, %v6139_v44  ;;  %987 = vperm.xlu1 %4675, %v5841_v1   ;;  %v1760_v38 = vmax.f32 %v1660_v52, 0.0  ;;  %v1761_v36 = vmax.f32 %v1661_v22, 0.0  ;;  %v4921_v1 = vld [vmem:[%s7874_s0 + $0x58] sm:$0xff]  ;;  %v345_v34 = vmul.f32 %v5642_v30, %v8055_v5 }
 0x207   :  { %v8057_v52 = vld [vmem:[#allocation9_spill] sm:$0xff]  ;;  %v530_v24 = vadd.f32 %v430_v51, %v5661_v29  ;;  %v1242_v5 = vmul.f32 %v5668_v50, %v6256_v12 }
 0x208   :  { %v6283_v27 = vadd.f32 %v2324_v16, %v2191_v35  ;;  %v6285_v49 = vpack.c.bf16 %v1760_v38, %v1758_v63  ;;  %v6287_v48 = vpack.c.bf16 %v1761_v36, %v1759_v10  ;;  %v6310_v19 = vpop.permute.xlu2 %1361  ;;  %v346_v22 = vmul.f32 %v5640_v39, %v8057_v52 }
 0x209   :  { %v347_v16 = vmul.f32 %v5642_v30, %v8057_v52  ;;  %v836_v63 = vmul.f32 %v5655_v2, %v6100_v54  ;;  %v837_v38 = vmul.f32 %v5657_v31, %v6100_v54  ;;  %v934_v10 = vadd.f32 %v834_v37, %v528_v28 }
 0x20a   :  { %8052 = vst [vmem:[#allocation69_spill] sm:$0xff] %v6283_v27  ;;  %v1124_v26 = vpop.permute.xlu1 %1123  ;;  %2114 = vmatmul.bf16.vlgmr.msra.gmra.mxu0 %v6285_v49  ;;  %2248 = vmatmul.bf16.vlgmr.msra.gmra.mxu1 %v6287_v48  ;;  %v1243_v54 = vmul.f32 %v5670_v17, %v6256_v12  ;;  %v444_v28 = vadd.f32 %v344_v4, %v5661_v29 }
 0x20b   :  { %4676 = vset.pattern.permute.xlu2 %v7999_v9  ;;  %v1240_v41 = vmul.f32 %v5668_v50, %v1124_v26  ;;  %v1241_v35 = vmul.f32 %v5670_v17, %v1124_v26  ;;  %v531_v26 = vadd.f32 %v431_v13, %v5663_v8  ;;  %v445_v52 = vadd.f32 %v345_v34, %v5663_v8 }
 0x20c   :  { %991 = vperm.xlu2 %4676, %v4921_v1   ;;  %v1647_v27 = vmul.f32 %v5682_v46, %v1530_v57  ;;  %v446_v13 = vadd.f32 %v346_v22, %v5661_v29  ;;  %v447_v59 = vadd.f32 %v347_v16, %v5663_v8  ;;  %v936_v47 = vadd.f32 %v836_v63, %v530_v24  ;;  %v4542_v22 = vld [vmem:[%s7875_s3 + $0x24] sm:$0xf] }
 0x20d   :  { %v6316_v15 = vpop.f32.mrf.mxu2  ;;  %v6330_v36 = vpop.f32.mrf.mxu3  ;;  %v1340_v37 = vadd.f32 %v1240_v41, %v934_v10  ;;  %v1341_v51 = vadd.f32 %v1241_v35, %v935_v7  ;;  %v8060_v41 = vld [vmem:[#allocation43_spill] sm:$0xff] }
 0x20e   :  { %4678 = vset.pattern.permute.xlu1 %v8006_v60  ;;  %8056 = vst [vmem:[#allocation29_spill] sm:$0xff] %v6316_v15  ;;  %v8059_v15 = vld [vmem:[#allocation36_spill] sm:$0xff]  ;;  %v750_v34 = vmul.f32 %v5655_v2, %v8060_v41  ;;  %v751_v35 = vmul.f32 %v5657_v31, %v8060_v41  ;;  %v1342_v16 = vadd.f32 %v1242_v5, %v936_v47 }
 0x20f   :  { %1397 = vperm.xlu1 %4678, %v4921_v1   ;;  %8058 = vst [vmem:[#allocation38_spill] sm:$0xff] %v6330_v36  ;;  %v4922_v1 = vld [vmem:[%s7874_s0 + $0x60] sm:$0xff]  ;;  %v937_v36 = vadd.f32 %v837_v38, %v531_v26  ;;  %v752_v12 = vmul.f32 %v5655_v2, %v8059_v15  ;;  %v753_v4 = vmul.f32 %v5657_v31, %v8059_v15  ;;  %v4430_v26 = vld [vmem:[%s7875_s3 + $0xa8] sm:$0xf0] }
 0x210   :  { %v1746_v10 = vadd.f32 %v1646_v43, %v1340_v37  ;;  %v4558_v15 = vld [vmem:[%s7875_s3 + $0xa4] sm:$0xf]  ;;  %v6369_v57 = vpop.permute.xlu2 %725  ;;  %v1747_v5 = vadd.f32 %v1647_v27, %v1341_v51  ;;  %v1158_v27 = vmul.f32 %v5668_v50, %v6289_v18 }
 0x211   :  { %v1343_v63 = vadd.f32 %v1243_v54, %v937_v36  ;;  %v4433_v36 = vor.u32 %v4558_v15, %v4430_v26  ;;  %v852_v26 = vadd.f32 %v752_v12, %v446_v13  ;;  %v4585_v12 = vld [vmem:[%s7879_s5 + $0x78] sm:$0xff] }
 0x212   :  { %v956_v25 = vpop.permute.xlu1 %955  ;;  %3058 = vmatpush.bf16.msrb.mxu1 %v4585_v12 }
 0x213   :  { %v1156_v7 = vmul.f32 %v5668_v50, %v956_v25  ;;  %v1157_v43 = vmul.f32 %v5670_v17, %v956_v25  ;;  %2513 = vmatpush.bf16.msrb.mxu3 %v4433_v36  ;;  %v1159_v25 = vmul.f32 %v5670_v17, %v6289_v18 }
 0x214   :  { %995 = vperm.xlu2 %4676, %v4922_v1  }
 0x217   :  { %4679 = vset.pattern.permute.xlu1 %v7999_v9 }
 0x218   :  { %999 = vperm.xlu1 %4679, %v5871_v58   ;;  %v4366_v58 = vld [vmem:[%s7875_s3 + $0x28] sm:$0xf0] }
 0x219   :  { %v4369_v24 = vor.u32 %v4542_v22, %v4366_v58  ;;  %v850_v22 = vadd.f32 %v750_v34, %v444_v28  ;;  %v851_v58 = vadd.f32 %v751_v35, %v445_v52  ;;  %v1846_v52 = vmax.f32 %v1746_v10, 0.0 }
 0x21a   :  { %v2195_v38 = vpop.f32.mrf.mxu2  ;;  %v1847_v35 = vmax.f32 %v1747_v5, 0.0  ;;  %v4923_v5 = vld [vmem:[%s7874_s0 + $0x78] sm:$0xff] }
 0x21b   :  { %v2196_v41 = vadd.f32 %v2195_v38, %v6139_v44  ;;  %v1534_v62 = vpop.permute.xlu1 %1533  ;;  %v2329_v54 = vpop.f32.mrf.mxu3  ;;  %2379 = vmatpush.bf16.msrb.mxu2 %v4369_v24  ;;  %v1563_v24 = vmul.f32 %v5682_v46, %v6310_v19  ;;  %v1256_v28 = vadd.f32 %v1156_v7, %v850_v22  ;;  %v1257_v34 = vadd.f32 %v1157_v43, %v851_v58 }
 0x21c   :  { %v1648_v37 = vmul.f32 %v5680_v3, %v1534_v62  ;;  %v1649_v47 = vmul.f32 %v5682_v46, %v1534_v62  ;;  %4680 = vset.pattern.permute.xlu2 %v8006_v60  ;;  %v1562_v62 = vmul.f32 %v5680_v3, %v6310_v19  ;;  %v4577_v19 = vld [vmem:[%s7879_s5 + $0x38] sm:$0xff] }
 0x21d   :  { %v6377_v61 = vadd.f32 %v2329_v54, %v2196_v41  ;;  %1401 = vperm.xlu2 %4680, %v4922_v1   ;;  %v853_v41 = vadd.f32 %v753_v4, %v447_v59  ;;  %v1663_v13 = vadd.f32 %v1563_v24, %v1257_v34  ;;  %v6401_v59 = vpop.permute.xlu2 %1135  ;;  %2924 = vmatpush.bf16.msrb.mxu0 %v4577_v19  ;;  %v4358_v34 = vld [vmem:[%s7875_s3 + $0x18] sm:$0xf0] }
 0x21e   :  { %v1748_v51 = vadd.f32 %v1648_v37, %v1342_v16  ;;  %v1749_v38 = vadd.f32 %v1649_v47, %v1343_v63  ;;  %v1258_v16 = vadd.f32 %v1158_v27, %v852_v26  ;;  %v1662_v37 = vadd.f32 %v1562_v62, %v1256_v28  ;;  %v4924_v26 = vld [vmem:[%s7874_s0 + $0x80] sm:$0xff] }
 0x21f   :  { %8061 = vst [vmem:[#allocation6_spill] sm:$0xff] %v6377_v61  ;;  %v1259_v63 = vadd.f32 %v1159_v25, %v853_v41  ;;  %v1763_v27 = vmax.f32 %v1663_v13, 0.0  ;;  %v8068_v13 = vld [vmem:[#allocation2_spill] sm:$0xff] }
 0x220   :  { %1003 = vperm.xlu1 %4679, %v5888_v45   ;;  %v1848_v1 = vmax.f32 %v1748_v51, 0.0  ;;  %v1849_v15 = vmax.f32 %v1749_v38, 0.0  ;;  %v1762_v22 = vmax.f32 %v1662_v37, 0.0  ;;  %v6413_v51 = vpop.permute.xlu0 %1537  ;;  %v8067_v37 = vld [vmem:[#allocation37_spill] sm:$0xff]  ;;  %v348_v12 = vmul.f32 %v5640_v39, %v8068_v13 }
 0x221   :  { %v432_v19 = vmul.f32 %v5640_v39, %v8067_v37 }
 0x222   :  { %v6388_v36 = vpack.c.bf16 %v1848_v1, %v1846_v52  ;;  %v6390_v18 = vpack.c.bf16 %v1849_v15, %v1847_v35  ;;  %v6395_v10 = vpop.f32.mrf.mxu2  ;;  %v4540_v52 = vld [vmem:[%s7875_s3 + $0x14] sm:$0xf] }
 0x223   :  { %v1366_v54 = vpop.permute.xlu1 %1365  ;;  %8064 = vst [vmem:[#allocation43_spill] sm:$0xff] %v6395_v10  ;;  %v6407_v4 = vpop.f32.mrf.mxu3  ;;  %v4361_v35 = vor.u32 %v4540_v52, %v4358_v34  ;;  %v8070_v52 = vld [vmem:[#allocation30_spill] sm:$0xff] }
 0x224   :  { %8062 = vst [vmem:[#allocation9_spill] sm:$0xff] %v6388_v36  ;;  %v1564_v45 = vmul.f32 %v5680_v3, %v1366_v54  ;;  %v1565_v7 = vmul.f32 %v5682_v46, %v1366_v54  ;;  %2224 = vmatmul.bf16.gmra.mxu2 %v6388_v36  ;;  %2358 = vmatmul.bf16.gmra.mxu3 %v6390_v18  ;;  %v4422_v54 = vld [vmem:[%s7875_s3 + $0x98] sm:$0xf0] }
 0x225   :  { %8063 = vst [vmem:[#allocation36_spill] sm:$0xff] %v6390_v18  ;;  %4681 = vset.pattern.permute.xlu2 %v7999_v9  ;;  %v6431_v41 = vpop.permute.xlu2 %967  ;;  %2380 = vmatpush.bf16.msrb.mxu2 %v4361_v35  ;;  %v434_v34 = vmul.f32 %v5640_v39, %v8070_v52  ;;  %v532_v35 = vadd.f32 %v432_v19, %v5661_v29  ;;  %v4925_v19 = vld [vmem:[%s7874_s0 + $0x88] sm:$0xff] }
 0x226   :  { %8065 = vst [vmem:[#allocation70_spill] sm:$0xff] %v6407_v4  ;;  %1007 = vperm.xlu2 %4681, %v4923_v5   ;;  %v1664_v43 = vadd.f32 %v1564_v45, %v1258_v16  ;;  %v1665_v47 = vadd.f32 %v1565_v7, %v1259_v63  ;;  %v4556_v63 = vld [vmem:[%s7875_s3 + $0x94] sm:$0xf]  ;;  %v433_v45 = vmul.f32 %v5642_v30, %v8067_v37 }
 0x227   :  { %v4425_v7 = vor.u32 %v4556_v63, %v4422_v54  ;;  %v448_v54 = vadd.f32 %v348_v12, %v5661_v29  ;;  %v534_v12 = vadd.f32 %v434_v34, %v5661_v29  ;;  %v1247_v4 = vmul.f32 %v5670_v17, %v6401_v59  ;;  %v4926_v34 = vld [vmem:[%s7874_s0 + $0x90] sm:$0xff] }
 0x228   :  { %4682 = vset.pattern.permute.xlu1 %v8006_v60  ;;  %v1764_v58 = vmax.f32 %v1664_v43, 0.0  ;;  %v1765_v25 = vmax.f32 %v1665_v47, 0.0  ;;  %v730_v43 = vpop.permute.xlu0 %729  ;;  %v838_v47 = vmul.f32 %v5655_v2, %v6369_v57 }
 0x229   :  { %1413 = vperm.xlu1 %4682, %v4923_v5   ;;  %v349_v5 = vmul.f32 %v5642_v30, %v8068_v13  ;;  %2514 = vmatpush.bf16.msrb.mxu3 %v4425_v7  ;;  %v840_v37 = vmul.f32 %v5655_v2, %v730_v43  ;;  %v841_v7 = vmul.f32 %v5657_v31, %v730_v43 }
 0x22a   :  { %v6415_v38 = vpack.c.bf16 %v1764_v58, %v1762_v22  ;;  %v6417_v62 = vpack.c.bf16 %v1765_v25, %v1763_v27  ;;  %v839_v22 = vmul.f32 %v5657_v31, %v6369_v57  ;;  %v8069_v27 = vld [vmem:[#allocation3_spill] sm:$0xff]  ;;  %v1246_v43 = vmul.f32 %v5668_v50, %v6401_v59 }
 0x22b   :  { %v350_v25 = vmul.f32 %v5640_v39, %v8069_v27  ;;  %v940_v59 = vadd.f32 %v840_v37, %v534_v12  ;;  %v1162_v12 = vmul.f32 %v5668_v50, %v6431_v41 }
 0x22c   :  { %v1132_v24 = vpop.permute.xlu1 %1131  ;;  %2119 = vmatmul.bf16.gmra.mxu0 %v6415_v38  ;;  %v2200_v28 = vpop.f32.mrf.mxu2  ;;  %2253 = vmatmul.bf16.gmra.mxu1 %v6417_v62 }
 0x22d   :  { %v2201_v1 = vadd.f32 %v2200_v28, %v6139_v44  ;;  %v2334_v15 = vpop.f32.mrf.mxu3  ;;  %v351_v28 = vmul.f32 %v5642_v30, %v8069_v27  ;;  %v1244_v57 = vmul.f32 %v5668_v50, %v1132_v24  ;;  %v1370_v13 = vpop.permute.xlu2 %1369  ;;  %v8072_v27 = vld [vmem:[#allocation46_spill] sm:$0xff] }
 0x22e   :  { %1011 = vperm.xlu2 %4681, %v4924_v26  }
 0x22f   :  { %v6433_v16 = vadd.f32 %v2334_v15, %v2201_v1  ;;  %v435_v1 = vmul.f32 %v5642_v30, %v8070_v52  ;;  %v533_v15 = vadd.f32 %v433_v45, %v5663_v8  ;;  %v449_v45 = vadd.f32 %v349_v5, %v5663_v8 }
 0x230   :  { %v938_v52 = vadd.f32 %v838_v47, %v532_v35  ;;  %v450_v5 = vadd.f32 %v350_v25, %v5661_v29 }
 0x231   :  { %8066 = vst [vmem:[#allocation71_spill] sm:$0xff] %v6433_v16  ;;  %1417 = vperm.xlu1 %4682, %v4924_v26   ;;  %v1245_v26 = vmul.f32 %v5670_v17, %v1132_v24  ;;  %v754_v24 = vmul.f32 %v5655_v2, %v8072_v27  ;;  %v939_v16 = vadd.f32 %v839_v22, %v533_v15 }
 0x232   :  { %v535_v61 = vadd.f32 %v435_v1, %v5663_v8  ;;  %v1344_v47 = vadd.f32 %v1244_v57, %v938_v52  ;;  %v8074_v1 = vld [vmem:[#allocation39_spill] sm:$0xff]  ;;  %v755_v15 = vmul.f32 %v5657_v31, %v8072_v27  ;;  %v1346_v57 = vadd.f32 %v1246_v43, %v940_v59 }
 0x233   :  { %v1345_v22 = vadd.f32 %v1245_v26, %v939_v16  ;;  %v756_v35 = vmul.f32 %v5655_v2, %v8074_v1  ;;  %v757_v25 = vmul.f32 %v5657_v31, %v8074_v1  ;;  %v854_v10 = vadd.f32 %v754_v24, %v448_v54 }
 0x234   :  { %v964_v58 = vpop.permute.xlu1 %963  ;;  %v6465_v63 = vpop.f32.mrf.mxu2  ;;  %v1650_v16 = vmul.f32 %v5680_v3, %v6413_v51  ;;  %v855_v24 = vadd.f32 %v755_v15, %v449_v45  ;;  %v1567_v45 = vmul.f32 %v5682_v46, %v1370_v13 }
 0x235   :  { %8071 = vst [vmem:[#allocation37_spill] sm:$0xff] %v6465_v63  ;;  %v6477_v63 = vpop.f32.mrf.mxu3  ;;  %v1160_v52 = vmul.f32 %v5668_v50, %v964_v58  ;;  %v6522_v1 = vpop.permute.xlu2 %733  ;;  %v856_v36 = vadd.f32 %v756_v35, %v450_v5  ;;  %v4928_v5 = vld [vmem:[%s7874_s0 + $0xa0] sm:$0xff] }
 0x236   :  { %4684 = vset.pattern.permute.xlu2 %v8006_v60  ;;  %8073 = vst [vmem:[#allocation2_spill] sm:$0xff] %v6477_v63  ;;  %v941_v63 = vadd.f32 %v841_v7, %v535_v61  ;;  %v1750_v27 = vadd.f32 %v1650_v16, %v1344_v47 }
 0x237   :  { %1421 = vperm.xlu2 %4684, %v4925_v19   ;;  %v451_v19 = vadd.f32 %v351_v28, %v5663_v8  ;;  %v1651_v28 = vmul.f32 %v5682_v46, %v6413_v51  ;;  %v1163_v51 = vmul.f32 %v5670_v17, %v6431_v41  ;;  %v4927_v41 = vld [vmem:[%s7874_s0 + $0x98] sm:$0xff]  ;;  %v1260_v15 = vadd.f32 %v1160_v52, %v854_v10 }
 0x238   :  { %v1347_v26 = vadd.f32 %v1247_v4, %v941_v63  ;;  %v1566_v63 = vmul.f32 %v5680_v3, %v1370_v13 }
 0x239   :  { %4685 = vset.pattern.permute.xlu1 %v7999_v9  ;;  %v1751_v54 = vadd.f32 %v1651_v28, %v1345_v22  ;;  %v1850_v28 = vmax.f32 %v1750_v27, 0.0  ;;  %v857_v0 = vadd.f32 %v757_v25, %v451_v19  ;;  %v4350_v25 = vld [vmem:[%s7875_s3 + $0x8] sm:$0xf0] }
 0x23a   :  { %1019 = vperm.xlu1 %4685, %v4926_v34   ;;  %v1161_v34 = vmul.f32 %v5670_v17, %v964_v58  ;;  %v4576_v58 = vld [vmem:[%s7879_s5 + $0x30] sm:$0xff]  ;;  %v1666_v52 = vadd.f32 %v1566_v63, %v1260_v15  ;;  %v738_v15 = vpop.permute.xlu0 %737 }
 0x23b   :  { %2925 = vmatpush.bf16.msrb.mxu0 %v4576_v58  ;;  %v4414_v58 = vld [vmem:[%s7875_s3 + $0x88] sm:$0xf0] }
 0x23c   :  { %v1261_v59 = vadd.f32 %v1161_v34, %v855_v24 }
 0x23d   :  { %v1542_v53 = vpop.permute.xlu1 %1541 }
 0x23e   :  { %v1652_v37 = vmul.f32 %v5680_v3, %v1542_v53  ;;  %v1653_v61 = vmul.f32 %v5682_v46, %v1542_v53  ;;  %v2205_v7 = vpop.f32.mrf.mxu2  ;;  %v4584_v53 = vld [vmem:[%s7879_s5 + $0x70] sm:$0xff]  ;;  %v1667_v34 = vadd.f32 %v1567_v45, %v1261_v59 }
 0x23f   :  { %4686 = vset.pattern.permute.xlu2 %v7999_v9  ;;  %v2206_v4 = vadd.f32 %v2205_v7, %v6139_v44  ;;  %3059 = vmatpush.bf16.msrb.mxu1 %v4584_v53  ;;  %v1851_v7 = vmax.f32 %v1751_v54, 0.0  ;;  %v1144_v53 = vpop.permute.xlu2 %1143 }
 0x240   :  { %v2339_v43 = vpop.f32.mrf.mxu3  ;;  %1023 = vperm.xlu2 %4686, %v4927_v41   ;;  %v1752_v47 = vadd.f32 %v1652_v37, %v1346_v57  ;;  %v1753_v22 = vadd.f32 %v1653_v61, %v1347_v26  ;;  %v1262_v26 = vadd.f32 %v1162_v12, %v856_v36  ;;  %v1263_v37 = vadd.f32 %v1163_v51, %v857_v0  ;;  %v4538_v0 = vld [vmem:[%s7875_s3 + $0x4] sm:$0xf] }
 0x241   :  { %v6524_v16 = vadd.f32 %v2339_v43, %v2206_v4  ;;  %v1766_v36 = vmax.f32 %v1666_v52, 0.0  ;;  %v1767_v35 = vmax.f32 %v1667_v34, 0.0  ;;  %v4353_v51 = vor.u32 %v4538_v0, %v4350_v25  ;;  %v4554_v4 = vld [vmem:[%s7875_s3 + $0x84] sm:$0xf]  ;;  %v4929_v43 = vld [vmem:[%s7874_s0 + $0xa8] sm:$0xff]  ;;  %v4930_v52 = vld [vmem:[%s7874_s0 + $0xb0] sm:$0xff] }
 0x242   :  { %4688 = vset.pattern.permute.xlu1 %v8006_v60  ;;  %v1852_v13 = vmax.f32 %v1752_v47, 0.0  ;;  %v1853_v18 = vmax.f32 %v1753_v22, 0.0  ;;  %v4417_v63 = vor.u32 %v4554_v4, %v4414_v58  ;;  %v842_v34 = vmul.f32 %v5655_v2, %v6522_v1 }
 0x243   :  { %8075 = vst [vmem:[#allocation3_spill] sm:$0xff] %v6524_v16  ;;  %1429 = vperm.xlu1 %4688, %v4927_v41   ;;  %2381 = vmatpush.bf16.msrb.mxu2 %v4353_v51  ;;  %v8084_v51 = vld [vmem:[#allocation13_spill] sm:$0xff] }
 0x244   :  { %v6527_v23 = vpack.c.bf16 %v1852_v13, %v1850_v28  ;;  %v6529_v57 = vpack.c.bf16 %v1853_v18, %v1851_v7  ;;  %2515 = vmatpush.bf16.msrb.mxu3 %v4417_v63  ;;  %v8080_v28 = vld [vmem:[#allocation41_spill] sm:$0xff]  ;;  %v352_v4 = vmul.f32 %v5640_v39, %v8084_v51 }
 0x245   :  { %v1374_v10 = vpop.permute.xlu1 %1373  ;;  %v436_v13 = vmul.f32 %v5640_v39, %v8080_v28 }
 0x246   :  { %8076 = vst [vmem:[#allocation30_spill] sm:$0xff] %v6527_v23  ;;  %v1568_v61 = vmul.f32 %v5680_v3, %v1374_v10  ;;  %v1569_v24 = vmul.f32 %v5682_v46, %v1374_v10  ;;  %2229 = vmatmul.bf16.gmra.mxu2 %v6527_v23  ;;  %2363 = vmatmul.bf16.gmra.mxu3 %v6529_v57  ;;  %v6544_v27 = vpop.f32.mrf.mxu2 }
 0x247   :  { %8077 = vst [vmem:[#allocation46_spill] sm:$0xff] %v6529_v57  ;;  %v536_v25 = vadd.f32 %v436_v13, %v5661_v29 }
 0x248   :  { %1027 = vperm.xlu2 %4686, %v4928_v5   ;;  %v1668_v18 = vadd.f32 %v1568_v61, %v1262_v26  ;;  %v1669_v19 = vadd.f32 %v1569_v24, %v1263_v37  ;;  %8078 = vst [vmem:[#allocation39_spill] sm:$0xff] %v6544_v27  ;;  %v6553_v45 = vpop.f32.mrf.mxu3  ;;  %v437_v26 = vmul.f32 %v5642_v30, %v8080_v28  ;;  %v976_v37 = vpop.permute.xlu2 %975  ;;  %v8082_v24 = vld [vmem:[#allocation40_spill] sm:$0xff] }
 0x249   :  { %8079 = vst [vmem:[#allocation72_spill] sm:$0xff] %v6553_v45  ;;  %v1546_v28 = vpop.permute.xlu0 %1545  ;;  %v942_v13 = vadd.f32 %v842_v34, %v536_v25  ;;  %v1251_v34 = vmul.f32 %v5670_v17, %v1144_v53 }
 0x24a   :  { %v1768_v54 = vmax.f32 %v1668_v18, 0.0  ;;  %v1769_v12 = vmax.f32 %v1669_v19, 0.0  ;;  %v439_v18 = vmul.f32 %v5642_v30, %v8082_v24  ;;  %v843_v19 = vmul.f32 %v5657_v31, %v6522_v1 }
 0x24b   :  { %4689 = vset.pattern.permute.xlu1 %v7999_v9  ;;  %v537_v58 = vadd.f32 %v437_v26, %v5663_v8  ;;  %v353_v1 = vmul.f32 %v5642_v30, %v8084_v51  ;;  %v4583_v26 = vld [vmem:[%s7879_s5 + $0x68] sm:$0xff]  ;;  %v1655_v25 = vmul.f32 %v5682_v46, %v1546_v28 }
 0x24c   :  { %1031 = vperm.xlu1 %4689, %v4929_v43   ;;  %v6558_v41 = vpack.c.bf16 %v1768_v54, %v1766_v36  ;;  %v6560_v47 = vpack.c.bf16 %v1769_v12, %v1767_v35  ;;  %v8083_v35 = vld [vmem:[#allocation12_spill] sm:$0xff]  ;;  %v844_v43 = vmul.f32 %v5655_v2, %v738_v15  ;;  %3060 = vmatpush.bf16.msrb.mxu1 %v4583_v26 }
 0x24d   :  { %v354_v0 = vmul.f32 %v5640_v39, %v8083_v35  ;;  %v355_v12 = vmul.f32 %v5642_v30, %v8083_v35 }
 0x24e   :  { %v1140_v22 = vpop.permute.xlu1 %1139  ;;  %2124 = vmatmul.bf16.gmra.mxu0 %v6558_v41  ;;  %2258 = vmatmul.bf16.gmra.mxu1 %v6560_v47 }
 0x24f   :  { %v1248_v54 = vmul.f32 %v5668_v50, %v1140_v22  ;;  %v1249_v63 = vmul.f32 %v5670_v17, %v1140_v22 }
 0x250   :  { %4690 = vset.pattern.permute.xlu2 %v8006_v60  ;;  %v1378_v16 = vpop.permute.xlu2 %1377 }
 0x251   :  { %1433 = vperm.xlu2 %4690, %v4928_v5   ;;  %v438_v5 = vmul.f32 %v5640_v39, %v8082_v24  ;;  %v943_v24 = vadd.f32 %v843_v19, %v537_v58  ;;  %v1348_v35 = vadd.f32 %v1248_v54, %v942_v13  ;;  %v455_v54 = vadd.f32 %v355_v12, %v5663_v8  ;;  %v8086_v12 = vld [vmem:[#allocation49_spill] sm:$0xff] }
 0x252   :  { %v2210_v59 = vpop.f32.mrf.mxu2  ;;  %v2344_v10 = vpop.f32.mrf.mxu3  ;;  %v452_v13 = vadd.f32 %v352_v4, %v5661_v29  ;;  %v760_v4 = vmul.f32 %v5655_v2, %v8086_v12 }
 0x253   :  { %v2211_v7 = vadd.f32 %v2210_v59, %v6139_v44  ;;  %v845_v59 = vmul.f32 %v5657_v31, %v738_v15  ;;  %v538_v22 = vadd.f32 %v438_v5, %v5661_v29  ;;  %v4931_v15 = vld [vmem:[%s7874_s0 + $0xb8] sm:$0xff]  ;;  %v1349_v5 = vadd.f32 %v1249_v63, %v943_v24 }
 0x254   :  { %1035 = vperm.xlu1 %4689, %v4930_v52   ;;  %v1654_v52 = vmul.f32 %v5680_v3, %v1546_v28  ;;  %v453_v63 = vadd.f32 %v353_v1, %v5663_v8  ;;  %v761_v1 = vmul.f32 %v5657_v31, %v8086_v12 }
 0x255   :  { %v6575_v61 = vadd.f32 %v2344_v10, %v2211_v7  ;;  %v4575_v7 = vld [vmem:[%s7879_s5 + $0x28] sm:$0xff]  ;;  %v539_v10 = vadd.f32 %v439_v18, %v5663_v8  ;;  %v8085_v18 = vld [vmem:[#allocation48_spill] sm:$0xff]  ;;  %v944_v58 = vadd.f32 %v844_v43, %v538_v22  ;;  %v1755_v22 = vadd.f32 %v1655_v25, %v1349_v5 }
 0x256   :  { %v972_v36 = vpop.permute.xlu1 %971  ;;  %2926 = vmatpush.bf16.msrb.mxu0 %v4575_v7  ;;  %v758_v19 = vmul.f32 %v5655_v2, %v8085_v18  ;;  %v759_v51 = vmul.f32 %v5657_v31, %v8085_v18  ;;  %v1754_v45 = vadd.f32 %v1654_v52, %v1348_v35  ;;  %v1571_v35 = vmul.f32 %v5682_v46, %v1378_v16 }
 0x257   :  { %8081 = vst [vmem:[#allocation41_spill] sm:$0xff] %v6575_v61  ;;  %v945_v61 = vadd.f32 %v845_v59, %v539_v10  ;;  %v1164_v26 = vmul.f32 %v5668_v50, %v972_v36  ;;  %v1165_v18 = vmul.f32 %v5670_v17, %v972_v36  ;;  %v4932_v36 = vld [vmem:[%s7874_s0 + $0xc0] sm:$0xff] }
 0x258   :  { %v859_v10 = vadd.f32 %v759_v51, %v453_v63  ;;  %v1854_v5 = vmax.f32 %v1754_v45, 0.0 }
 0x259   :  { %4691 = vset.pattern.permute.xlu2 %v7999_v9  ;;  %v1250_v9 = vmul.f32 %v5668_v50, %v1144_v53  ;;  %v454_v53 = vadd.f32 %v354_v0, %v5661_v29  ;;  %v1351_v7 = vadd.f32 %v1251_v34, %v945_v61  ;;  %v858_v0 = vadd.f32 %v758_v19, %v452_v13 }
 0x25a   :  { %1039 = vperm.xlu2 %4691, %v4931_v15   ;;  %v1166_v61 = vmul.f32 %v5668_v50, %v976_v37  ;;  %v1570_v34 = vmul.f32 %v5680_v3, %v1378_v16  ;;  %v1265_v19 = vadd.f32 %v1165_v18, %v859_v10  ;;  %v6637_v51 = vpop.f32.mrf.mxu2  ;;  %v1855_v13 = vmax.f32 %v1755_v22, 0.0  ;;  %v980_v16 = vpop.permute.xlu2 %979 }
 0x25b   :  { %v1350_v28 = vadd.f32 %v1250_v9, %v944_v58  ;;  %v1264_v25 = vadd.f32 %v1164_v26, %v858_v0  ;;  %8087 = vst [vmem:[#allocation40_spill] sm:$0xff] %v6637_v51 }
 0x25c   :  { %4692 = vset.pattern.permute.xlu1 %v8006_v60 }
 0x25d   :  { %1445 = vperm.xlu1 %4692, %v4931_v15   ;;  %v1167_v15 = vmul.f32 %v5670_v17, %v976_v37  ;;  %v860_v37 = vadd.f32 %v760_v4, %v454_v53  ;;  %v1670_v45 = vadd.f32 %v1570_v34, %v1264_v25  ;;  %v1671_v53 = vadd.f32 %v1571_v35, %v1265_v19 }
 0x25f   :  { %v1550_v24 = vpop.permute.xlu1 %1549  ;;  %v1771_v35 = vmax.f32 %v1671_v53, 0.0 }
 0x260   :  { %v1656_v43 = vmul.f32 %v5680_v3, %v1550_v24  ;;  %v1657_v59 = vmul.f32 %v5682_v46, %v1550_v24 }
 0x262   :  { %v1756_v52 = vadd.f32 %v1656_v43, %v1350_v28  ;;  %v1757_v9 = vadd.f32 %v1657_v59, %v1351_v7  ;;  %1043 = vperm.xlu2 %4691, %v4932_v36   ;;  %v861_v28 = vadd.f32 %v761_v1, %v455_v54  ;;  %v6639_v7 = vpop.f32.mrf.mxu3  ;;  %v1266_v59 = vadd.f32 %v1166_v61, %v860_v37  ;;  %v8091_v54 = vld [vmem:[#allocation4_spill] sm:$0xff] }
 0x263   :  { %8088 = vst [vmem:[#allocation12_spill] sm:$0xff] %v6639_v7  ;;  %v356_v22 = vmul.f32 %v5640_v39, %v8091_v54  ;;  %v357_v1 = vmul.f32 %v5642_v30, %v8091_v54  ;;  %v8092_v61 = vld [vmem:[#allocation16_spill] sm:$0xff] }
 0x264   :  { %v1856_v58 = vmax.f32 %v1756_v52, 0.0  ;;  %v1857_v63 = vmax.f32 %v1757_v9, 0.0  ;;  %v1267_v12 = vadd.f32 %v1167_v15, %v861_v28  ;;  %v358_v15 = vmul.f32 %v5640_v39, %v8092_v61  ;;  %v4933_v52 = vld [vmem:[%s7874_s0 + $0xc8] sm:$0xff] }
 0x265   :  { %1449 = vperm.xlu1 %4692, %v4932_v36   ;;  %v1770_v36 = vmax.f32 %v1670_v45, 0.0 }
 0x266   :  { %v6641_v24 = vpack.c.bf16 %v1856_v58, %v1854_v5  ;;  %v6643_v43 = vpack.c.bf16 %v1857_v63, %v1855_v13  ;;  %v359_v5 = vmul.f32 %v5642_v30, %v8092_v61  ;;  %v456_v63 = vadd.f32 %v356_v22, %v5661_v29 }
 0x267   :  { %v1382_v26 = vpop.permute.xlu1 %1381  ;;  %v1169_v22 = vmul.f32 %v5670_v17, %v980_v16 }
 0x268   :  { %8089 = vst [vmem:[#allocation13_spill] sm:$0xff] %v6641_v24  ;;  %v1572_v18 = vmul.f32 %v5680_v3, %v1382_v26  ;;  %v1573_v0 = vmul.f32 %v5682_v46, %v1382_v26  ;;  %2234 = vmatmul.bf16.gmra.mxu2 %v6641_v24  ;;  %2368 = vmatmul.bf16.gmra.mxu3 %v6643_v43  ;;  %v8094_v26 = vld [vmem:[#allocation51_spill] sm:$0xff] }
 0x269   :  { %8090 = vst [vmem:[#allocation48_spill] sm:$0xff] %v6643_v43  ;;  %v764_v45 = vmul.f32 %v5655_v2, %v8094_v26 }
 0x26a   :  { %v1672_v10 = vadd.f32 %v1572_v18, %v1266_v59  ;;  %v1673_v4 = vadd.f32 %v1573_v0, %v1267_v12  ;;  %4694 = vset.pattern.permute.xlu2 %v8006_v60  ;;  %v8093_v60 = vld [vmem:[#allocation42_spill] sm:$0xff]  ;;  %v457_v12 = vadd.f32 %v357_v1, %v5663_v8  ;;  %v765_v18 = vmul.f32 %v5657_v31, %v8094_v26  ;;  %v984_v0 = vpop.permute.xlu0 %983 }
 0x26b   :  { %1453 = vperm.xlu2 %4694, %v4933_v52   ;;  %v2215_v9 = vpop.f32.mrf.mxu2  ;;  %v762_v19 = vmul.f32 %v5655_v2, %v8093_v60  ;;  %v763_v58 = vmul.f32 %v5657_v31, %v8093_v60  ;;  %v459_v1 = vadd.f32 %v359_v5, %v5663_v8 }
 0x26c   :  { %v1772_v34 = vmax.f32 %v1672_v10, 0.0  ;;  %v1773_v25 = vmax.f32 %v1673_v4, 0.0  ;;  %v2216_v13 = vadd.f32 %v2215_v9, %v6139_v44  ;;  %v2349_v37 = vpop.f32.mrf.mxu3  ;;  %v1168_v10 = vmul.f32 %v5668_v50, %v980_v16  ;;  %v1390_v9 = vpop.permute.xlu2 %1389  ;;  %v4574_v16 = vld [vmem:[%s7879_s5 + $0x20] sm:$0xff] }
 0x26d   :  { %v458_v4 = vadd.f32 %v358_v15, %v5661_v29  ;;  %v862_v61 = vadd.f32 %v762_v19, %v456_v63  ;;  %v863_v52 = vadd.f32 %v763_v58, %v457_v12  ;;  %v1576_v5 = vmul.f32 %v5680_v3, %v1390_v9  ;;  %2927 = vmatpush.bf16.msrb.mxu0 %v4574_v16 }
 0x26e   :  { %v6667_v28 = vpack.c.bf16 %v1772_v34, %v1770_v36  ;;  %v6669_v59 = vpack.c.bf16 %v1773_v25, %v1771_v35  ;;  %v6676_v53 = vadd.f32 %v2349_v37, %v2216_v13  ;;  %v1170_v36 = vmul.f32 %v5668_v50, %v984_v0 }
 0x26f   :  { %v1386_v54 = vpop.permute.xlu1 %1385  ;;  %v1171_v34 = vmul.f32 %v5670_v17, %v984_v0  ;;  %v864_v60 = vadd.f32 %v764_v45, %v458_v4  ;;  %v865_v13 = vadd.f32 %v765_v18, %v459_v1  ;;  %v1268_v15 = vadd.f32 %v1168_v10, %v862_v61  ;;  %v4582_v0 = vld [vmem:[%s7879_s5 + $0x60] sm:$0xff]  ;;  %v8096_v45 = vld [vmem:[#allocation5_spill] sm:$0xff]  ;;  %v8097_v1 = vld [vmem:[#allocation15_spill] sm:$0xff] }
 0x270   :  { %8095 = vst [vmem:[#allocation49_spill] sm:$0xff] %v6676_v53  ;;  %2129 = vmatmul.bf16.gmra.mxu0 %v6667_v28  ;;  %2263 = vmatmul.bf16.gmra.mxu1 %v6669_v59  ;;  %v1574_v35 = vmul.f32 %v5680_v3, %v1386_v54  ;;  %v1575_v25 = vmul.f32 %v5682_v46, %v1386_v54 }
 0x271   :  { %v1269_v37 = vadd.f32 %v1169_v22, %v863_v52  ;;  %v1577_v19 = vmul.f32 %v5682_v46, %v1390_v9  ;;  %v1270_v58 = vadd.f32 %v1170_v36, %v864_v60  ;;  %v1271_v63 = vadd.f32 %v1171_v34, %v865_v13  ;;  %3061 = vmatpush.bf16.msrb.mxu1 %v4582_v0  ;;  %v8098_v34 = vld [vmem:[#allocation44_spill] sm:$0xff] }
 0x272   :  { %v1674_v12 = vadd.f32 %v1574_v35, %v1268_v15  ;;  %v362_v18 = vmul.f32 %v5640_v39, %v8096_v45  ;;  %v363_v4 = vmul.f32 %v5642_v30, %v8096_v45  ;;  %v360_v61 = vmul.f32 %v5640_v39, %v8097_v1 }
 0x273   :  { %v1675_v26 = vadd.f32 %v1575_v25, %v1269_v37  ;;  %v1676_v54 = vadd.f32 %v1576_v5, %v1270_v58  ;;  %v1677_v53 = vadd.f32 %v1577_v19, %v1271_v63  ;;  %v361_v52 = vmul.f32 %v5642_v30, %v8097_v1  ;;  %v8099_v25 = vld [vmem:[#allocation52_spill] sm:$0xff]  ;;  %v6711_v60 = vpop.f32.mrf.mxu2  ;;  %v1394_v1 = vpop.permute.xlu0 %1393 }
 0x274   :  { %v1774_v10 = vmax.f32 %v1674_v12, 0.0  ;;  %v992_v9 = vpop.permute.xlu2 %991  ;;  %v768_v35 = vmul.f32 %v5655_v2, %v8098_v34  ;;  %v766_v16 = vmul.f32 %v5655_v2, %v8099_v25  ;;  %8100 = vst [vmem:[#allocation4_spill] sm:$0xff] %v6711_v60  ;;  %v769_v13 = vmul.f32 %v5657_v31, %v8098_v34  ;;  %v6717_v37 = vpop.f32.mrf.mxu3 }
 0x275   :  { %v1775_v22 = vmax.f32 %v1675_v26, 0.0  ;;  %v1776_v36 = vmax.f32 %v1676_v54, 0.0  ;;  %v767_v15 = vmul.f32 %v5657_v31, %v8099_v25  ;;  %8101 = vst [vmem:[#allocation16_spill] sm:$0xff] %v6717_v37  ;;  %v463_v19 = vadd.f32 %v363_v4, %v5663_v8 }
 0x276   :  { %v460_v58 = vadd.f32 %v360_v61, %v5661_v29  ;;  %v461_v63 = vadd.f32 %v361_v52, %v5663_v8  ;;  %v1174_v26 = vmul.f32 %v5668_v50, %v992_v9  ;;  %v1175_v0 = vmul.f32 %v5670_v17, %v992_v9 }
 0x277   :  { %v6719_v5 = vpack.c.bf16 %v1776_v36, %v1774_v10  ;;  %v1578_v36 = vmul.f32 %v5680_v3, %v1394_v1  ;;  %v1579_v9 = vmul.f32 %v5682_v46, %v1394_v1 }
 0x278   :  { %v988_v7 = vpop.permute.xlu1 %987  ;;  %2382 = vmatmul.bf16.vlgmr.msrb.gmra.mxu2 %v6285_v49  ;;  %2516 = vmatmul.bf16.vlgmr.msrb.gmra.mxu3 %v6287_v48  ;;  %v1777_v49 = vmax.f32 %v1677_v53, 0.0  ;;  %v462_v48 = vadd.f32 %v362_v18, %v5661_v29  ;;  %v866_v18 = vadd.f32 %v766_v16, %v460_v58  ;;  %v867_v4 = vadd.f32 %v767_v15, %v461_v63 }
 0x279   :  { %v1172_v12 = vmul.f32 %v5668_v50, %v988_v7  ;;  %v1173_v54 = vmul.f32 %v5670_v17, %v988_v7 }
 0x27a   :  { %v6721_v53 = vpack.c.bf16 %v1777_v49, %v1775_v22  ;;  %v868_v45 = vadd.f32 %v768_v35, %v462_v48  ;;  %v869_v22 = vadd.f32 %v769_v13, %v463_v19 }
 0x27b   :  { %v1272_v49 = vadd.f32 %v1172_v12, %v866_v18  ;;  %v1273_v25 = vadd.f32 %v1173_v54, %v867_v4  ;;  %v8104_v4 = vld [vmem:[#allocation55_spill] sm:$0xff] }
 0x27c   :  { %v1274_v7 = vadd.f32 %v1174_v26, %v868_v45  ;;  %v1275_v34 = vadd.f32 %v1175_v0, %v869_v22  ;;  %v996_v60 = vpop.permute.xlu2 %995  ;;  %v8103_v26 = vld [vmem:[#allocation18_spill] sm:$0xff]  ;;  %v772_v1 = vmul.f32 %v5655_v2, %v8104_v4 }
 0x27d   :  { %v1678_v58 = vadd.f32 %v1578_v36, %v1272_v49  ;;  %v1679_v12 = vadd.f32 %v1579_v9, %v1273_v25  ;;  %v366_v0 = vmul.f32 %v5640_v39, %v8103_v26  ;;  %v367_v54 = vmul.f32 %v5642_v30, %v8103_v26  ;;  %v8105_v9 = vld [vmem:[#allocation19_spill] sm:$0xff] }
 0x27f   :  { %v466_v36 = vadd.f32 %v366_v0, %v5661_v29  ;;  %v467_v49 = vadd.f32 %v367_v54, %v5663_v8 }
 0x280   :  { %2134 = vmatmul.bf16.gmra.mxu0 %v6719_v5  ;;  %2268 = vmatmul.bf16.gmra.mxu1 %v6721_v53 }
 0x281   :  { %v1398_v10 = vpop.permute.xlu1 %1397 }
 0x282   :  { %v1580_v61 = vmul.f32 %v5680_v3, %v1398_v10  ;;  %v1581_v52 = vmul.f32 %v5682_v46, %v1398_v10 }
 0x284   :  { %v1680_v48 = vadd.f32 %v1580_v61, %v1274_v7  ;;  %v1681_v35 = vadd.f32 %v1581_v52, %v1275_v34  ;;  %v773_v61 = vmul.f32 %v5657_v31, %v8104_v4  ;;  %v1779_v52 = vmax.f32 %v1679_v12, 0.0 }
 0x285   :  { %v2220_v37 = vpop.f32.mrf.mxu2  ;;  %v364_v7 = vmul.f32 %v5640_v39, %v8105_v9  ;;  %v365_v34 = vmul.f32 %v5642_v30, %v8105_v9  ;;  %v872_v12 = vadd.f32 %v772_v1, %v466_v36 }
 0x286   :  { %v2221_v16 = vadd.f32 %v2220_v37, %v6139_v44  ;;  %v2354_v13 = vpop.f32.mrf.mxu3  ;;  %v1780_v45 = vmax.f32 %v1680_v48, 0.0  ;;  %v1781_v18 = vmax.f32 %v1681_v35, 0.0  ;;  %v873_v26 = vadd.f32 %v773_v61, %v467_v49 }
 0x287   :  { %v2115_v15 = vpop.f32.mrf.mxu0  ;;  %v2249_v19 = vpop.f32.mrf.mxu1  ;;  %v464_v54 = vadd.f32 %v364_v7, %v5661_v29 }
 0x288   :  { %v6737_v63 = vadd.f32 %v2354_v13, %v2221_v16  ;;  %v2116_v10 = vadd.f32 %v2115_v15, %v6139_v44  ;;  %2387 = vmatmul.bf16.gmra.mxu2 %v6415_v38  ;;  %2521 = vmatmul.bf16.gmra.mxu3 %v6417_v62  ;;  %v1778_v38 = vmax.f32 %v1678_v58, 0.0  ;;  %v4573_v62 = vld [vmem:[%s7879_s5 + $0x18] sm:$0xff]  ;;  %v6763_v16 = vpack.c.bf16 %v1781_v18, %v1779_v52  ;;  %v8106_v15 = vld [vmem:[#allocation54_spill] sm:$0xff] }
 0x289   :  { %2928 = vmatpush.bf16.msrb.mxu0 %v4573_v62  ;;  %v4581_v13 = vld [vmem:[%s7879_s5 + $0x58] sm:$0xff]  ;;  %v771_v58 = vmul.f32 %v5657_v31, %v8106_v15  ;;  %v1176_v18 = vmul.f32 %v5668_v50, %v996_v60  ;;  %v1177_v52 = vmul.f32 %v5670_v17, %v996_v60 }
 0x28a   :  { %8102 = vst [vmem:[#allocation42_spill] sm:$0xff] %v6737_v63  ;;  %v2250_v37 = vadd.f32 %v2249_v19, %v2116_v10  ;;  %v1000_v22 = vpop.permute.xlu1 %999  ;;  %v6761_v35 = vpack.c.bf16 %v1780_v45, %v1778_v38  ;;  %v770_v19 = vmul.f32 %v5655_v2, %v8106_v15  ;;  %v465_v45 = vadd.f32 %v365_v34, %v5663_v8  ;;  %v1406_v38 = vpop.permute.xlu0 %1405 }
 0x28b   :  { %v1178_v25 = vmul.f32 %v5668_v50, %v1000_v22  ;;  %v1179_v48 = vmul.f32 %v5670_v17, %v1000_v22  ;;  %v1402_v22 = vpop.permute.xlu2 %1401  ;;  %3062 = vmatpush.bf16.msrb.mxu1 %v4581_v13  ;;  %v1584_v9 = vmul.f32 %v5680_v3, %v1406_v38  ;;  %v1585_v15 = vmul.f32 %v5682_v46, %v1406_v38  ;;  %v8110_v38 = vld [vmem:[#allocation57_spill] sm:$0xff] }
 0x28c   :  { %v870_v36 = vadd.f32 %v770_v19, %v464_v54  ;;  %v871_v49 = vadd.f32 %v771_v58, %v465_v45  ;;  %v1582_v7 = vmul.f32 %v5680_v3, %v1402_v22  ;;  %v1583_v34 = vmul.f32 %v5682_v46, %v1402_v22  ;;  %v8107_v58 = vld [vmem:[#allocation8_spill] sm:$0xff]  ;;  %v8108_v54 = vld [vmem:[#allocation21_spill] sm:$0xff] }
 0x28d   :  { %v1278_v1 = vadd.f32 %v1178_v25, %v872_v12  ;;  %v1279_v61 = vadd.f32 %v1179_v48, %v873_v26  ;;  %v368_v12 = vmul.f32 %v5640_v39, %v8107_v58  ;;  %v371_v45 = vmul.f32 %v5642_v30, %v8108_v54 }
 0x28e   :  { %v1276_v51 = vadd.f32 %v1176_v18, %v870_v36  ;;  %v1277_v27 = vadd.f32 %v1177_v52, %v871_v49  ;;  %v776_v52 = vmul.f32 %v5655_v2, %v8110_v38 }
 0x28f   :  { %v2117_v10 = vpop.f32.mrf.mxu0  ;;  %v2251_v4 = vpop.f32.mrf.mxu1  ;;  %v1684_v60 = vadd.f32 %v1584_v9, %v1278_v1  ;;  %v1685_v25 = vadd.f32 %v1585_v15, %v1279_v61  ;;  %v777_v1 = vmul.f32 %v5657_v31, %v8110_v38  ;;  %v471_v9 = vadd.f32 %v371_v45, %v5663_v8 }
 0x290   :  { %v2118_v0 = vadd.f32 %v2117_v10, %v6139_v44  ;;  %2139 = vmatmul.bf16.gmra.mxu0 %v6761_v35  ;;  %2273 = vmatmul.bf16.gmra.mxu1 %v6763_v16  ;;  %v2642_v10 = vmax.f32 %v2250_v37, 0.0  ;;  %v1682_v48 = vadd.f32 %v1582_v7, %v1276_v51  ;;  %v1683_v19 = vadd.f32 %v1583_v34, %v1277_v27  ;;  %v6812_v7 = vpop.f32.mrf.mxu2 }
 0x291   :  { %v1784_v26 = vmax.f32 %v1684_v60, 0.0  ;;  %v369_v37 = vmul.f32 %v5642_v30, %v8107_v58  ;;  %8111 = vst [vmem:[#allocation51_spill] sm:$0xff] %v6812_v7  ;;  %v6815_v60 = vpop.f32.mrf.mxu3 }
 0x292   :  { %v2252_v62 = vadd.f32 %v2251_v4, %v2118_v0  ;;  %v1004_v13 = vpop.permute.xlu1 %1003  ;;  %v1785_v0 = vmax.f32 %v1685_v25, 0.0  ;;  %v1782_v27 = vmax.f32 %v1682_v48, 0.0  ;;  %v1783_v18 = vmax.f32 %v1683_v19, 0.0  ;;  %8112 = vst [vmem:[#allocation5_spill] sm:$0xff] %v6815_v60 }
 0x293   :  { %v1008_v51 = vpop.permute.xlu2 %1007  ;;  %v469_v36 = vadd.f32 %v369_v37, %v5663_v8  ;;  %v1180_v25 = vmul.f32 %v5668_v50, %v1004_v13  ;;  %v1181_v48 = vmul.f32 %v5670_v17, %v1004_v13  ;;  %v877_v37 = vadd.f32 %v777_v1, %v471_v9 }
 0x294   :  { %v2644_v63 = vmax.f32 %v2252_v62, 0.0  ;;  %v6804_v61 = vpack.c.bf16 %v1784_v26, %v1782_v27  ;;  %v6806_v62 = vpack.c.bf16 %v1785_v0, %v1783_v18  ;;  %v1182_v15 = vmul.f32 %v5668_v50, %v1008_v51  ;;  %v4580_v26 = vld [vmem:[%s7879_s5 + $0x50] sm:$0xff] }
 0x295   :  { %3063 = vmatpush.bf16.msrb.mxu1 %v4580_v26 }
 0x296   :  { %v6783_v43 = vpack.c.bf16 %v2644_v63, %v2642_v10  ;;  %v370_v63 = vmul.f32 %v5640_v39, %v8108_v54  ;;  %v1183_v10 = vmul.f32 %v5670_v17, %v1008_v51 }
 0x298   :  { %2392 = vmatmul.bf16.gmra.mxu2 %v6558_v41  ;;  %2526 = vmatmul.bf16.gmra.mxu3 %v6560_v47  ;;  %v468_v41 = vadd.f32 %v368_v12, %v5661_v29  ;;  %v8109_v47 = vld [vmem:[#allocation47_spill] sm:$0xff]  ;;  %v470_v49 = vadd.f32 %v370_v63, %v5661_v29  ;;  %v4572_v12 = vld [vmem:[%s7879_s5 + $0x10] sm:$0xff]  ;;  %v1410_v63 = vpop.permute.xlu0 %1409  ;;  %v1283_v51 = vadd.f32 %v1183_v10, %v877_v37 }
 0x299   :  { %v774_v22 = vmul.f32 %v5655_v2, %v8109_v47  ;;  %v775_v4 = vmul.f32 %v5657_v31, %v8109_v47  ;;  %2929 = vmatpush.bf16.msrb.mxu0 %v4572_v12  ;;  %v1587_v47 = vmul.f32 %v5682_v46, %v1410_v63  ;;  %v8114_v12 = vld [vmem:[#allocation11_spill] sm:$0xff] }
 0x29a   :  { %v876_v0 = vadd.f32 %v776_v52, %v470_v49  ;;  %v374_v26 = vmul.f32 %v5640_v39, %v8114_v12 }
 0x29b   :  { %v1414_v34 = vpop.permute.xlu1 %1413  ;;  %v874_v19 = vadd.f32 %v774_v22, %v468_v41  ;;  %v875_v58 = vadd.f32 %v775_v4, %v469_v36  ;;  %v1586_v41 = vmul.f32 %v5680_v3, %v1410_v63  ;;  %v1012_v38 = vpop.permute.xlu2 %1011  ;;  %v375_v63 = vmul.f32 %v5642_v30, %v8114_v12 }
 0x29c   :  { %v1588_v54 = vmul.f32 %v5680_v3, %v1414_v34  ;;  %v1589_v13 = vmul.f32 %v5682_v46, %v1414_v34  ;;  %v1282_v45 = vadd.f32 %v1182_v15, %v876_v0  ;;  %v8115_v0 = vld [vmem:[#allocation20_spill] sm:$0xff] }
 0x29d   :  { %v1280_v27 = vadd.f32 %v1180_v25, %v874_v19  ;;  %v1281_v18 = vadd.f32 %v1181_v48, %v875_v58  ;;  %v372_v37 = vmul.f32 %v5640_v39, %v8115_v0 }
 0x29e   :  { %v1688_v22 = vadd.f32 %v1588_v54, %v1282_v45  ;;  %v1689_v4 = vadd.f32 %v1589_v13, %v1283_v51  ;;  %v8116_v45 = vld [vmem:[#allocation58_spill] sm:$0xff] }
 0x29f   :  { %v1686_v49 = vadd.f32 %v1586_v41, %v1280_v27  ;;  %v1687_v9 = vadd.f32 %v1587_v47, %v1281_v18  ;;  %v778_v51 = vmul.f32 %v5655_v2, %v8116_v45  ;;  %v779_v27 = vmul.f32 %v5657_v31, %v8116_v45 }
 0x2a0   :  { %2144 = vmatmul.bf16.gmra.mxu0 %v6804_v61  ;;  %2278 = vmatmul.bf16.gmra.mxu1 %v6806_v62  ;;  %v1788_v19 = vmax.f32 %v1688_v22, 0.0  ;;  %v1789_v58 = vmax.f32 %v1689_v4, 0.0  ;;  %v1016_v18 = vpop.permute.xlu0 %1015  ;;  %v472_v22 = vadd.f32 %v372_v37, %v5661_v29  ;;  %v8117_v4 = vld [vmem:[#allocation50_spill] sm:$0xff] }
 0x2a1   :  { %v1786_v54 = vmax.f32 %v1686_v49, 0.0  ;;  %v1787_v13 = vmax.f32 %v1687_v9, 0.0  ;;  %v474_v49 = vadd.f32 %v374_v26, %v5661_v29 }
 0x2a3   :  { %v1418_v10 = vpop.permute.xlu1 %1417  ;;  %v6849_v41 = vpack.c.bf16 %v1788_v19, %v1786_v54  ;;  %v6851_v47 = vpack.c.bf16 %v1789_v58, %v1787_v13  ;;  %v1186_v19 = vmul.f32 %v5668_v50, %v1016_v18  ;;  %v1187_v58 = vmul.f32 %v5670_v17, %v1016_v18  ;;  %v1422_v12 = vpop.permute.xlu2 %1421 }
 0x2a4   :  { %v1590_v26 = vmul.f32 %v5680_v3, %v1418_v10 }
 0x2a7   :  { %v2225_v52 = vpop.f32.mrf.mxu2  ;;  %v2359_v36 = vpop.f32.mrf.mxu3 }
 0x2a8   :  { %v2226_v1 = vadd.f32 %v2225_v52, %v6139_v44  ;;  %2397 = vmatmul.bf16.gmra.mxu2 %v6667_v28  ;;  %2531 = vmatmul.bf16.gmra.mxu3 %v6669_v59  ;;  %v373_v28 = vmul.f32 %v5642_v30, %v8115_v0  ;;  %v780_v52 = vmul.f32 %v5655_v2, %v8117_v4 }
 0x2a9   :  { %v2120_v15 = vpop.f32.mrf.mxu0  ;;  %v2254_v34 = vpop.f32.mrf.mxu1 }
 0x2aa   :  { %v6834_v25 = vadd.f32 %v2359_v36, %v2226_v1  ;;  %v2121_v48 = vadd.f32 %v2120_v15, %v6139_v44  ;;  %v781_v1 = vmul.f32 %v5657_v31, %v8117_v4  ;;  %v1184_v36 = vmul.f32 %v5668_v50, %v1012_v38 }
 0x2ab   :  { %v473_v9 = vadd.f32 %v373_v28, %v5663_v8  ;;  %v1185_v15 = vmul.f32 %v5670_v17, %v1012_v38  ;;  %v1591_v28 = vmul.f32 %v5682_v46, %v1418_v10  ;;  %v880_v54 = vadd.f32 %v780_v52, %v474_v49 }
 0x2ac   :  { %8113 = vst [vmem:[#allocation15_spill] sm:$0xff] %v6834_v25  ;;  %v2255_v59 = vadd.f32 %v2254_v34, %v2121_v48  ;;  %v475_v34 = vadd.f32 %v375_v63, %v5663_v8  ;;  %v878_v48 = vadd.f32 %v778_v51, %v472_v22  ;;  %v1592_v63 = vmul.f32 %v5680_v3, %v1422_v12  ;;  %v1020_v22 = vpop.permute.xlu1 %1019 }
 0x2ad   :  { %v879_v37 = vadd.f32 %v779_v27, %v473_v9  ;;  %v1593_v51 = vmul.f32 %v5682_v46, %v1422_v12  ;;  %v1286_v60 = vadd.f32 %v1186_v19, %v880_v54  ;;  %v8120_v19 = vld [vmem:[#allocation59_spill] sm:$0xff] }
 0x2ae   :  { %v881_v13 = vadd.f32 %v781_v1, %v475_v34  ;;  %v1284_v45 = vadd.f32 %v1184_v36, %v878_v48  ;;  %v2646_v24 = vmax.f32 %v2255_v59, 0.0  ;;  %v8118_v1 = vld [vmem:[#allocation22_spill] sm:$0xff]  ;;  %v8119_v48 = vld [vmem:[#allocation23_spill] sm:$0xff]  ;;  %v783_v12 = vmul.f32 %v5657_v31, %v8120_v19 }
 0x2af   :  { %v1285_v25 = vadd.f32 %v1185_v15, %v879_v37  ;;  %v1692_v10 = vadd.f32 %v1592_v63, %v1286_v60  ;;  %v378_v36 = vmul.f32 %v5640_v39, %v8118_v1  ;;  %v379_v34 = vmul.f32 %v5642_v30, %v8118_v1  ;;  %v1024_v60 = vpop.permute.xlu2 %1023 }
 0x2b0   :  { %2149 = vmatmul.bf16.gmra.mxu0 %v6849_v41  ;;  %2283 = vmatmul.bf16.gmra.mxu1 %v6851_v47  ;;  %v1287_v7 = vadd.f32 %v1187_v58, %v881_v13  ;;  %v1690_v27 = vadd.f32 %v1590_v26, %v1284_v45  ;;  %v782_v58 = vmul.f32 %v5655_v2, %v8120_v19 }
 0x2b1   :  { %v2122_v0 = vpop.f32.mrf.mxu0  ;;  %v2256_v4 = vpop.f32.mrf.mxu1  ;;  %v1691_v9 = vadd.f32 %v1591_v28, %v1285_v25  ;;  %v376_v25 = vmul.f32 %v5640_v39, %v8119_v48  ;;  %v479_v54 = vadd.f32 %v379_v34, %v5663_v8  ;;  %v1190_v45 = vmul.f32 %v5668_v50, %v1024_v60 }
 0x2b2   :  { %v2123_v38 = vadd.f32 %v2122_v0, %v6139_v44  ;;  %v1693_v23 = vadd.f32 %v1593_v51, %v1287_v7  ;;  %v1790_v49 = vmax.f32 %v1690_v27, 0.0  ;;  %v377_v7 = vmul.f32 %v5642_v30, %v8119_v48  ;;  %v8121_v0 = vld [vmem:[#allocation60_spill] sm:$0xff]  ;;  %v6915_v34 = vpop.f32.mrf.mxu3 }
 0x2b3   :  { %v1791_v15 = vmax.f32 %v1691_v9, 0.0  ;;  %v784_v37 = vmul.f32 %v5655_v2, %v8121_v0  ;;  %v476_v13 = vadd.f32 %v376_v25, %v5661_v29  ;;  %v1191_v51 = vmul.f32 %v5670_v17, %v1024_v60  ;;  %8122 = vst [vmem:[#allocation44_spill] sm:$0xff] %v6915_v34 }
 0x2b4   :  { %v2257_v18 = vadd.f32 %v2256_v4, %v2123_v38  ;;  %v1793_v59 = vmax.f32 %v1693_v23, 0.0  ;;  %v785_v23 = vmul.f32 %v5657_v31, %v8121_v0  ;;  %v1188_v4 = vmul.f32 %v5668_v50, %v1020_v22 }
 0x2b5   :  { %v1430_v26 = vpop.permute.xlu1 %1429  ;;  %v477_v63 = vadd.f32 %v377_v7, %v5663_v8  ;;  %v882_v27 = vadd.f32 %v782_v58, %v476_v13 }
 0x2b6   :  { %v2648_v57 = vmax.f32 %v2257_v18, 0.0  ;;  %v6901_v38 = vpack.c.bf16 %v1793_v59, %v1791_v15  ;;  %v1189_v18 = vmul.f32 %v5670_v17, %v1020_v22  ;;  %v1596_v1 = vmul.f32 %v5680_v3, %v1430_v26  ;;  %v1426_v15 = vpop.permute.xlu0 %1425 }
 0x2b7   :  { %v1597_v48 = vmul.f32 %v5682_v46, %v1430_v26  ;;  %v1594_v25 = vmul.f32 %v5680_v3, %v1426_v15  ;;  %v1288_v7 = vadd.f32 %v1188_v4, %v882_v27  ;;  %v1595_v60 = vmul.f32 %v5682_v46, %v1426_v15 }
 0x2b8   :  { %2402 = vmatmul.bf16.gmra.mxu2 %v6719_v5  ;;  %2536 = vmatmul.bf16.gmra.mxu3 %v6721_v53  ;;  %v6874_v52 = vpack.c.bf16 %v2648_v57, %v2646_v24  ;;  %v1792_v5 = vmax.f32 %v1692_v10, 0.0  ;;  %v4571_v57 = vld [vmem:[%s7879_s5 + $0x8] sm:$0xff]  ;;  %v478_v53 = vadd.f32 %v378_v36, %v5661_v29  ;;  %v6912_v10 = vpop.f32.mrf.mxu2  ;;  %v883_v36 = vadd.f32 %v783_v12, %v477_v63  ;;  %v8123_v12 = vld [vmem:[#allocation25_spill] sm:$0xff]  ;;  %v8124_v63 = vld [vmem:[#allocation14_spill] sm:$0xff] }
 0x2b9   :  { %v4579_v24 = vld [vmem:[%s7879_s5 + $0x48] sm:$0xff]  ;;  %2930 = vmatpush.bf16.msrb.mxu0 %v4571_v57  ;;  %v1694_v19 = vadd.f32 %v1594_v25, %v1288_v7  ;;  %v382_v0 = vmul.f32 %v5640_v39, %v8123_v12 }
 0x2ba   :  { %v6899_v28 = vpack.c.bf16 %v1792_v5, %v1790_v49  ;;  %3064 = vmatpush.bf16.msrb.mxu1 %v4579_v24  ;;  %v884_v9 = vadd.f32 %v784_v37, %v478_v53  ;;  %v885_v49 = vadd.f32 %v785_v23, %v479_v54  ;;  %v1289_v59 = vadd.f32 %v1189_v18, %v883_v36  ;;  %v1028_v53 = vpop.permute.xlu2 %1027 }
 0x2bb   :  { %v383_v37 = vmul.f32 %v5642_v30, %v8123_v12  ;;  %v482_v25 = vadd.f32 %v382_v0, %v5661_v29 }
 0x2bc   :  { %v1290_v22 = vadd.f32 %v1190_v45, %v884_v9  ;;  %v1291_v5 = vadd.f32 %v1191_v51, %v885_v49  ;;  %v1695_v58 = vadd.f32 %v1595_v60, %v1289_v59  ;;  %v380_v51 = vmul.f32 %v5640_v39, %v8124_v63 }
 0x2bd   :  { %v1794_v9 = vmax.f32 %v1694_v19, 0.0 }
 0x2be   :  { %v1696_v57 = vadd.f32 %v1596_v1, %v1290_v22  ;;  %v1697_v24 = vadd.f32 %v1597_v48, %v1291_v5  ;;  %v1032_v54 = vpop.permute.xlu1 %1031  ;;  %v1795_v15 = vmax.f32 %v1695_v58, 0.0  ;;  %v381_v48 = vmul.f32 %v5642_v30, %v8124_v63  ;;  %v1438_v0 = vpop.permute.xlu0 %1437 }
 0x2bf   :  { %v483_v22 = vadd.f32 %v383_v37, %v5663_v8  ;;  %v1194_v60 = vmul.f32 %v5668_v50, %v1032_v54  ;;  %v1195_v5 = vmul.f32 %v5670_v17, %v1032_v54  ;;  %v480_v37 = vadd.f32 %v380_v51, %v5661_v29 }
 0x2c0   :  { %2154 = vmatmul.bf16.gmra.mxu0 %v6899_v28  ;;  %2288 = vmatmul.bf16.gmra.mxu1 %v6901_v38  ;;  %v1796_v26 = vmax.f32 %v1696_v57, 0.0  ;;  %v1797_v4 = vmax.f32 %v1697_v24, 0.0  ;;  %v8127_v24 = vld [vmem:[#allocation53_spill] sm:$0xff]  ;;  %v1600_v54 = vmul.f32 %v5680_v3, %v1438_v0  ;;  %v1193_v63 = vmul.f32 %v5670_v17, %v1028_v53 }
 0x2c1   :  { %v786_v19 = vmul.f32 %v5655_v2, %v8127_v24  ;;  %v787_v58 = vmul.f32 %v5657_v31, %v8127_v24 }
 0x2c2   :  { %v6940_v7 = vpack.c.bf16 %v1796_v26, %v1794_v9  ;;  %v6944_v57 = vpack.c.bf16 %v1797_v4, %v1795_v15  ;;  %v481_v26 = vadd.f32 %v381_v48, %v5663_v8  ;;  %v1601_v4 = vmul.f32 %v5682_v46, %v1438_v0 }
 0x2c4   :  { %v887_v9 = vadd.f32 %v787_v58, %v481_v26  ;;  %v4578_v26 = vld [vmem:[%s7879_s5 + $0x40] sm:$0xff] }
 0x2c5   :  { %3065 = vmatpush.bf16.msrb.mxu1 %v4578_v26 }
 0x2c6   :  { %v1036_v48 = vpop.permute.xlu1 %1035 }
 0x2c8   :  { %2407 = vmatmul.bf16.gmra.mxu2 %v6761_v35  ;;  %2541 = vmatmul.bf16.gmra.mxu3 %v6763_v16  ;;  %v8125_v35 = vld [vmem:[#allocation61_spill] sm:$0xff] }
 0x2c9   :  { %v2230_v23 = vpop.f32.mrf.mxu2  ;;  %v2364_v45 = vpop.f32.mrf.mxu3  ;;  %v788_v16 = vmul.f32 %v5655_v2, %v8125_v35  ;;  %v789_v1 = vmul.f32 %v5657_v31, %v8125_v35 }
 0x2ca   :  { %v2231_v13 = vadd.f32 %v2230_v23, %v6139_v44 }
 0x2cb   :  { %v2125_v18 = vpop.f32.mrf.mxu0  ;;  %v2259_v27 = vpop.f32.mrf.mxu1  ;;  %v888_v12 = vadd.f32 %v788_v16, %v482_v25  ;;  %v889_v23 = vadd.f32 %v789_v1, %v483_v22  ;;  %v1293_v22 = vadd.f32 %v1193_v63, %v887_v9 }
 0x2cc   :  { %v6933_v36 = vadd.f32 %v2364_v45, %v2231_v13  ;;  %v2126_v49 = vadd.f32 %v2125_v18, %v6139_v44  ;;  %v1192_v13 = vmul.f32 %v5668_v50, %v1028_v53  ;;  %v1434_v45 = vpop.permute.xlu2 %1433  ;;  %v886_v18 = vadd.f32 %v786_v19, %v480_v37  ;;  %v8128_v19 = vld [vmem:[#allocation17_spill] sm:$0xff]  ;;  %v4570_v37 = vld [vmem:[%s7879_s5] sm:$0xff] }
 0x2cd   :  { %v1294_v35 = vadd.f32 %v1194_v60, %v888_v12  ;;  %v1295_v16 = vadd.f32 %v1195_v5, %v889_v23  ;;  %v1598_v1 = vmul.f32 %v5680_v3, %v1434_v45  ;;  %v1599_v51 = vmul.f32 %v5682_v46, %v1434_v45  ;;  %2931 = vmatpush.bf16.msrb.mxu0 %v4570_v37 }
 0x2ce   :  { %8126 = vst [vmem:[#allocation52_spill] sm:$0xff] %v6933_v36  ;;  %v2260_v59 = vadd.f32 %v2259_v27, %v2126_v49  ;;  %v1292_v15 = vadd.f32 %v1192_v13, %v886_v18  ;;  %v386_v58 = vmul.f32 %v5640_v39, %v8128_v19 }
 0x2cf   :  { %v1700_v36 = vadd.f32 %v1600_v54, %v1294_v35  ;;  %v1701_v0 = vadd.f32 %v1601_v4, %v1295_v16  ;;  %v1699_v53 = vadd.f32 %v1599_v51, %v1293_v22  ;;  %v8130_v35 = vld [vmem:[#allocation56_spill] sm:$0xff] }
 0x2d0   :  { %2159 = vmatmul.bf16.gmra.mxu0 %v6940_v7  ;;  %2293 = vmatmul.bf16.gmra.mxu1 %v6944_v57  ;;  %v1698_v34 = vadd.f32 %v1598_v1, %v1292_v15  ;;  %v2650_v60 = vmax.f32 %v2260_v59, 0.0  ;;  %v8129_v59 = vld [vmem:[#allocation24_spill] sm:$0xff]  ;;  %v486_v63 = vadd.f32 %v386_v58, %v5661_v29  ;;  %v792_v16 = vmul.f32 %v5655_v2, %v8130_v35 }
 0x2d1   :  { %v1800_v12 = vmax.f32 %v1700_v36, 0.0  ;;  %v1801_v23 = vmax.f32 %v1701_v0, 0.0  ;;  %v385_v36 = vmul.f32 %v5642_v30, %v8129_v59  ;;  %v1799_v4 = vmax.f32 %v1699_v53, 0.0 }
 0x2d2   :  { %v1798_v45 = vmax.f32 %v1698_v34, 0.0  ;;  %v793_v18 = vmul.f32 %v5657_v31, %v8130_v35  ;;  %v1196_v53 = vmul.f32 %v5668_v50, %v1036_v48 }
 0x2d3   :  { %v2127_v27 = vpop.f32.mrf.mxu0  ;;  %v2261_v25 = vpop.f32.mrf.mxu1  ;;  %v6990_v34 = vpack.c.bf16 %v1801_v23, %v1799_v4 }
 0x2d4   :  { %v2128_v49 = vadd.f32 %v2127_v27, %v6139_v44  ;;  %v1040_v13 = vpop.permute.xlu2 %1039  ;;  %v8131_v27 = vld [vmem:[#allocation62_spill] sm:$0xff]  ;;  %v6988_v51 = vpack.c.bf16 %v1800_v12, %v1798_v45  ;;  %v1442_v23 = vpop.permute.xlu0 %1441 }
 0x2d5   :  { %v790_v9 = vmul.f32 %v5655_v2, %v8131_v27  ;;  %v791_v1 = vmul.f32 %v5657_v31, %v8131_v27  ;;  %v1198_v22 = vmul.f32 %v5668_v50, %v1040_v13  ;;  %v1199_v0 = vmul.f32 %v5670_v17, %v1040_v13 }
 0x2d6   :  { %v2262_v24 = vadd.f32 %v2261_v25, %v2128_v49  ;;  %v485_v25 = vadd.f32 %v385_v36, %v5663_v8 }
 0x2d8   :  { %v2652_v5 = vmax.f32 %v2262_v24, 0.0  ;;  %2412 = vmatmul.bf16.gmra.mxu2 %v6804_v61  ;;  %2546 = vmatmul.bf16.gmra.mxu3 %v6806_v62  ;;  %v387_v61 = vmul.f32 %v5642_v30, %v8128_v19  ;;  %v384_v62 = vmul.f32 %v5640_v39, %v8129_v59  ;;  %v1446_v24 = vpop.permute.xlu1 %1445  ;;  %v891_v12 = vadd.f32 %v791_v1, %v485_v25 }
 0x2d9   :  { %v1604_v37 = vmul.f32 %v5680_v3, %v1446_v24  ;;  %v1605_v26 = vmul.f32 %v5682_v46, %v1446_v24  ;;  %v1603_v59 = vmul.f32 %v5682_v46, %v1442_v23 }
 0x2da   :  { %v6971_v54 = vpack.c.bf16 %v2652_v5, %v2650_v60  ;;  %v487_v49 = vadd.f32 %v387_v61, %v5663_v8  ;;  %v484_v15 = vadd.f32 %v384_v62, %v5661_v29  ;;  %v1197_v60 = vmul.f32 %v5670_v17, %v1036_v48  ;;  %v7005_v62 = vpop.f32.mrf.mxu2  ;;  %v7007_v48 = vpop.f32.mrf.mxu3 }
 0x2db   :  { %v892_v5 = vadd.f32 %v792_v16, %v486_v63  ;;  %v1602_v61 = vmul.f32 %v5680_v3, %v1442_v23 }
 0x2dc   :  { %v893_v19 = vadd.f32 %v793_v18, %v487_v49  ;;  %v890_v58 = vadd.f32 %v790_v9, %v484_v15  ;;  %v1297_v4 = vadd.f32 %v1197_v60, %v891_v12  ;;  %v1044_v63 = vpop.permute.xlu2 %1043  ;;  %v8132_v49 = vld [vmem:[#allocation27_spill] sm:$0xff] }
 0x2dd   :  { %v1298_v36 = vadd.f32 %v1198_v22, %v892_v5  ;;  %v388_v15 = vmul.f32 %v5640_v39, %v8132_v49  ;;  %v389_v25 = vmul.f32 %v5642_v30, %v8132_v49  ;;  %v8133_v5 = vld [vmem:[#allocation26_spill] sm:$0xff] }
 0x2de   :  { %v1299_v13 = vadd.f32 %v1199_v0, %v893_v19  ;;  %v1296_v45 = vadd.f32 %v1196_v53, %v890_v58  ;;  %v1703_v27 = vadd.f32 %v1603_v59, %v1297_v4  ;;  %v8134_v19 = vld [vmem:[#allocation63_spill] sm:$0xff]  ;;  %v8135_v4 = vld [vmem:[#allocation64_spill] sm:$0xff] }
 0x2df   :  { %v1704_v35 = vadd.f32 %v1604_v37, %v1298_v36  ;;  %v794_v58 = vmul.f32 %v5655_v2, %v8134_v19  ;;  %v795_v12 = vmul.f32 %v5657_v31, %v8134_v19 }
 0x2e0   :  { %2164 = vmatmul.bf16.gmra.mxu0 %v6988_v51  ;;  %2298 = vmatmul.bf16.gmra.mxu1 %v6990_v34  ;;  %v1705_v16 = vadd.f32 %v1605_v26, %v1299_v13  ;;  %v1702_v18 = vadd.f32 %v1602_v61, %v1296_v45  ;;  %v1803_v60 = vmax.f32 %v1703_v27, 0.0  ;;  %v1048_v26 = vpop.permute.xlu0 %1047  ;;  %v1450_v61 = vpop.permute.xlu1 %1449  ;;  %v1201_v27 = vmul.f32 %v5670_v17, %v1044_v63 }
 0x2e1   :  { %v1804_v9 = vmax.f32 %v1704_v35, 0.0  ;;  %v796_v35 = vmul.f32 %v5655_v2, %v8135_v4  ;;  %v1606_v2 = vmul.f32 %v5680_v3, %v1450_v61 }
 0x2e2   :  { %v1805_v1 = vmax.f32 %v1705_v16, 0.0  ;;  %v1802_v53 = vmax.f32 %v1702_v18, 0.0  ;;  %v1200_v16 = vmul.f32 %v5668_v50, %v1044_v63  ;;  %v797_v18 = vmul.f32 %v5657_v31, %v8135_v4 }
 0x2e3   :  { %v1203_v31 = vmul.f32 %v5670_v17, %v1048_v26  ;;  %v1607_v63 = vmul.f32 %v5682_v46, %v1450_v61 }
 0x2e4   :  { %v7025_v13 = vpack.c.bf16 %v1804_v9, %v1802_v53  ;;  %v7027_v45 = vpack.c.bf16 %v1805_v1, %v1803_v60  ;;  %v1454_v49 = vpop.permute.xlu2 %1453 }
 0x2e5   :  { %v1608_v60 = vmul.f32 %v5680_v3, %v1454_v49 }
 0x2e8   :  { %2417 = vmatmul.bf16.gmra.mxu2 %v6849_v41  ;;  %2551 = vmatmul.bf16.gmra.mxu3 %v6851_v47  ;;  %v390_v41 = vmul.f32 %v5640_v39, %v8133_v5  ;;  %v391_v47 = vmul.f32 %v5642_v30, %v8133_v5  ;;  %v488_v39 = vadd.f32 %v388_v15, %v5661_v29 }
 0x2e9   :  { %v489_v30 = vadd.f32 %v389_v25, %v5663_v8  ;;  %v1202_v15 = vmul.f32 %v5668_v50, %v1048_v26 }
 0x2ea   :  { %v490_v9 = vadd.f32 %v390_v41, %v5661_v29  ;;  %v894_v1 = vadd.f32 %v794_v58, %v488_v39  ;;  %v491_v25 = vadd.f32 %v391_v47, %v5663_v8  ;;  %v1609_v41 = vmul.f32 %v5682_v46, %v1454_v49 }
 0x2eb   :  { %v2235_v22 = vpop.f32.mrf.mxu2  ;;  %v2369_v24 = vpop.f32.mrf.mxu3 }
 0x2ec   :  { %v2236_v0 = vadd.f32 %v2235_v22, %v6139_v44  ;;  %v1300_v53 = vadd.f32 %v1200_v16, %v894_v1 }
 0x2ed   :  { %v2130_v23 = vpop.f32.mrf.mxu0  ;;  %v2264_v37 = vpop.f32.mrf.mxu1 }
 0x2ee   :  { %v2370_v59 = vadd.f32 %v2369_v24, %v2236_v0  ;;  %v2131_v36 = vadd.f32 %v2130_v23, %v6139_v44  ;;  %v895_v24 = vadd.f32 %v795_v12, %v489_v30  ;;  %v896_v0 = vadd.f32 %v796_v35, %v490_v9 }
 0x2ef   :  { %v897_v23 = vadd.f32 %v797_v18, %v491_v25 }
 0x2f0   :  { %v2265_v22 = vadd.f32 %v2264_v37, %v2131_v36  ;;  %2169 = vmatmul.bf16.gmra.mxu0 %v7025_v13  ;;  %2303 = vmatmul.bf16.gmra.mxu1 %v7027_v45  ;;  %v1301_v29 = vadd.f32 %v1201_v27, %v895_v24  ;;  %v1302_v58 = vadd.f32 %v1202_v15, %v896_v0  ;;  %v2738_v3 = vmax.f32 %v2370_v59, 0.0 }
 0x2f1   :  { %v1706_v37 = vadd.f32 %v1606_v2, %v1300_v53  ;;  %v1303_v12 = vadd.f32 %v1203_v31, %v897_v23 }
 0x2f2   :  { %v1707_v17 = vadd.f32 %v1607_v63, %v1301_v29  ;;  %v1708_v36 = vadd.f32 %v1608_v60, %v1302_v58  ;;  %v2654_v16 = vmax.f32 %v2265_v22, 0.0 }
 0x2f3   :  { %v2237_v5 = vpop.f32.mrf.mxu2  ;;  %v2371_v19 = vpop.f32.mrf.mxu3  ;;  %v1709_v39 = vadd.f32 %v1609_v41, %v1303_v12  ;;  %v1806_v46 = vmax.f32 %v1706_v37, 0.0 }
 0x2f4   :  { %v2238_v50 = vadd.f32 %v2237_v5, %v6139_v44  ;;  %v1807_v35 = vmax.f32 %v1707_v17, 0.0  ;;  %v1808_v1 = vmax.f32 %v1708_v36, 0.0 }
 0x2f5   :  { %v2132_v8 = vpop.f32.mrf.mxu0  ;;  %v2266_v47 = vpop.f32.mrf.mxu1  ;;  %v1809_v15 = vmax.f32 %v1709_v39, 0.0 }
 0x2f6   :  { %v2372_v26 = vadd.f32 %v2371_v19, %v2238_v50  ;;  %v2133_v61 = vadd.f32 %v2132_v8, %v6139_v44  ;;  %v7056_v31 = vpack.c.bf16 %v1808_v1, %v1806_v46 }
 0x2f8   :  { %v2740_v30 = vmax.f32 %v2372_v26, 0.0  ;;  %v2267_v4 = vadd.f32 %v2266_v47, %v2133_v61  ;;  %2422 = vmatmul.bf16.gmra.mxu2 %v6899_v28  ;;  %2556 = vmatmul.bf16.gmra.mxu3 %v6901_v38  ;;  %v7058_v28 = vpack.c.bf16 %v1809_v15, %v1807_v35  ;;  %v4934_v38 = vld [vmem:[%s7878_s4] sm:$0x3] }
 0x2f9   :  { %v7063_v22 = vperm.slane %v4934_v38, 1 }
 0x2fa   :  { %v2656_v18 = vmax.f32 %v2267_v4, 0.0  ;;  %v7051_v27 = vpack.c.bf16 %v2740_v30, %v2738_v3 }
 0x2fb   :  { %v2383_v49 = vpop.f32.mrf.mxu2  ;;  %v2517_v9 = vpop.f32.mrf.mxu3 }
 0x2fc   :  { %v7053_v2 = vpack.c.bf16 %v2656_v18, %v2654_v16  ;;  %v2384_v60 = vadd.f32 %v2383_v49, %v7063_v22 }
 0x2fd   :  { %v2135_v25 = vpop.f32.mrf.mxu0  ;;  %v2269_v59 = vpop.f32.mrf.mxu1 }
 0x2fe   :  { %v2136_v24 = vadd.f32 %v2135_v25, %v6139_v44  ;;  %v2518_v50 = vadd.f32 %v2517_v9, %v2384_v60 }
 0x300   :  { %v2270_v63 = vadd.f32 %v2269_v59, %v2136_v24  ;;  %2174 = vmatmul.bf16.gmra.mxu0 %v7056_v31  ;;  %2308 = vmatmul.bf16.gmra.mxu1 %v7058_v28  ;;  %v2643_v26 = vmax.f32 %v2518_v50, 0.0 }
 0x302   :  { %v2658_v37 = vmax.f32 %v2270_v63, 0.0 }
 0x303   :  { %v2385_v0 = vpop.f32.mrf.mxu2  ;;  %v2519_v53 = vpop.f32.mrf.mxu3 }
 0x304   :  { %v2386_v5 = vadd.f32 %v2385_v0, %v7063_v22 }
 0x305   :  { %v2137_v19 = vpop.f32.mrf.mxu0  ;;  %v2271_v23 = vpop.f32.mrf.mxu1 }
 0x306   :  { %v2520_v29 = vadd.f32 %v2519_v53, %v2386_v5  ;;  %v2138_v41 = vadd.f32 %v2137_v19, %v6139_v44 }
 0x308   :  { %v2272_v58 = vadd.f32 %v2271_v23, %v2138_v41  ;;  %2427 = vmatmul.bf16.gmra.mxu2 %v6940_v7  ;;  %2561 = vmatmul.bf16.gmra.mxu3 %v6944_v57  ;;  %v2645_v8 = vmax.f32 %v2520_v29, 0.0 }
 0x30a   :  { %v2660_v47 = vmax.f32 %v2272_v58, 0.0  ;;  %v2743_v3 = vpack.c.bf16 %v2645_v8, %v2643_v26 }
 0x30b   :  { %v2388_v12 = vpop.f32.mrf.mxu2  ;;  %v2522_v17 = vpop.f32.mrf.mxu3 }
 0x30c   :  { %v7072_v61 = vpack.c.bf16 %v2660_v47, %v2658_v37  ;;  %v2389_v57 = vadd.f32 %v2388_v12, %v7063_v22 }
 0x30d   :  { %v2140_v36 = vpop.f32.mrf.mxu0  ;;  %v2274_v39 = vpop.f32.mrf.mxu1 }
 0x30e   :  { %v2141_v30 = vadd.f32 %v2140_v36, %v6139_v44  ;;  %v2523_v1 = vadd.f32 %v2522_v17, %v2389_v57 }
 0x310   :  { %v2275_v4 = vadd.f32 %v2274_v39, %v2141_v30  ;;  %2932 = vmatmul.bf16.vlgmr.msrb.gmra.mxu0 %v6783_v43  ;;  %3066 = vmatmul.bf16.vlgmr.msrb.gmra.mxu1 %v2743_v3  ;;  %v2647_v63 = vmax.f32 %v2523_v1, 0.0 }
 0x312   :  { %v2662_v25 = vmax.f32 %v2275_v4, 0.0 }
 0x313   :  { %v2390_v7 = vpop.f32.mrf.mxu2  ;;  %v2524_v46 = vpop.f32.mrf.mxu3 }
 0x314   :  { %v2391_v35 = vadd.f32 %v2390_v7, %v7063_v22 }
 0x315   :  { %v2142_v16 = vpop.f32.mrf.mxu0  ;;  %v2276_v18 = vpop.f32.mrf.mxu1 }
 0x316   :  { %v2525_v49 = vadd.f32 %v2524_v46, %v2391_v35  ;;  %v2143_v9 = vadd.f32 %v2142_v16, %v6139_v44 }
 0x318   :  { %v2277_v15 = vadd.f32 %v2276_v18, %v2143_v9  ;;  %2432 = vmatmul.bf16.gmra.mxu2 %v6988_v51  ;;  %2566 = vmatmul.bf16.gmra.mxu3 %v6990_v34  ;;  %v2649_v43 = vmax.f32 %v2525_v49, 0.0 }
 0x31a   :  { %v2664_v59 = vmax.f32 %v2277_v15, 0.0  ;;  %v2745_v19 = vpack.c.bf16 %v2649_v43, %v2647_v63 }
 0x31b   :  { %v2393_v24 = vpop.f32.mrf.mxu2  ;;  %v2527_v38 = vpop.f32.mrf.mxu3 }
 0x31c   :  { %v7081_v0 = vpack.c.bf16 %v2664_v59, %v2662_v25  ;;  %v2394_v34 = vadd.f32 %v2393_v24, %v7063_v22 }
 0x31d   :  { %v2145_v53 = vpop.f32.mrf.mxu0  ;;  %v2279_v60 = vpop.f32.mrf.mxu1 }
 0x31e   :  { %v2146_v5 = vadd.f32 %v2145_v53, %v6139_v44  ;;  %v2528_v47 = vadd.f32 %v2527_v38, %v2394_v34 }
 0x320   :  { %v2280_v23 = vadd.f32 %v2279_v60, %v2146_v5  ;;  %2937 = vmatmul.bf16.gmra.mxu0 %v6874_v52  ;;  %3071 = vmatmul.bf16.gmra.mxu1 %v2745_v19  ;;  %v2651_v3 = vmax.f32 %v2528_v47, 0.0 }
 0x322   :  { %v2666_v17 = vmax.f32 %v2280_v23, 0.0 }
 0x323   :  { %v2395_v51 = vpop.f32.mrf.mxu2  ;;  %v2529_v29 = vpop.f32.mrf.mxu3 }
 0x324   :  { %v2396_v41 = vadd.f32 %v2395_v51, %v7063_v22 }
 0x325   :  { %v2147_v50 = vpop.f32.mrf.mxu0  ;;  %v2281_v58 = vpop.f32.mrf.mxu1 }
 0x326   :  { %v2530_v37 = vadd.f32 %v2529_v29, %v2396_v41  ;;  %v2148_v8 = vadd.f32 %v2147_v50, %v6139_v44 }
 0x328   :  { %v2282_v12 = vadd.f32 %v2281_v58, %v2148_v8  ;;  %2437 = vmatmul.bf16.gmra.mxu2 %v7025_v13  ;;  %2571 = vmatmul.bf16.gmra.mxu3 %v7027_v45  ;;  %v2653_v52 = vmax.f32 %v2530_v37, 0.0 }
 0x32a   :  { %v2668_v26 = vmax.f32 %v2282_v12, 0.0  ;;  %v2747_v57 = vpack.c.bf16 %v2653_v52, %v2651_v3 }
 0x32b   :  { %v2398_v36 = vpop.f32.mrf.mxu2  ;;  %v2532_v39 = vpop.f32.mrf.mxu3 }
 0x32c   :  { %v7090_v30 = vpack.c.bf16 %v2668_v26, %v2666_v17  ;;  %v2399_v45 = vadd.f32 %v2398_v36, %v7063_v22 }
 0x32d   :  { %v2150_v4 = vpop.f32.mrf.mxu0  ;;  %v2284_v7 = vpop.f32.mrf.mxu1 }
 0x32e   :  { %v2151_v46 = vadd.f32 %v2150_v4, %v6139_v44  ;;  %v2533_v25 = vadd.f32 %v2532_v39, %v2399_v45 }
 0x330   :  { %v2285_v35 = vadd.f32 %v2284_v7, %v2151_v46  ;;  %2942 = vmatmul.bf16.gmra.mxu0 %v6971_v54  ;;  %3076 = vmatmul.bf16.gmra.mxu1 %v2747_v57  ;;  %v2655_v53 = vmax.f32 %v2533_v25, 0.0 }
 0x332   :  { %v2670_v59 = vmax.f32 %v2285_v35, 0.0 }
 0x333   :  { %v2400_v13 = vpop.f32.mrf.mxu2  ;;  %v2534_v16 = vpop.f32.mrf.mxu3 }
 0x334   :  { %v2401_v18 = vadd.f32 %v2400_v13, %v7063_v22 }
 0x335   :  { %v2152_v49 = vpop.f32.mrf.mxu0  ;;  %v2286_v9 = vpop.f32.mrf.mxu1 }
 0x336   :  { %v2535_v1 = vadd.f32 %v2534_v16, %v2401_v18  ;;  %v2153_v15 = vadd.f32 %v2152_v49, %v6139_v44 }
 0x338   :  { %v2287_v43 = vadd.f32 %v2286_v9, %v2153_v15  ;;  %2442 = vmatmul.bf16.gmra.mxu2 %v7056_v31  ;;  %2576 = vmatmul.bf16.gmra.mxu3 %v7058_v28  ;;  %v2657_v54 = vmax.f32 %v2535_v1, 0.0 }
 0x33a   :  { %v2672_v24 = vmax.f32 %v2287_v43, 0.0  ;;  %v2749_v51 = vpack.c.bf16 %v2657_v54, %v2655_v53 }
 0x33b   :  { %v2403_v38 = vpop.f32.mrf.mxu2  ;;  %v2537_v63 = vpop.f32.mrf.mxu3 }
 0x33c   :  { %v7099_v60 = vpack.c.bf16 %v2672_v24, %v2670_v59  ;;  %v2404_v28 = vadd.f32 %v2403_v38, %v7063_v22 }
 0x33d   :  { %v2155_v5 = vpop.f32.mrf.mxu0  ;;  %v2289_v19 = vpop.f32.mrf.mxu1 }
 0x33e   :  { %v2156_v23 = vadd.f32 %v2155_v5, %v6139_v44  ;;  %v2538_v47 = vadd.f32 %v2537_v63, %v2404_v28 }
 0x340   :  { %v2290_v29 = vadd.f32 %v2289_v19, %v2156_v23  ;;  %2947 = vmatmul.bf16.gmra.mxu0 %v7053_v2  ;;  %3081 = vmatmul.bf16.gmra.mxu1 %v2749_v51  ;;  %v2659_v39 = vmax.f32 %v2538_v47, 0.0 }
 0x342   :  { %v2674_v17 = vmax.f32 %v2290_v29, 0.0 }
 0x343   :  { %v2405_v31 = vpop.f32.mrf.mxu2  ;;  %v2539_v34 = vpop.f32.mrf.mxu3 }
 0x344   :  { %v2406_v41 = vadd.f32 %v2405_v31, %v7063_v22 }
 0x345   :  { %v2157_v50 = vpop.f32.mrf.mxu0  ;;  %v2291_v58 = vpop.f32.mrf.mxu1 }
 0x346   :  { %v2540_v37 = vadd.f32 %v2539_v34, %v2406_v41  ;;  %v2158_v8 = vadd.f32 %v2157_v50, %v6139_v44 }
 0x348   :  { %v2292_v12 = vadd.f32 %v2291_v58, %v2158_v8  ;;  %2447 = vmatmul.bf16.gmra.mxu2 %v5721_v32  ;;  %2581 = vmatmul.bf16.gmra.mxu3 %v5723_v14  ;;  %v2661_v2 = vmax.f32 %v2540_v37, 0.0 }
 0x34a   :  { %v2676_v52 = vmax.f32 %v2292_v12, 0.0  ;;  %v2751_v57 = vpack.c.bf16 %v2661_v2, %v2659_v39 }
 0x34b   :  { %v2408_v26 = vpop.f32.mrf.mxu2  ;;  %v2542_v36 = vpop.f32.mrf.mxu3 }
 0x34c   :  { %v7108_v3 = vpack.c.bf16 %v2676_v52, %v2674_v17  ;;  %v2409_v14 = vadd.f32 %v2408_v26, %v7063_v22 }
 0x34d   :  { %v2160_v4 = vpop.f32.mrf.mxu0  ;;  %v2294_v7 = vpop.f32.mrf.mxu1 }
 0x34e   :  { %v2161_v46 = vadd.f32 %v2160_v4, %v6139_v44  ;;  %v2543_v1 = vadd.f32 %v2542_v36, %v2409_v14 }
 0x350   :  { %v2295_v35 = vadd.f32 %v2294_v7, %v2161_v46  ;;  %2952 = vmatmul.bf16.gmra.mxu0 %v7072_v61  ;;  %3086 = vmatmul.bf16.gmra.mxu1 %v2751_v57  ;;  %v2663_v24 = vmax.f32 %v2543_v1, 0.0 }
 0x352   :  { %v2678_v25 = vmax.f32 %v2295_v35, 0.0 }
 0x353   :  { %v2410_v32 = vpop.f32.mrf.mxu2  ;;  %v2544_v13 = vpop.f32.mrf.mxu3 }
 0x354   :  { %v2411_v16 = vadd.f32 %v2410_v32, %v7063_v22 }
 0x355   :  { %v2162_v45 = vpop.f32.mrf.mxu0  ;;  %v2296_v18 = vpop.f32.mrf.mxu1 }
 0x356   :  { %v2545_v49 = vadd.f32 %v2544_v13, %v2411_v16  ;;  %v2163_v9 = vadd.f32 %v2162_v45, %v6139_v44 }
 0x358   :  { %v2297_v15 = vadd.f32 %v2296_v18, %v2163_v9  ;;  %2452 = vmatmul.bf16.gmra.mxu2 %v5785_v42  ;;  %2586 = vmatmul.bf16.gmra.mxu3 %v5787_v40  ;;  %v2665_v61 = vmax.f32 %v2545_v49, 0.0 }
 0x35a   :  { %v2680_v43 = vmax.f32 %v2297_v15, 0.0  ;;  %v2753_v19 = vpack.c.bf16 %v2665_v61, %v2663_v24 }
 0x35b   :  { %v2413_v59 = vpop.f32.mrf.mxu2  ;;  %v2547_v54 = vpop.f32.mrf.mxu3 }
 0x35c   :  { %v7117_v38 = vpack.c.bf16 %v2680_v43, %v2678_v25  ;;  %v2414_v40 = vadd.f32 %v2413_v59, %v7063_v22 }
 0x35d   :  { %v2165_v63 = vpop.f32.mrf.mxu0  ;;  %v2299_v53 = vpop.f32.mrf.mxu1 }
 0x35e   :  { %v2166_v5 = vadd.f32 %v2165_v63, %v6139_v44  ;;  %v2548_v50 = vadd.f32 %v2547_v54, %v2414_v40 }
 0x360   :  { %v2300_v23 = vadd.f32 %v2299_v53, %v2166_v5  ;;  %2957 = vmatmul.bf16.gmra.mxu0 %v7081_v0  ;;  %3091 = vmatmul.bf16.gmra.mxu1 %v2753_v19  ;;  %v2667_v17 = vmax.f32 %v2548_v50, 0.0 }
 0x362   :  { %v2682_v37 = vmax.f32 %v2300_v23, 0.0 }
 0x363   :  { %v2415_v42 = vpop.f32.mrf.mxu2  ;;  %v2549_v51 = vpop.f32.mrf.mxu3 }
 0x364   :  { %v2416_v29 = vadd.f32 %v2415_v42, %v7063_v22 }
 0x365   :  { %v2167_v31 = vpop.f32.mrf.mxu0  ;;  %v2301_v34 = vpop.f32.mrf.mxu1 }
 0x366   :  { %v2550_v28 = vadd.f32 %v2549_v51, %v2416_v29  ;;  %v2168_v41 = vadd.f32 %v2167_v31, %v6139_v44  ;;  %v7147_v31 = vld [vmem:[%s7880_s6] ss:$0 sm:$0xff] }
 0x368   :  { %v2302_v58 = vadd.f32 %v2301_v34, %v2168_v41  ;;  %2457 = vmatmul.bf16.gmra.mxu2 %v5829_v56  ;;  %2591 = vmatmul.bf16.gmra.mxu3 %v5836_v55  ;;  %v2669_v0 = vmax.f32 %v2550_v28, 0.0 }
 0x36a   :  { %v2684_v8 = vmax.f32 %v2302_v58, 0.0  ;;  %v2755_v39 = vpack.c.bf16 %v2669_v0, %v2667_v17 }
 0x36b   :  { %v2418_v47 = vpop.f32.mrf.mxu2  ;;  %v2552_v12 = vpop.f32.mrf.mxu3 }
 0x36c   :  { %v7126_v2 = vpack.c.bf16 %v2684_v8, %v2682_v37  ;;  %v2419_v55 = vadd.f32 %v2418_v47, %v7063_v22 }
 0x36d   :  { %v2170_v52 = vpop.f32.mrf.mxu0  ;;  %v2304_v26 = vpop.f32.mrf.mxu1 }
 0x36e   :  { %v2171_v36 = vadd.f32 %v2170_v52, %v6139_v44  ;;  %v2553_v14 = vadd.f32 %v2552_v12, %v2419_v55 }
 0x370   :  { %v2305_v4 = vadd.f32 %v2304_v26, %v2171_v36  ;;  %2962 = vmatmul.bf16.gmra.mxu0 %v7090_v30  ;;  %3096 = vmatmul.bf16.gmra.mxu1 %v2755_v39  ;;  %v2671_v1 = vmax.f32 %v2553_v14, 0.0 }
 0x372   :  { %v2686_v45 = vmax.f32 %v2305_v4, 0.0 }
 0x373   :  { %v2420_v56 = vpop.f32.mrf.mxu2  ;;  %v2554_v7 = vpop.f32.mrf.mxu3 }
 0x374   :  { %v2421_v46 = vadd.f32 %v2420_v56, %v7063_v22 }
 0x375   :  { %v2172_v57 = vpop.f32.mrf.mxu0  ;;  %v2306_v35 = vpop.f32.mrf.mxu1 }
 0x376   :  { %v2555_v32 = vadd.f32 %v2554_v7, %v2421_v46  ;;  %v2173_v13 = vadd.f32 %v2172_v57, %v6139_v44 }
 0x378   :  { %v2307_v16 = vadd.f32 %v2306_v35, %v2173_v13  ;;  %2462 = vmatmul.bf16.gmra.mxu2 %v5893_v11  ;;  %2596 = vmatmul.bf16.gmra.mxu3 %v5895_v6  ;;  %v2673_v30 = vmax.f32 %v2555_v32, 0.0 }
 0x37a   :  { %v2688_v18 = vmax.f32 %v2307_v16, 0.0  ;;  %v2757_v59 = vpack.c.bf16 %v2673_v30, %v2671_v1 }
 0x37b   :  { %v2423_v49 = vpop.f32.mrf.mxu2  ;;  %v2557_v9 = vpop.f32.mrf.mxu3 }
 0x37c   :  { %v7135_v15 = vpack.c.bf16 %v2688_v18, %v2686_v45  ;;  %v2424_v6 = vadd.f32 %v2423_v49, %v7063_v22 }
 0x37d   :  { %v2175_v25 = vpop.f32.mrf.mxu0  ;;  %v2309_v61 = vpop.f32.mrf.mxu1 }
 0x37e   :  { %v2176_v43 = vadd.f32 %v2175_v25, %v6139_v44  ;;  %v2558_v42 = vadd.f32 %v2557_v9, %v2424_v6 }
 0x380   :  { %v2310_v54 = vadd.f32 %v2309_v61, %v2176_v43  ;;  %2967 = vmatmul.bf16.gmra.mxu0 %v7099_v60  ;;  %3101 = vmatmul.bf16.gmra.mxu1 %v2757_v59  ;;  %v2675_v41 = vmax.f32 %v2558_v42, 0.0  ;;  %v8137_v59 = vld [vmem:[#allocation32_spill] sm:$0xff] }
 0x382   :  { %v2690_v40 = vmax.f32 %v2310_v54, 0.0 }
 0x383   :  { %v2425_v11 = vpop.f32.mrf.mxu2  ;;  %v2559_v24 = vpop.f32.mrf.mxu3 }
 0x384   :  { %v2426_v63 = vadd.f32 %v2425_v11, %v7063_v22 }
 0x385   :  { %v2177_v53 = vpop.f32.mrf.mxu0  ;;  %v2311_v5 = vpop.f32.mrf.mxu1 }
 0x386   :  { %v2560_v19 = vadd.f32 %v2559_v24, %v2426_v63  ;;  %v2178_v23 = vadd.f32 %v2177_v53, %v6139_v44 }
 0x388   :  { %v2312_v51 = vadd.f32 %v2311_v5, %v2178_v23  ;;  %2467 = vmatmul.bf16.gmra.mxu2 %v5964_v21  ;;  %2601 = vmatmul.bf16.gmra.mxu3 %v5966_v20  ;;  %v2677_v60 = vmax.f32 %v2560_v19, 0.0 }
 0x38a   :  { %v2692_v29 = vmax.f32 %v2312_v51, 0.0  ;;  %v2759_v21 = vpack.c.bf16 %v2677_v60, %v2675_v41 }
 0x38b   :  { %v2428_v34 = vpop.f32.mrf.mxu2  ;;  %v2562_v28 = vpop.f32.mrf.mxu3 }
 0x38c   :  { %v7149_v50 = vpack.c.bf16 %v2692_v29, %v2690_v40  ;;  %v2429_v12 = vadd.f32 %v2428_v34, %v7063_v22 }
 0x38d   :  { %v2933_v58 = vpop.f32.mrf.mxu0  ;;  %v3067_v37 = vpop.f32.mrf.mxu1 }
 0x38e   :  { %v2934_v0 = vadd.f32 %v7147_v31, %v2933_v58  ;;  %v2563_v4 = vadd.f32 %v2562_v28, %v2429_v12 }
 0x390   :  { %v7152_v8 = vadd.f32 %v3067_v37, %v2934_v0  ;;  %2972 = vmatmul.bf16.gmra.mxu0 %v7108_v3  ;;  %3106 = vmatmul.bf16.gmra.mxu1 %v2759_v21  ;;  %v8136_v3 = vld [vmem:[#allocation65_spill] sm:$0xff]  ;;  %v2679_v57 = vmax.f32 %v2563_v4, 0.0  ;;  %v8139_v0 = vld [vmem:[#allocation28_spill] sm:$0xff] }
 0x392   :  { %3192 = vmax.xlane.f32.xlu1 %v7152_v8 }
 0x393   :  { %v2430_v20 = vpop.f32.mrf.mxu2  ;;  %v2564_v47 = vpop.f32.mrf.mxu3 }
 0x394   :  { %v2431_v17 = vadd.f32 %v2430_v20, %v7063_v22 }
 0x395   :  { %v2935_v52 = vpop.f32.mrf.mxu0  ;;  %v3069_v26 = vpop.f32.mrf.mxu1 }
 0x396   :  { %v2565_v36 = vadd.f32 %v2564_v47, %v2431_v17  ;;  %v2936_v39 = vadd.f32 %v7147_v31, %v2935_v52 }
 0x398   :  { %v7159_v56 = vadd.f32 %v3069_v26, %v2936_v39  ;;  %2472 = vmatmul.bf16.gmra.mxu2 %v6021_v33  ;;  %2606 = vmatmul.bf16.gmra.mxu3 %v8136_v3  ;;  %v2681_v7 = vmax.f32 %v2565_v36, 0.0 }
 0x39a   :  { %3194 = vmax.xlane.f32.xlu2 %v7159_v56  ;;  %v2761_v14 = vpack.c.bf16 %v2681_v7, %v2679_v57 }
 0x39b   :  { %v2433_v55 = vpop.f32.mrf.mxu2  ;;  %v2567_v46 = vpop.f32.mrf.mxu3 }
 0x39c   :  { %v2434_v30 = vadd.f32 %v2433_v55, %v7063_v22 }
 0x39d   :  { %v2938_v35 = vpop.f32.mrf.mxu0  ;;  %v3072_v32 = vpop.f32.mrf.mxu1 }
 0x39e   :  { %v2939_v13 = vadd.f32 %v7147_v31, %v2938_v35  ;;  %v2568_v61 = vadd.f32 %v2567_v46, %v2434_v30 }
 0x3a0   :  { %v7165_v16 = vadd.f32 %v3072_v32, %v2939_v13  ;;  %2977 = vmatmul.bf16.gmra.mxu0 %v7117_v38  ;;  %3111 = vmatmul.bf16.gmra.mxu1 %v2761_v14  ;;  %v8138_v38 = vld [vmem:[#allocation66_spill] sm:$0xff]  ;;  %v2683_v6 = vmax.f32 %v2568_v61, 0.0 }
 0x3a2   :  { %3196 = vmax.xlane.f32.xlu0 %v7165_v16 }
 0x3a3   :  { %v2435_v33 = vpop.f32.mrf.mxu2  ;;  %v2569_v45 = vpop.f32.mrf.mxu3 }
 0x3a4   :  { %v2436_v18 = vadd.f32 %v2435_v33, %v7063_v22  ;;  %v8141_v33 = vld [vmem:[#allocation33_spill] sm:$0xff] }
 0x3a5   :  { %v2940_v49 = vpop.f32.mrf.mxu0  ;;  %v3074_v9 = vpop.f32.mrf.mxu1 }
 0x3a6   :  { %v2570_v1 = vadd.f32 %v2569_v45, %v2436_v18  ;;  %v2941_v25 = vadd.f32 %v7147_v31, %v2940_v49 }
 0x3a8   :  { %v7172_v43 = vadd.f32 %v3074_v9, %v2941_v25  ;;  %2477 = vmatmul.bf16.gmra.mxu2 %v8137_v59  ;;  %2611 = vmatmul.bf16.gmra.mxu3 %v8138_v38  ;;  %v2685_v54 = vmax.f32 %v2570_v1, 0.0  ;;  %v8143_v38 = vld [vmem:[#allocation68_spill] sm:$0xff] }
 0x3aa   :  { %3198 = vmax.xlane.f32.xlu2 %v7172_v43  ;;  %v2763_v19 = vpack.c.bf16 %v2685_v54, %v2683_v6  ;;  %v2183_v54 = vadd.f32 %v8143_v38, %v6139_v44 }
 0x3ab   :  { %v2438_v11 = vpop.f32.mrf.mxu2  ;;  %v2572_v24 = vpop.f32.mrf.mxu3 }
 0x3ac   :  { %v2439_v40 = vadd.f32 %v2438_v11, %v7063_v22 }
 0x3ad   :  { %v2943_v63 = vpop.f32.mrf.mxu0  ;;  %v3077_v53 = vpop.f32.mrf.mxu1 }
 0x3ae   :  { %v2944_v5 = vadd.f32 %v7147_v31, %v2943_v63  ;;  %v2573_v58 = vadd.f32 %v2572_v24, %v2439_v40 }
 0x3b0   :  { %v7178_v23 = vadd.f32 %v3077_v53, %v2944_v5  ;;  %2982 = vmatmul.bf16.gmra.mxu0 %v7126_v2  ;;  %3116 = vmatmul.bf16.gmra.mxu1 %v2763_v19  ;;  %v8140_v2 = vld [vmem:[#allocation67_spill] sm:$0xff]  ;;  %v2687_v12 = vmax.f32 %v2573_v58, 0.0 }
 0x3b1   :  { %v8144_v19 = vld [vmem:[#allocation35_spill] sm:$0xff] }
 0x3b2   :  { %3200 = vmax.xlane.f32.xlu1 %v7178_v23 }
 0x3b3   :  { %v2440_v42 = vpop.f32.mrf.mxu2  ;;  %v2574_v51 = vpop.f32.mrf.mxu3 }
 0x3b4   :  { %v2441_v60 = vadd.f32 %v2440_v42, %v7063_v22  ;;  %v2317_v42 = vadd.f32 %v8144_v19, %v2183_v54  ;;  %v8152_v54 = vld [vmem:[#allocation7_spill] sm:$0xff] }
 0x3b5   :  { %v2945_v29 = vpop.f32.mrf.mxu0  ;;  %v3079_v34 = vpop.f32.mrf.mxu1 }
 0x3b6   :  { %v2575_v28 = vadd.f32 %v2574_v51, %v2441_v60  ;;  %v2946_v41 = vadd.f32 %v7147_v31, %v2945_v29  ;;  %v8145_v29 = vld [vmem:[#allocation9_spill] sm:$0xff] }
 0x3b8   :  { %v7185_v37 = vadd.f32 %v3079_v34, %v2946_v41  ;;  %2482 = vmatmul.bf16.gmra.mxu2 %v8139_v0  ;;  %2616 = vmatmul.bf16.gmra.mxu3 %v8140_v2  ;;  %v2689_v21 = vmax.f32 %v2575_v28, 0.0  ;;  %v8146_v34 = vld [vmem:[#allocation36_spill] sm:$0xff]  ;;  %v2696_v28 = vmax.f32 %v2317_v42, 0.0  ;;  %v8147_v2 = vld [vmem:[#allocation31_spill] sm:$0xff] }
 0x3ba   :  { %3202 = vmax.xlane.f32.xlu2 %v7185_v37  ;;  %v2765_v36 = vpack.c.bf16 %v2689_v21, %v2687_v12  ;;  %v2694_v21 = vmax.f32 %v8147_v2, 0.0 }
 0x3bb   :  { %v2443_v20 = vpop.f32.mrf.mxu2  ;;  %v2577_v47 = vpop.f32.mrf.mxu3 }
 0x3bc   :  { %v2444_v7 = vadd.f32 %v2443_v20, %v7063_v22 }
 0x3bd   :  { %v2948_v17 = vpop.f32.mrf.mxu0  ;;  %v3082_v52 = vpop.f32.mrf.mxu1 }
 0x3be   :  { %v2949_v26 = vadd.f32 %v7147_v31, %v2948_v17  ;;  %v2578_v13 = vadd.f32 %v2577_v47, %v2444_v7 }
 0x3c0   :  { %v7191_v39 = vadd.f32 %v3082_v52, %v2949_v26  ;;  %2987 = vmatmul.bf16.gmra.mxu0 %v7135_v15  ;;  %3121 = vmatmul.bf16.gmra.mxu1 %v2765_v36  ;;  %v8142_v15 = vld [vmem:[#allocation45_spill] sm:$0xff]  ;;  %v2691_v49 = vmax.f32 %v2578_v13, 0.0  ;;  %v2768_v26 = vpack.c.bf16 %v2696_v28, %v2694_v21  ;;  %v8149_v13 = vld [vmem:[#allocation10_spill] sm:$0xff] }
 0x3c2   :  { %3204 = vmax.xlane.f32.xlu0 %v7191_v39 }
 0x3c3   :  { %v2445_v4 = vpop.f32.mrf.mxu2  ;;  %v2579_v3 = vpop.f32.mrf.mxu3 }
 0x3c4   :  { %v2446_v55 = vadd.f32 %v2445_v4, %v7063_v22  ;;  %v8148_v4 = vld [vmem:[#allocation34_spill] sm:$0xff] }
 0x3c5   :  { %v2950_v46 = vpop.f32.mrf.mxu0  ;;  %v3084_v57 = vpop.f32.mrf.mxu1 }
 0x3c6   :  { %v2580_v35 = vadd.f32 %v2579_v3, %v2446_v55  ;;  %v2951_v32 = vadd.f32 %v7147_v31, %v2950_v46  ;;  %v2188_v3 = vadd.f32 %v8148_v4, %v6139_v44 }
 0x3c8   :  { %v7198_v14 = vadd.f32 %v3084_v57, %v2951_v32  ;;  %2487 = vmatmul.bf16.gmra.mxu2 %v8141_v33  ;;  %2621 = vmatmul.bf16.gmra.mxu3 %v8142_v15  ;;  %v2693_v45 = vmax.f32 %v2580_v35, 0.0  ;;  %v2322_v33 = vadd.f32 %v8149_v13, %v2188_v3 }
 0x3ca   :  { %3206 = vmax.xlane.f32.xlu1 %v7198_v14  ;;  %v2767_v61 = vpack.c.bf16 %v2693_v45, %v2691_v49  ;;  %v8150_v49 = vld [vmem:[#allocation30_spill] sm:$0xff] }
 0x3cb   :  { %v2448_v30 = vpop.f32.mrf.mxu2  ;;  %v2582_v18 = vpop.f32.mrf.mxu3 }
 0x3cc   :  { %v2449_v6 = vadd.f32 %v2448_v30, %v7063_v22 }
 0x3cd   :  { %v2953_v9 = vpop.f32.mrf.mxu0  ;;  %v3087_v1 = vpop.f32.mrf.mxu1 }
 0x3ce   :  { %v2954_v25 = vadd.f32 %v7147_v31, %v2953_v9  ;;  %v8151_v9 = vld [vmem:[#allocation46_spill] sm:$0xff] }
 0x3d0   :  { %v7204_v59 = vadd.f32 %v3087_v1, %v2954_v25  ;;  %2992 = vmatmul.bf16.gmra.mxu0 %v7149_v50  ;;  %3126 = vmatmul.bf16.gmra.mxu1 %v2767_v61  ;;  %v2583_v50 = vadd.f32 %v2582_v18, %v2449_v6  ;;  %v2700_v1 = vmax.f32 %v2322_v33, 0.0 }
 0x3d2   :  { %3208 = vmax.xlane.f32.xlu2 %v7204_v59  ;;  %v2695_v20 = vmax.f32 %v2583_v50, 0.0 }
 0x3d3   :  { %v2450_v11 = vpop.f32.mrf.mxu2  ;;  %v2584_v24 = vpop.f32.mrf.mxu3 }
 0x3d4   :  { %v2451_v63 = vadd.f32 %v2450_v11, %v7063_v22  ;;  %v2698_v11 = vmax.f32 %v8152_v54, 0.0 }
 0x3d5   :  { %v2955_v53 = vpop.f32.mrf.mxu0  ;;  %v3089_v5 = vpop.f32.mrf.mxu1 }
 0x3d6   :  { %v2585_v51 = vadd.f32 %v2584_v24, %v2451_v63  ;;  %v2956_v40 = vadd.f32 %v7147_v31, %v2955_v53  ;;  %v2770_v19 = vpack.c.bf16 %v2700_v1, %v2698_v11  ;;  %v8159_v11 = vld [vmem:[#allocation70_spill] sm:$0xff] }
 0x3d8   :  { %v7214_v60 = vadd.f32 %v3089_v5, %v2956_v40  ;;  %2492 = vmatmul.bf16.gmra.mxu2 %v8145_v29  ;;  %2626 = vmatmul.bf16.gmra.mxu3 %v8146_v34  ;;  %v2697_v41 = vmax.f32 %v2585_v51, 0.0  ;;  %v8153_v51 = vld [vmem:[#allocation29_spill] sm:$0xff] }
 0x3d9   :  { %v2193_v40 = vadd.f32 %v8153_v51, %v6139_v44 }
 0x3da   :  { %3210 = vmax.xlane.f32.xlu0 %v7214_v60  ;;  %v2769_v17 = vpack.c.bf16 %v2697_v41, %v2695_v20 }
 0x3db   :  { %v2453_v58 = vpop.f32.mrf.mxu2  ;;  %v2587_v0 = vpop.f32.mrf.mxu3 }
 0x3dc   :  { %v2454_v46 = vadd.f32 %v2453_v58, %v7063_v22 }
 0x3dd   :  { %v2958_v47 = vpop.f32.mrf.mxu0  ;;  %v3092_v12 = vpop.f32.mrf.mxu1 }
 0x3de   :  { %v2959_v52 = vadd.f32 %v7147_v31, %v2958_v47  ;;  %v2588_v30 = vadd.f32 %v2587_v0, %v2454_v46  ;;  %v8154_v0 = vld [vmem:[#allocation38_spill] sm:$0xff] }
 0x3df   :  { %v2327_v2 = vadd.f32 %v8154_v0, %v2193_v40 }
 0x3e0   :  { %v7221_v36 = vadd.f32 %v3092_v12, %v2959_v52  ;;  %2997 = vmatmul.bf16.gmra.mxu0 %v2768_v26  ;;  %3131 = vmatmul.bf16.gmra.mxu1 %v2769_v17  ;;  %v2699_v24 = vmax.f32 %v2588_v30, 0.0  ;;  %v8155_v17 = vld [vmem:[#allocation13_spill] sm:$0xff]  ;;  %v8156_v52 = vld [vmem:[#allocation48_spill] sm:$0xff]  ;;  %v8158_v30 = vld [vmem:[#allocation43_spill] sm:$0xff] }
 0x3e1   :  { %v2704_v26 = vmax.f32 %v2327_v2, 0.0 }
 0x3e2   :  { %3212 = vmax.xlane.f32.xlu1 %v7221_v36 }
 0x3e3   :  { %v2455_v7 = vpop.f32.mrf.mxu2  ;;  %v2589_v55 = vpop.f32.mrf.mxu3 }
 0x3e4   :  { %v2456_v57 = vadd.f32 %v2455_v7, %v7063_v22 }
 0x3e5   :  { %v2960_v35 = vpop.f32.mrf.mxu0  ;;  %v3094_v32 = vpop.f32.mrf.mxu1 }
 0x3e6   :  { %v2590_v15 = vadd.f32 %v2589_v55, %v2456_v57  ;;  %v2961_v45 = vadd.f32 %v7147_v31, %v2960_v35  ;;  %v8157_v55 = vld [vmem:[#allocation69_spill] sm:$0xff] }
 0x3e7   :  { %v2702_v46 = vmax.f32 %v8157_v55, 0.0 }
 0x3e8   :  { %v7230_v18 = vadd.f32 %v3094_v32, %v2961_v45  ;;  %2497 = vmatmul.bf16.gmra.mxu2 %v8150_v49  ;;  %2631 = vmatmul.bf16.gmra.mxu3 %v8151_v9  ;;  %v2701_v25 = vmax.f32 %v2590_v15, 0.0  ;;  %v2198_v49 = vadd.f32 %v8158_v30, %v6139_v44 }
 0x3e9   :  { %v2772_v15 = vpack.c.bf16 %v2704_v26, %v2702_v46 }
 0x3ea   :  { %3214 = vmax.xlane.f32.xlu2 %v7230_v18  ;;  %v2771_v53 = vpack.c.bf16 %v2701_v25, %v2699_v24  ;;  %v2332_v24 = vadd.f32 %v8159_v11, %v2198_v49 }
 0x3eb   :  { %v2458_v61 = vpop.f32.mrf.mxu2  ;;  %v2592_v38 = vpop.f32.mrf.mxu3 }
 0x3ec   :  { %v2459_v34 = vadd.f32 %v2458_v61, %v7063_v22 }
 0x3ed   :  { %v2963_v6 = vpop.f32.mrf.mxu0  ;;  %v3097_v63 = vpop.f32.mrf.mxu1 }
 0x3ee   :  { %v2964_v5 = vadd.f32 %v7147_v31, %v2963_v6  ;;  %v2593_v47 = vadd.f32 %v2592_v38, %v2459_v34 }
 0x3f0   :  { %v7237_v42 = vadd.f32 %v3097_v63, %v2964_v5  ;;  %3002 = vmatmul.bf16.gmra.mxu0 %v2770_v19  ;;  %3136 = vmatmul.bf16.gmra.mxu1 %v2771_v53  ;;  %v2703_v57 = vmax.f32 %v2593_v47, 0.0 }
 0x3f2   :  { %3216 = vmax.xlane.f32.xlu0 %v7237_v42 }
 0x3f3   :  { %v2460_v50 = vpop.f32.mrf.mxu2  ;;  %v2594_v29 = vpop.f32.mrf.mxu3 }
 0x3f4   :  { %v2461_v28 = vadd.f32 %v2460_v50, %v7063_v22  ;;  %v2708_v50 = vmax.f32 %v2332_v24, 0.0 }
 0x3f5   :  { %v2965_v41 = vpop.f32.mrf.mxu0  ;;  %v3099_v58 = vpop.f32.mrf.mxu1 }
 0x3f6   :  { %v2595_v21 = vadd.f32 %v2594_v29, %v2461_v28  ;;  %v2966_v20 = vadd.f32 %v7147_v31, %v2965_v41  ;;  %v8160_v41 = vld [vmem:[#allocation6_spill] sm:$0xff] }
 0x3f8   :  { %v7246_v12 = vadd.f32 %v3099_v58, %v2966_v20  ;;  %2502 = vmatmul.bf16.gmra.mxu2 %v8155_v17  ;;  %2636 = vmatmul.bf16.gmra.mxu3 %v8156_v52  ;;  %v2705_v4 = vmax.f32 %v2595_v21, 0.0  ;;  %v2706_v58 = vmax.f32 %v8160_v41, 0.0 }
 0x3fa   :  { %3218 = vmax.xlane.f32.xlu1 %v7246_v12  ;;  %v2773_v13 = vpack.c.bf16 %v2705_v4, %v2703_v57  ;;  %v2774_v17 = vpack.c.bf16 %v2708_v50, %v2706_v58 }
 0x3fb   :  { %v2463_v3 = vpop.f32.mrf.mxu2  ;;  %v2597_v7 = vpop.f32.mrf.mxu3 }
 0x3fc   :  { %v2464_v25 = vadd.f32 %v2463_v3, %v7063_v22 }
 0x3fd   :  { %v2968_v35 = vpop.f32.mrf.mxu0  ;;  %v3102_v32 = vpop.f32.mrf.mxu1 }
 0x3fe   :  { %v2969_v33 = vadd.f32 %v7147_v31, %v2968_v35  ;;  %v2598_v19 = vadd.f32 %v2597_v7, %v2464_v25  ;;  %v8161_v7 = vld [vmem:[#allocation37_spill] sm:$0xff] }
 0x3ff   :  { %v2203_v55 = vadd.f32 %v8161_v7, %v6139_v44  ;;  %v8165_v7 = vld [vmem:[#allocation72_spill] sm:$0xff] }
 0x400   :  { %v7253_v45 = vadd.f32 %v3102_v32, %v2969_v33  ;;  %3007 = vmatmul.bf16.gmra.mxu0 %v2772_v15  ;;  %3141 = vmatmul.bf16.gmra.mxu1 %v2773_v13  ;;  %v2707_v0 = vmax.f32 %v2598_v19, 0.0  ;;  %v8162_v33 = vld [vmem:[#allocation2_spill] sm:$0xff] }
 0x401   :  { %v2337_v15 = vadd.f32 %v8162_v33, %v2203_v55 }
 0x402   :  { %3220 = vmax.xlane.f32.xlu2 %v7253_v45 }
 0x403   :  { %v2465_v9 = vpop.f32.mrf.mxu2  ;;  %v2599_v1 = vpop.f32.mrf.mxu3  ;;  %v2712_v11 = vmax.f32 %v2337_v15, 0.0 }
 0x404   :  { %v2466_v61 = vadd.f32 %v2465_v9, %v7063_v22 }
 0x405   :  { %v2970_v38 = vpop.f32.mrf.mxu0  ;;  %v3104_v54 = vpop.f32.mrf.mxu1 }
 0x406   :  { %v2600_v6 = vadd.f32 %v2599_v1, %v2466_v61  ;;  %v2971_v63 = vadd.f32 %v7147_v31, %v2970_v38  ;;  %v3193_v53 = vpop.xlane.xlu1 %3192 }
 0x407   :  { %v3292_v5 = vsub.f32 %v7152_v8, %v3193_v53  ;;  %v8163_v53 = vld [vmem:[#allocation71_spill] sm:$0xff] }
 0x408   :  { %v7263_v51 = vadd.f32 %v3104_v54, %v2971_v63  ;;  %v2709_v29 = vmax.f32 %v2600_v6, 0.0 }
 0x409   :  { %v3342_v40 = vmul.f32 1.442695, %v3292_v5  ;;  %v2710_v5 = vmax.f32 %v8163_v53, 0.0 }
 0x40a   :  { %3222 = vmax.xlane.f32.xlu0 %v7263_v51  ;;  %v2775_v20 = vpack.c.bf16 %v2709_v29, %v2707_v0 }
 0x40b   :  { %4697 = vpow2.f32 %v3342_v40  ;;  %v2468_v34 = vpop.f32.mrf.mxu2  ;;  %v2602_v28 = vpop.f32.mrf.mxu3 }
 0x40c   :  { %v2469_v35 = vadd.f32 %v2468_v34, %v7063_v22 }
 0x40d   :  { %v2973_v2 = vpop.f32.mrf.mxu0  ;;  %v3107_v21 = vpop.f32.mrf.mxu1 }
 0x40e   :  { %v2974_v47 = vadd.f32 %v7147_v31, %v2973_v2  ;;  %v3195_v8 = vpop.xlane.xlu2 %3194  ;;  %v2603_v25 = vadd.f32 %v2602_v28, %v2469_v35  ;;  %v2776_v28 = vpack.c.bf16 %v2712_v11, %v2710_v5 }
 0x40f   :  { %v3293_v52 = vsub.f32 %v7159_v56, %v3195_v8 }
 0x410   :  { %v7269_v26 = vadd.f32 %v3107_v21, %v2974_v47  ;;  %3012 = vmatmul.bf16.gmra.mxu0 %v2774_v17  ;;  %3146 = vmatmul.bf16.gmra.mxu1 %v2775_v20  ;;  %v2711_v19 = vmax.f32 %v2603_v25, 0.0  ;;  %v8164_v21 = vld [vmem:[#allocation39_spill] sm:$0xff] }
 0x411   :  { %v7271_v4 = vpop.eup %4697  ;;  %v3344_v3 = vmul.f32 1.442695, %v3293_v52  ;;  %v2208_v20 = vadd.f32 %v8164_v21, %v6139_v44  ;;  %v8166_v25 = vld [vmem:[#allocation3_spill] sm:$0xff] }
 0x412   :  { %3442 = vadd.xlane.f32.xlu2 %v7271_v4  ;;  %3224 = vmax.xlane.f32.xlu1 %v7269_v26 }
 0x413   :  { %4699 = vpow2.f32 %v3344_v3  ;;  %v2470_v46 = vpop.f32.mrf.mxu2  ;;  %v2604_v57 = vpop.f32.mrf.mxu3  ;;  %v2342_v55 = vadd.f32 %v8165_v7, %v2208_v20 }
 0x414   :  { %v2471_v56 = vadd.f32 %v2470_v46, %v7063_v22 }
 0x415   :  { %v2975_v32 = vpop.f32.mrf.mxu0  ;;  %v3109_v13 = vpop.f32.mrf.mxu1 }
 0x416   :  { %v2605_v30 = vadd.f32 %v2604_v57, %v2471_v56  ;;  %v2976_v49 = vadd.f32 %v7147_v31, %v2975_v32  ;;  %v3197_v9 = vpop.xlane.xlu0 %3196 }
 0x417   :  { %v3294_v1 = vsub.f32 %v7165_v16, %v3197_v9 }
 0x418   :  { %v7282_v61 = vadd.f32 %v3109_v13, %v2976_v49  ;;  %v2713_v24 = vmax.f32 %v2605_v30, 0.0  ;;  %v2716_v30 = vmax.f32 %v2342_v55, 0.0 }
 0x419   :  { %v7284_v38 = vpop.eup %4699  ;;  %v3346_v54 = vmul.f32 1.442695, %v3294_v1 }
 0x41a   :  { %3444 = vadd.xlane.f32.xlu0 %v7284_v38  ;;  %3226 = vmax.xlane.f32.xlu2 %v7282_v61  ;;  %v2777_v50 = vpack.c.bf16 %v2713_v24, %v2711_v19 }
 0x41b   :  { %4701 = vpow2.f32 %v3346_v54  ;;  %v2473_v6 = vpop.f32.mrf.mxu2  ;;  %v2607_v63 = vpop.f32.mrf.mxu3  ;;  %v2714_v54 = vmax.f32 %v8166_v25, 0.0 }
 0x41c   :  { %v2474_v17 = vadd.f32 %v2473_v6, %v7063_v22 }
 0x41d   :  { %v2978_v40 = vpop.f32.mrf.mxu0  ;;  %v3112_v16 = vpop.f32.mrf.mxu1  ;;  %v2778_v5 = vpack.c.bf16 %v2716_v30, %v2714_v54  ;;  %v8169_v30 = vld [vmem:[#allocation41_spill] sm:$0xff] }
 0x41e   :  { %v2979_v29 = vadd.f32 %v7147_v31, %v2978_v40  ;;  %v3199_v34 = vpop.xlane.xlu2 %3198  ;;  %v2608_v32 = vadd.f32 %v2607_v63, %v2474_v17 }
 0x41f   :  { %v3295_v41 = vsub.f32 %v7172_v43, %v3199_v34 }
 0x420   :  { %v7291_v58 = vadd.f32 %v3112_v16, %v2979_v29  ;;  %3017 = vmatmul.bf16.gmra.mxu0 %v2776_v28  ;;  %3151 = vmatmul.bf16.gmra.mxu1 %v2777_v50  ;;  %v2715_v11 = vmax.f32 %v2608_v32, 0.0  ;;  %v8167_v29 = vld [vmem:[#allocation40_spill] sm:$0xff] }
 0x421   :  { %v7293_v0 = vpop.eup %4701  ;;  %v3348_v2 = vmul.f32 1.442695, %v3295_v41  ;;  %v2213_v34 = vadd.f32 %v8167_v29, %v6139_v44 }
 0x422   :  { %3446 = vadd.xlane.f32.xlu1 %v7293_v0  ;;  %3228 = vmax.xlane.f32.xlu0 %v7291_v58 }
 0x423   :  { %4703 = vpow2.f32 %v3348_v2  ;;  %v2475_v47 = vpop.f32.mrf.mxu2  ;;  %v2609_v8 = vpop.f32.mrf.mxu3 }
 0x424   :  { %v2476_v43 = vadd.f32 %v2475_v47, %v7063_v22  ;;  %v8168_v47 = vld [vmem:[#allocation12_spill] sm:$0xff] }
 0x425   :  { %v2980_v52 = vpop.f32.mrf.mxu0  ;;  %v3114_v3 = vpop.f32.mrf.mxu1 }
 0x426   :  { %v2610_v46 = vadd.f32 %v2609_v8, %v2476_v43  ;;  %v2981_v57 = vadd.f32 %v7147_v31, %v2980_v52  ;;  %v3201_v35 = vpop.xlane.xlu1 %3200  ;;  %v2347_v8 = vadd.f32 %v8168_v47, %v2213_v34 }
 0x427   :  { %v3296_v56 = vsub.f32 %v7178_v23, %v3201_v35 }
 0x428   :  { %v7304_v13 = vadd.f32 %v3114_v3, %v2981_v57  ;;  %v2717_v49 = vmax.f32 %v2610_v46, 0.0  ;;  %v2720_v35 = vmax.f32 %v2347_v8, 0.0 }
 0x429   :  { %v7306_v33 = vpop.eup %4703  ;;  %v3350_v15 = vmul.f32 1.442695, %v3296_v56 }
 0x42a   :  { %3448 = vadd.xlane.f32.xlu2 %v7306_v33  ;;  %3230 = vmax.xlane.f32.xlu1 %v7304_v13  ;;  %v2779_v6 = vpack.c.bf16 %v2717_v49, %v2715_v11  ;;  %v2718_v49 = vmax.f32 %v8169_v30, 0.0 }
 0x42b   :  { %4705 = vpow2.f32 %v3350_v15  ;;  %v2478_v9 = vpop.f32.mrf.mxu2  ;;  %v2612_v1 = vpop.f32.mrf.mxu3 }
 0x42c   :  { %v2479_v2 = vadd.f32 %v2478_v9, %v7063_v22 }
 0x42d   :  { %v2983_v24 = vpop.f32.mrf.mxu0  ;;  %v3117_v23 = vpop.f32.mrf.mxu1 }
 0x42e   :  { %v2984_v63 = vadd.f32 %v7147_v31, %v2983_v24  ;;  %v3203_v53 = vpop.xlane.xlu2 %3202  ;;  %v2613_v7 = vadd.f32 %v2612_v1, %v2479_v2  ;;  %v2780_v24 = vpack.c.bf16 %v2720_v35, %v2718_v49  ;;  %v8171_v2 = vld [vmem:[#allocation16_spill] sm:$0xff] }
 0x42f   :  { %v3297_v19 = vsub.f32 %v7185_v37, %v3203_v53 }
 0x430   :  { %v7313_v40 = vadd.f32 %v3117_v23, %v2984_v63  ;;  %3022 = vmatmul.bf16.gmra.mxu0 %v2778_v5  ;;  %3156 = vmatmul.bf16.gmra.mxu1 %v2779_v6  ;;  %v2719_v9 = vmax.f32 %v2613_v7, 0.0  ;;  %v8170_v5 = vld [vmem:[#allocation4_spill] sm:$0xff] }
 0x431   :  { %v7315_v16 = vpop.eup %4705  ;;  %v3352_v50 = vmul.f32 1.442695, %v3297_v19  ;;  %v2218_v19 = vadd.f32 %v8170_v5, %v6139_v44 }
 0x432   :  { %3450 = vadd.xlane.f32.xlu0 %v7315_v16  ;;  %3232 = vmax.xlane.f32.xlu2 %v7313_v40 }
 0x433   :  { %4707 = vpow2.f32 %v3352_v50  ;;  %v2480_v28 = vpop.f32.mrf.mxu2  ;;  %v2614_v41 = vpop.f32.mrf.mxu3 }
 0x434   :  { %v2481_v37 = vadd.f32 %v2480_v28, %v7063_v22 }
 0x435   :  { %v2985_v21 = vpop.f32.mrf.mxu0  ;;  %v3119_v20 = vpop.f32.mrf.mxu1 }
 0x436   :  { %v2615_v17 = vadd.f32 %v2614_v41, %v2481_v37  ;;  %v2986_v43 = vadd.f32 %v7147_v31, %v2985_v21  ;;  %v3205_v52 = vpop.xlane.xlu0 %3204  ;;  %v2352_v37 = vadd.f32 %v8171_v2, %v2218_v19 }
 0x437   :  { %v3298_v3 = vsub.f32 %v7191_v39, %v3205_v52 }
 0x438   :  { %v7326_v55 = vadd.f32 %v3119_v20, %v2986_v43  ;;  %v2721_v56 = vmax.f32 %v2615_v17, 0.0  ;;  %v2724_v7 = vmax.f32 %v2352_v37, 0.0 }
 0x439   :  { %v7328_v46 = vpop.eup %4707  ;;  %v3354_v57 = vmul.f32 1.442695, %v3298_v3 }
 0x43a   :  { %3452 = vadd.xlane.f32.xlu1 %v7328_v46  ;;  %3234 = vmax.xlane.f32.xlu0 %v7326_v55  ;;  %v2781_v1 = vpack.c.bf16 %v2721_v56, %v2719_v9 }
 0x43b   :  { %4709 = vpow2.f32 %v3354_v57  ;;  %v2483_v32 = vpop.f32.mrf.mxu2  ;;  %v2617_v15 = vpop.f32.mrf.mxu3 }
 0x43c   :  { %v2484_v34 = vadd.f32 %v2483_v32, %v7063_v22  ;;  %v8172_v32 = vld [vmem:[#allocation49_spill] sm:$0xff] }
 0x43d   :  { %v2988_v25 = vpop.f32.mrf.mxu0  ;;  %v3122_v39 = vpop.f32.mrf.mxu1  ;;  %v2722_v30 = vmax.f32 %v8172_v32, 0.0 }
 0x43e   :  { %v2989_v54 = vadd.f32 %v7147_v31, %v2988_v25  ;;  %v3207_v11 = vpop.xlane.xlu1 %3206  ;;  %v2618_v17 = vadd.f32 %v2617_v15, %v2484_v34 }
 0x43f   :  { %v3299_v23 = vsub.f32 %v7198_v14, %v3207_v11 }
 0x440   :  { %v7335_v6 = vadd.f32 %v3122_v39, %v2989_v54  ;;  %3027 = vmatmul.bf16.gmra.mxu0 %v2780_v24  ;;  %3161 = vmatmul.bf16.gmra.mxu1 %v2781_v1  ;;  %v2723_v49 = vmax.f32 %v2618_v17, 0.0  ;;  %v2782_v1 = vpack.c.bf16 %v2724_v7, %v2722_v30  ;;  %v8175_v30 = vld [vmem:[#allocation42_spill] sm:$0xff] }
 0x441   :  { %v7337_v63 = vpop.eup %4709  ;;  %v3356_v53 = vmul.f32 1.442695, %v3299_v23 }
 0x442   :  { %3454 = vadd.xlane.f32.xlu2 %v7337_v63  ;;  %3236 = vmax.xlane.f32.xlu1 %v7335_v6 }
 0x443   :  { %4711 = vpow2.f32 %v3356_v53  ;;  %v2485_v50 = vpop.f32.mrf.mxu2  ;;  %v2619_v29 = vpop.f32.mrf.mxu3  ;;  %v8173_v53 = vld [vmem:[#allocation51_spill] sm:$0xff] }
 0x444   :  { %v2486_v14 = vadd.f32 %v2485_v50, %v7063_v22  ;;  %v2223_v5 = vadd.f32 %v8173_v53, %v6139_v44 }
 0x445   :  { %v2990_v28 = vpop.f32.mrf.mxu0  ;;  %v3124_v41 = vpop.f32.mrf.mxu1 }
 0x446   :  { %v2620_v21 = vadd.f32 %v2619_v29, %v2486_v14  ;;  %v2991_v20 = vadd.f32 %v7147_v31, %v2990_v28  ;;  %v3209_v47 = vpop.xlane.xlu2 %3208  ;;  %v8174_v28 = vld [vmem:[#allocation5_spill] sm:$0xff] }
 0x447   :  { %v3300_v8 = vsub.f32 %v7204_v59, %v3209_v47 }
 0x448   :  { %v7348_v43 = vadd.f32 %v3124_v41, %v2991_v20  ;;  %v2725_v57 = vmax.f32 %v2620_v21, 0.0  ;;  %v2357_v41 = vadd.f32 %v8174_v28, %v2223_v5  ;;  %v2228_v5 = vadd.f32 %v6912_v10, %v6139_v44 }
 0x449   :  { %v7350_v52 = vpop.eup %4711  ;;  %v3358_v3 = vmul.f32 1.442695, %v3300_v8 }
 0x44a   :  { %3456 = vadd.xlane.f32.xlu0 %v7350_v52  ;;  %3238 = vmax.xlane.f32.xlu2 %v7348_v43  ;;  %v2783_v15 = vpack.c.bf16 %v2725_v57, %v2723_v49  ;;  %v2728_v7 = vmax.f32 %v2357_v41, 0.0 }
 0x44b   :  { %4713 = vpow2.f32 %v3358_v3  ;;  %v2488_v35 = vpop.f32.mrf.mxu2  ;;  %v2622_v56 = vpop.f32.mrf.mxu3 }
 0x44c   :  { %v2489_v50 = vadd.f32 %v2488_v35, %v7063_v22 }
 0x44d   :  { %v3127_v9 = vpop.f32.mrf.mxu1  ;;  %v3211_v59 = vpop.xlane.xlu0 %3210 }
 0x44e   :  { %v3301_v25 = vsub.f32 %v7214_v60, %v3211_v59  ;;  %v2993_v39 = vpop.f32.mrf.mxu0  ;;  %v2623_v8 = vadd.f32 %v2622_v56, %v2489_v50 }
 0x44f   :  { %v2994_v54 = vadd.f32 %v7147_v31, %v2993_v39 }
 0x450   :  { %v3360_v11 = vmul.f32 1.442695, %v3301_v25  ;;  %3032 = vmatmul.bf16.gmra.mxu0 %v2782_v1  ;;  %3166 = vmatmul.bf16.gmra.mxu1 %v2783_v15  ;;  %v2727_v49 = vmax.f32 %v2623_v8, 0.0 }
 0x451   :  { %v7357_v24 = vpop.eup %4713  ;;  %v7359_v23 = vadd.f32 %v3127_v9, %v2994_v54 }
 0x452   :  { %4715 = vpow2.f32 %v3360_v11  ;;  %3458 = vadd.xlane.f32.xlu1 %v7357_v24 }
 0x453   :  { %3240 = vmax.xlane.f32.xlu0 %v7359_v23  ;;  %v2490_v60 = vpop.f32.mrf.mxu2  ;;  %v2624_v19 = vpop.f32.mrf.mxu3 }
 0x454   :  { %v2491_v29 = vadd.f32 %v2490_v60, %v7063_v22 }
 0x455   :  { %v3129_v34 = vpop.f32.mrf.mxu1  ;;  %v3213_v14 = vpop.xlane.xlu1 %3212 }
 0x456   :  { %v2625_v2 = vadd.f32 %v2624_v19, %v2491_v29  ;;  %v3302_v37 = vsub.f32 %v7221_v36, %v3213_v14  ;;  %v2995_v21 = vpop.f32.mrf.mxu0  ;;  %v2726_v36 = vmax.f32 %v8175_v30, 0.0  ;;  %v8176_v14 = vld [vmem:[#allocation44_spill] sm:$0xff] }
 0x457   :  { %v2996_v20 = vadd.f32 %v7147_v31, %v2995_v21  ;;  %v2362_v28 = vadd.f32 %v8176_v14, %v2228_v5 }
 0x458   :  { %v7370_v47 = vpop.eup %4715  ;;  %v3362_v17 = vmul.f32 1.442695, %v3302_v37  ;;  %v2729_v57 = vmax.f32 %v2625_v2, 0.0  ;;  %v2784_v39 = vpack.c.bf16 %v2728_v7, %v2726_v36  ;;  %v8177_v36 = vld [vmem:[#allocation15_spill] sm:$0xff] }
 0x459   :  { %v7372_v3 = vadd.f32 %v3129_v34, %v2996_v20  ;;  %3460 = vadd.xlane.f32.xlu2 %v7370_v47  ;;  %v2732_v7 = vmax.f32 %v2362_v28, 0.0 }
 0x45a   :  { %4717 = vpow2.f32 %v3362_v17  ;;  %v2785_v15 = vpack.c.bf16 %v2729_v57, %v2727_v49 }
 0x45b   :  { %3242 = vmax.xlane.f32.xlu1 %v7372_v3  ;;  %v2493_v35 = vpop.f32.mrf.mxu2  ;;  %v2627_v32 = vpop.f32.mrf.mxu3 }
 0x45c   :  { %v2494_v19 = vadd.f32 %v2493_v35, %v7063_v22 }
 0x45d   :  { %v3132_v9 = vpop.f32.mrf.mxu1  ;;  %v3215_v59 = vpop.xlane.xlu2 %3214 }
 0x45e   :  { %v3303_v56 = vsub.f32 %v7230_v18, %v3215_v59  ;;  %v2998_v25 = vpop.f32.mrf.mxu0  ;;  %v2628_v20 = vadd.f32 %v2627_v32, %v2494_v19 }
 0x45f   :  { %v2999_v1 = vadd.f32 %v7147_v31, %v2998_v25 }
 0x460   :  { %v7379_v54 = vpop.eup %4717  ;;  %v3364_v11 = vmul.f32 1.442695, %v3303_v56  ;;  %3037 = vmatmul.bf16.gmra.mxu0 %v2784_v39  ;;  %3171 = vmatmul.bf16.gmra.mxu1 %v2785_v15  ;;  %v2731_v49 = vmax.f32 %v2628_v20, 0.0 }
 0x461   :  { %v7381_v53 = vadd.f32 %v3132_v9, %v2999_v1  ;;  %3462 = vadd.xlane.f32.xlu0 %v7379_v54 }
 0x462   :  { %4719 = vpow2.f32 %v3364_v11 }
 0x463   :  { %3244 = vmax.xlane.f32.xlu2 %v7381_v53  ;;  %v2495_v18 = vpop.f32.mrf.mxu2  ;;  %v2629_v60 = vpop.f32.mrf.mxu3 }
 0x464   :  { %v2496_v50 = vadd.f32 %v2495_v18, %v7063_v22  ;;  %v2233_v18 = vadd.f32 %v7005_v62, %v6139_v44 }
 0x465   :  { %v3134_v29 = vpop.f32.mrf.mxu1  ;;  %v3217_v34 = vpop.xlane.xlu0 %3216 }
 0x466   :  { %v2630_v41 = vadd.f32 %v2629_v60, %v2496_v50  ;;  %v3304_v2 = vsub.f32 %v7237_v42, %v3217_v34  ;;  %v3000_v37 = vpop.f32.mrf.mxu0  ;;  %v2730_v42 = vmax.f32 %v8177_v36, 0.0  ;;  %v2367_v14 = vadd.f32 %v7007_v48, %v2233_v18 }
 0x467   :  { %v3001_v21 = vadd.f32 %v7147_v31, %v3000_v37 }
 0x468   :  { %v7392_v10 = vpop.eup %4719  ;;  %v3366_v8 = vmul.f32 1.442695, %v3304_v2  ;;  %v2733_v57 = vmax.f32 %v2630_v41, 0.0  ;;  %v2786_v25 = vpack.c.bf16 %v2732_v7, %v2730_v42 }
 0x469   :  { %v7394_v17 = vadd.f32 %v3134_v29, %v3001_v21  ;;  %3464 = vadd.xlane.f32.xlu1 %v7392_v10 }
 0x46a   :  { %4721 = vpow2.f32 %v3366_v8  ;;  %v2787_v15 = vpack.c.bf16 %v2733_v57, %v2731_v49  ;;  %v2736_v8 = vmax.f32 %v2367_v14, 0.0 }
 0x46b   :  { %3246 = vmax.xlane.f32.xlu0 %v7394_v17  ;;  %v2498_v35 = vpop.f32.mrf.mxu2  ;;  %v2632_v30 = vpop.f32.mrf.mxu3 }
 0x46c   :  { %v2499_v19 = vadd.f32 %v2498_v35, %v7063_v22  ;;  %v8178_v35 = vld [vmem:[#allocation52_spill] sm:$0xff] }
 0x46d   :  { %v3137_v9 = vpop.f32.mrf.mxu1  ;;  %v3219_v59 = vpop.xlane.xlu1 %3218 }
 0x46e   :  { %v3305_v32 = vsub.f32 %v7246_v12, %v3219_v59  ;;  %v3003_v56 = vpop.f32.mrf.mxu0  ;;  %v2633_v62 = vadd.f32 %v2632_v30, %v2499_v19 }
 0x46f   :  { %v3004_v39 = vadd.f32 %v7147_v31, %v3003_v56 }
 0x470   :  { %v7401_v1 = vpop.eup %4721  ;;  %v3368_v11 = vmul.f32 1.442695, %v3305_v32  ;;  %3042 = vmatmul.bf16.gmra.mxu0 %v2786_v25  ;;  %3176 = vmatmul.bf16.gmra.mxu1 %v2787_v15  ;;  %v2735_v36 = vmax.f32 %v2633_v62, 0.0  ;;  %v7425_v15 = vld [vmem:[%s7880_s6] ss:$0 sm:$0xff] }
 0x471   :  { %v7403_v5 = vadd.f32 %v3137_v9, %v3004_v39  ;;  %3466 = vadd.xlane.f32.xlu2 %v7401_v1 }
 0x472   :  { %4723 = vpow2.f32 %v3368_v11 }
 0x473   :  { %3248 = vmax.xlane.f32.xlu1 %v7403_v5  ;;  %v2500_v12 = vpop.f32.mrf.mxu2  ;;  %v2634_v60 = vpop.f32.mrf.mxu3 }
 0x474   :  { %v2501_v50 = vadd.f32 %v2500_v12, %v7063_v22 }
 0x475   :  { %v3139_v29 = vpop.f32.mrf.mxu1  ;;  %v3221_v34 = vpop.xlane.xlu2 %3220 }
 0x476   :  { %v2635_v28 = vadd.f32 %v2634_v60, %v2501_v50  ;;  %v3306_v41 = vsub.f32 %v7253_v45, %v3221_v34  ;;  %v3005_v2 = vpop.f32.mrf.mxu0  ;;  %v2734_v45 = vmax.f32 %v8178_v35, 0.0 }
 0x477   :  { %v3006_v37 = vadd.f32 %v7147_v31, %v3005_v2 }
 0x478   :  { %v7414_v44 = vpop.eup %4723  ;;  %v3370_v21 = vmul.f32 1.442695, %v3306_v41  ;;  %v2737_v7 = vmax.f32 %v2635_v28, 0.0  ;;  %v2788_v59 = vpack.c.bf16 %v2736_v8, %v2734_v45 }
 0x479   :  { %v7416_v20 = vadd.f32 %v3139_v29, %v3006_v37  ;;  %3468 = vadd.xlane.f32.xlu0 %v7414_v44 }
 0x47a   :  { %4725 = vpow2.f32 %v3370_v21  ;;  %v2789_v49 = vpack.c.bf16 %v2737_v7, %v2735_v36 }
 0x47b   :  { %3250 = vmax.xlane.f32.xlu2 %v7416_v20  ;;  %v2503_v48 = vpop.f32.mrf.mxu2  ;;  %v2637_v57 = vpop.f32.mrf.mxu3 }
 0x47c   :  { %v2504_v11 = vadd.f32 %v2503_v48, %v7063_v22 }
 0x47d   :  { %v3142_v42 = vpop.f32.mrf.mxu1  ;;  %v3223_v31 = vpop.xlane.xlu0 %3222 }
 0x47e   :  { %v3307_v30 = vsub.f32 %v7263_v51, %v3223_v31  ;;  %v3008_v9 = vpop.f32.mrf.mxu0  ;;  %v2638_v2 = vadd.f32 %v2637_v57, %v2504_v11 }
 0x47f   :  { %v3009_v32 = vadd.f32 %v7425_v15, %v3008_v9 }
 0x480   :  { %v7428_v56 = vpop.eup %4725  ;;  %v3372_v25 = vmul.f32 1.442695, %v3307_v30  ;;  %3047 = vmatmul.bf16.gmra.mxu0 %v2788_v59  ;;  %3181 = vmatmul.bf16.gmra.mxu1 %v2789_v49  ;;  %v2739_v8 = vmax.f32 %v2638_v2, 0.0 }
 0x481   :  { %v7430_v39 = vadd.f32 %v3142_v42, %v3009_v32  ;;  %3470 = vadd.xlane.f32.xlu1 %v7428_v56 }
 0x482   :  { %4727 = vpow2.f32 %v3372_v25 }
 0x483   :  { %3252 = vmax.xlane.f32.xlu0 %v7430_v39  ;;  %v2505_v51 = vpop.f32.mrf.mxu2  ;;  %v2639_v12 = vpop.f32.mrf.mxu3 }
 0x484   :  { %v2506_v18 = vadd.f32 %v2505_v51, %v7063_v22 }
 0x485   :  { %v3443_v60 = vpop.xlane.xlu2 %3442  ;;  %v3144_v19 = vpop.f32.mrf.mxu1 }
 0x486   :  { %v2640_v50 = vadd.f32 %v2639_v12, %v2506_v18  ;;  %4729 = vrcp.f32 %v3443_v60  ;;  %v3225_v29 = vpop.xlane.xlu1 %3224  ;;  %v3010_v34 = vpop.f32.mrf.mxu0  ;;  %v3551_v49 = vand.u32 2147483647, %v3443_v60  ;;  %v3553_v30 = vand.u32 2147483648, %v3443_v60 }
 0x487   :  { %v3308_v14 = vsub.f32 %v7269_v26, %v3225_v29  ;;  %v3011_v28 = vadd.f32 %v7425_v15, %v3010_v34  ;;  %vm3547_vm1 = vweird.f32 %v3443_v60 }
 0x488   :  { %v7438_v41 = vpop.eup %4727  ;;  %v2741_v22 = vmax.f32 %v2640_v50, 0.0  ;;  %v3554_v11 = vor.u32 1.1754944e-38, %v3553_v30  ;;  %vm3552_vm3 = vcmp.eq.f32.partialorder %v3551_v49, 8.507059e+37 }
 0x489   :  { %v3374_v37 = vmul.f32 1.442695, %v3308_v14  ;;  %v7440_v62 = vadd.f32 %v3144_v19, %v3011_v28  ;;  %3472 = vadd.xlane.f32.xlu2 %v7438_v41 }
 0x48a   :  { %v2791_v26 = vpack.c.bf16 %v2741_v22, %v2739_v8 }
 0x48b   :  { %4731 = vpow2.f32 %v3374_v37  ;;  %3254 = vmax.xlane.f32.xlu1 %v7440_v62 }
 0x48c   :  { %v4730_v21 = vpop.eup %4729 }
 0x48d   :  { %v3543_v7 = vmul.f32 %v4730_v21, %v3443_v60  ;;  %v3445_v48 = vpop.xlane.xlu0 %3444  ;;  %v3147_v35 = vpop.f32.mrf.mxu1  ;;  %vm3548_vm0 = vweird.f32 %v4730_v21 }
 0x48e   :  { %4733 = vrcp.f32 %v3445_v48  ;;  %v3227_v45 = vpop.xlane.xlu2 %3226  ;;  %v3013_v36 = vpop.f32.mrf.mxu0  ;;  %vm3549_vm2 = vmor %vm3547_vm1, %vm3548_vm0  ;;  %v3568_v2 = vand.u32 2147483648, %v3445_v48  ;;  %v3566_v8 = vand.u32 2147483647, %v3445_v48  ;;  %vm3562_vm5 = vweird.f32 %v3445_v48 }
 0x48f   :  { %v3544_v42 = vsub.f32 1.0, %v3543_v7  ;;  %v3309_v57 = vsub.f32 %v7282_v61, %v3227_v45  ;;  %v3014_v31 = vadd.f32 %v7425_v15, %v3013_v36 }
 0x490   :  { %3052 = vmatmul.bf16.gmra.mxu0 %v7051_v27  ;;  %3186 = vmatmul.bf16.gmra.mxu1 %v2791_v26  ;;  %v3569_v26 = vor.u32 1.1754944e-38, %v3568_v2  ;;  %vm3567_vm7 = vcmp.eq.f32.partialorder %v3566_v8, 8.507059e+37 }
 0x491   :  { %v7447_v9 = vpop.eup %4731  ;;  %v3545_v59 = vmul.f32 %v4730_v21, %v3544_v42  ;;  %v3376_v32 = vmul.f32 1.442695, %v3309_v57  ;;  %v7449_v25 = vadd.f32 %v3147_v35, %v3014_v31 }
 0x492   :  { %3474 = vadd.xlane.f32.xlu0 %v7447_v9 }
 0x493   :  { %v3546_v51 = vadd.f32 %v4730_v21, %v3545_v59  ;;  %4735 = vpow2.f32 %v3376_v32  ;;  %3256 = vmax.xlane.f32.xlu2 %v7449_v25 }
 0x494   :  { %v4734_v61 = vpop.eup %4733 }
 0x495   :  { %v3550_v18 = vsel %vm3549_vm2, %v4730_v21, %v3546_v51  ;;  %v3558_v27 = vmul.f32 %v4734_v61, %v3445_v48  ;;  %v3447_v12 = vpop.xlane.xlu1 %3446  ;;  %v3149_v19 = vpop.f32.mrf.mxu1  ;;  %vm3563_vm4 = vweird.f32 %v4734_v61 }
 0x496   :  { %v3555_v50 = vsel %vm3552_vm3, %v3554_v11, %v3550_v18  ;;  %4737 = vrcp.f32 %v3447_v12  ;;  %v3229_v29 = vpop.xlane.xlu0 %3228  ;;  %v3015_v34 = vpop.f32.mrf.mxu0  ;;  %vm3564_vm6 = vmor %vm3562_vm5, %vm3563_vm4  ;;  %v3583_v51 = vand.u32 2147483648, %v3447_v12  ;;  %vm3577_vm9 = vweird.f32 %v3447_v12 }
 0x497   :  { %v3556_v14 = vmul.f32 %v7271_v4, %v3555_v50  ;;  %v3559_v28 = vsub.f32 1.0, %v3558_v27  ;;  %v3310_v60 = vsub.f32 %v7291_v58, %v3229_v29  ;;  %v3016_v37 = vadd.f32 %v7425_v15, %v3015_v34 }
 0x498   :  { %v3581_v27 = vand.u32 2147483647, %v3447_v12  ;;  %v3584_v29 = vor.u32 1.1754944e-38, %v3583_v51 }
 0x499   :  { %v7456_v22 = vpop.eup %4735  ;;  %4292 = vst [vmem:[%s7881_s7] sm:$0xff] %v3556_v14  ;;  %v3560_v21 = vmul.f32 %v4734_v61, %v3559_v28  ;;  %v3378_v7 = vmul.f32 1.442695, %v3310_v60  ;;  %v7461_v35 = vadd.f32 %v3149_v19, %v3016_v37 }
 0x49a   :  { %3476 = vadd.xlane.f32.xlu1 %v7456_v22  ;;  %vm3582_vm11 = vcmp.eq.f32.partialorder %v3581_v27, 8.507059e+37 }
 0x49b   :  { %v3561_v4 = vadd.f32 %v4734_v61, %v3560_v21  ;;  %4739 = vpow2.f32 %v3378_v7  ;;  %3258 = vmax.xlane.f32.xlu0 %v7461_v35 }
 0x49c   :  { %v4738_v58 = vpop.eup %4737 }
 0x49d   :  { %v3565_v45 = vsel %vm3564_vm6, %v4734_v61, %v3561_v4  ;;  %v3573_v36 = vmul.f32 %v4738_v58, %v3447_v12  ;;  %v3449_v42 = vpop.xlane.xlu2 %3448  ;;  %v3152_v57 = vpop.f32.mrf.mxu1  ;;  %vm3578_vm8 = vweird.f32 %v4738_v58 }
 0x49e   :  { %v3570_v31 = vsel %vm3567_vm7, %v3569_v26, %v3565_v45  ;;  %4741 = vrcp.f32 %v3449_v42  ;;  %v3231_v49 = vpop.xlane.xlu1 %3230  ;;  %v3018_v30 = vpop.f32.mrf.mxu0  ;;  %vm3579_vm10 = vmor %vm3577_vm9, %vm3578_vm8  ;;  %v3598_v4 = vand.u32 2147483648, %v3449_v42  ;;  %vm3592_vm13 = vweird.f32 %v3449_v42 }
 0x49f   :  { %v3571_v59 = vmul.f32 %v7284_v38, %v3570_v31  ;;  %v3574_v32 = vsub.f32 1.0, %v3573_v36  ;;  %v3311_v48 = vsub.f32 %v7304_v13, %v3231_v49  ;;  %v3019_v11 = vadd.f32 %v7425_v15, %v3018_v30 }
 0x4a0   :  { %v3596_v36 = vand.u32 2147483647, %v3449_v42  ;;  %v3599_v49 = vor.u32 1.1754944e-38, %v3598_v4 }
 0x4a1   :  { %v7468_v18 = vpop.eup %4739  ;;  %4293 = vst [vmem:[%s7881_s7 + $0x8] sm:$0xff] %v3571_v59  ;;  %v3575_v61 = vmul.f32 %v4738_v58, %v3574_v32  ;;  %v3380_v19 = vmul.f32 1.442695, %v3311_v48  ;;  %v7473_v50 = vadd.f32 %v3152_v57, %v3019_v11 }
 0x4a2   :  { %3478 = vadd.xlane.f32.xlu2 %v7468_v18  ;;  %vm3597_vm15 = vcmp.eq.f32.partialorder %v3596_v36, 8.507059e+37 }
 0x4a3   :  { %v3576_v38 = vadd.f32 %v4738_v58, %v3575_v61  ;;  %4743 = vpow2.f32 %v3380_v19  ;;  %3260 = vmax.xlane.f32.xlu1 %v7473_v50 }
 0x4a4   :  { %v4742_v13 = vpop.eup %4741 }
 0x4a5   :  { %v3580_v34 = vsel %vm3579_vm10, %v4738_v58, %v3576_v38  ;;  %v3588_v14 = vmul.f32 %v4742_v13, %v3449_v42  ;;  %v3451_v28 = vpop.xlane.xlu0 %3450  ;;  %v3154_v60 = vpop.f32.mrf.mxu1  ;;  %vm3593_vm12 = vweird.f32 %v4742_v13 }
 0x4a6   :  { %v3585_v2 = vsel %vm3582_vm11, %v3584_v29, %v3580_v34  ;;  %4745 = vrcp.f32 %v3451_v28  ;;  %v3233_v37 = vpop.xlane.xlu2 %3232  ;;  %v3020_v21 = vpop.f32.mrf.mxu0  ;;  %vm3594_vm14 = vmor %vm3592_vm13, %vm3593_vm12  ;;  %v3613_v38 = vand.u32 2147483648, %v3451_v28  ;;  %vm3607_vm1 = vweird.f32 %v3451_v28 }
 0x4a7   :  { %v3586_v8 = vmul.f32 %v7293_v0, %v3585_v2  ;;  %v3589_v7 = vsub.f32 1.0, %v3588_v14  ;;  %v3312_v12 = vsub.f32 %v7313_v40, %v3233_v37  ;;  %v3021_v26 = vadd.f32 %v7425_v15, %v3020_v21 }
 0x4a8   :  { %v3611_v14 = vand.u32 2147483647, %v3451_v28  ;;  %v3614_v37 = vor.u32 1.1754944e-38, %v3613_v38 }
 0x4a9   :  { %v7480_v45 = vpop.eup %4743  ;;  %4294 = vst [vmem:[%s7881_s7 + $0x10] sm:$0xff] %v3586_v8  ;;  %v3590_v58 = vmul.f32 %v4742_v13, %v3589_v7  ;;  %v3382_v57 = vmul.f32 1.442695, %v3312_v12  ;;  %v7485_v31 = vadd.f32 %v3154_v60, %v3021_v26 }
 0x4aa   :  { %3480 = vadd.xlane.f32.xlu0 %v7480_v45  ;;  %vm3612_vm3 = vcmp.eq.f32.partialorder %v3611_v14, 8.507059e+37 }
 0x4ab   :  { %v3591_v0 = vadd.f32 %v4742_v13, %v3590_v58  ;;  %4747 = vpow2.f32 %v3382_v57  ;;  %3262 = vmax.xlane.f32.xlu2 %v7485_v31 }
 0x4ac   :  { %v4746_v40 = vpop.eup %4745 }
 0x4ad   :  { %v3595_v30 = vsel %vm3594_vm14, %v4742_v13, %v3591_v0  ;;  %v3603_v59 = vmul.f32 %v4746_v40, %v3451_v28  ;;  %v3453_v32 = vpop.xlane.xlu1 %3452  ;;  %v3157_v48 = vpop.f32.mrf.mxu1  ;;  %vm3608_vm0 = vweird.f32 %v4746_v40 }
 0x4ae   :  { %v3600_v51 = vsel %vm3597_vm15, %v3599_v49, %v3595_v30  ;;  %4749 = vrcp.f32 %v3453_v32  ;;  %v3235_v11 = vpop.xlane.xlu0 %3234  ;;  %v3023_v61 = vpop.f32.mrf.mxu0  ;;  %vm3609_vm2 = vmor %vm3607_vm1, %vm3608_vm0  ;;  %v3628_v0 = vand.u32 2147483648, %v3453_v32  ;;  %vm3622_vm5 = vweird.f32 %v3453_v32 }
 0x4af   :  { %v3601_v27 = vmul.f32 %v7306_v33, %v3600_v51  ;;  %v3604_v19 = vsub.f32 1.0, %v3603_v59  ;;  %v3313_v42 = vsub.f32 %v7326_v55, %v3235_v11  ;;  %v3024_v29 = vadd.f32 %v7425_v15, %v3023_v61 }
 0x4b0   :  { %v3626_v59 = vand.u32 2147483647, %v3453_v32  ;;  %v3629_v11 = vor.u32 1.1754944e-38, %v3628_v0 }
 0x4b1   :  { %v7492_v34 = vpop.eup %4747  ;;  %4295 = vst [vmem:[%s7881_s7 + $0x18] sm:$0xff] %v3601_v27  ;;  %v3605_v13 = vmul.f32 %v4746_v40, %v3604_v19  ;;  %v3384_v60 = vmul.f32 1.442695, %v3313_v42  ;;  %v7497_v2 = vadd.f32 %v3157_v48, %v3024_v29 }
 0x4b2   :  { %3482 = vadd.xlane.f32.xlu1 %v7492_v34  ;;  %vm3627_vm7 = vcmp.eq.f32.partialorder %v3626_v59, 8.507059e+37 }
 0x4b3   :  { %v3606_v33 = vadd.f32 %v4746_v40, %v3605_v13  ;;  %4751 = vpow2.f32 %v3384_v60  ;;  %3264 = vmax.xlane.f32.xlu0 %v7497_v2 }
 0x4b4   :  { %v4750_v55 = vpop.eup %4749 }
 0x4b5   :  { %v3610_v21 = vsel %vm3609_vm2, %v4746_v40, %v3606_v33  ;;  %v3618_v8 = vmul.f32 %v4750_v55, %v3453_v32  ;;  %v3455_v7 = vpop.xlane.xlu2 %3454  ;;  %v3159_v12 = vpop.f32.mrf.mxu1  ;;  %vm3623_vm4 = vweird.f32 %v4750_v55 }
 0x4b6   :  { %v3615_v4 = vsel %vm3612_vm3, %v3614_v37, %v3610_v21  ;;  %4753 = vrcp.f32 %v3455_v7  ;;  %v3237_v26 = vpop.xlane.xlu1 %3236  ;;  %v3025_v58 = vpop.f32.mrf.mxu0  ;;  %vm3624_vm6 = vmor %vm3622_vm5, %vm3623_vm4  ;;  %v3643_v33 = vand.u32 2147483648, %v3455_v7  ;;  %vm3637_vm9 = vweird.f32 %v3455_v7 }
 0x4b7   :  { %v3616_v36 = vmul.f32 %v7315_v16, %v3615_v4  ;;  %v3619_v57 = vsub.f32 1.0, %v3618_v8  ;;  %v3314_v28 = vsub.f32 %v7335_v6, %v3237_v26  ;;  %v3026_v49 = vadd.f32 %v7425_v15, %v3025_v58 }
 0x4b8   :  { %v3641_v8 = vand.u32 2147483647, %v3455_v7  ;;  %v3644_v26 = vor.u32 1.1754944e-38, %v3643_v33 }
 0x4b9   :  { %v7504_v30 = vpop.eup %4751  ;;  %4296 = vst [vmem:[%s7881_s7 + $0x20] sm:$0xff] %v3616_v36  ;;  %v3620_v40 = vmul.f32 %v4750_v55, %v3619_v57  ;;  %v3386_v48 = vmul.f32 1.442695, %v3314_v28  ;;  %v7509_v51 = vadd.f32 %v3159_v12, %v3026_v49 }
 0x4ba   :  { %3484 = vadd.xlane.f32.xlu2 %v7504_v30  ;;  %vm3642_vm11 = vcmp.eq.f32.partialorder %v3641_v8, 8.507059e+37 }
 0x4bb   :  { %v3621_v16 = vadd.f32 %v4750_v55, %v3620_v40  ;;  %4755 = vpow2.f32 %v3386_v48  ;;  %3266 = vmax.xlane.f32.xlu1 %v7509_v51 }
 0x4bc   :  { %v4754_v6 = vpop.eup %4753 }
 0x4bd   :  { %v3625_v61 = vsel %vm3624_vm6, %v4750_v55, %v3621_v16  ;;  %v3633_v27 = vmul.f32 %v4754_v6, %v3455_v7  ;;  %v3457_v19 = vpop.xlane.xlu0 %3456  ;;  %v3162_v42 = vpop.f32.mrf.mxu1  ;;  %vm3638_vm8 = vweird.f32 %v4754_v6 }
 0x4be   :  { %v3630_v38 = vsel %vm3627_vm7, %v3629_v11, %v3625_v61  ;;  %4757 = vrcp.f32 %v3457_v19  ;;  %v3239_v29 = vpop.xlane.xlu2 %3238  ;;  %v3028_v13 = vpop.f32.mrf.mxu0  ;;  %vm3639_vm10 = vmor %vm3637_vm9, %vm3638_vm8  ;;  %v3658_v16 = vand.u32 2147483648, %v3457_v19  ;;  %vm3652_vm13 = vweird.f32 %v3457_v19 }
 0x4bf   :  { %v3631_v14 = vmul.f32 %v7328_v46, %v3630_v38  ;;  %v3634_v60 = vsub.f32 1.0, %v3633_v27  ;;  %v3315_v32 = vsub.f32 %v7348_v43, %v3239_v29  ;;  %v3029_v37 = vadd.f32 %v7425_v15, %v3028_v13 }
 0x4c0   :  { %v3656_v27 = vand.u32 2147483647, %v3457_v19 }
 0x4c1   :  { %v7516_v21 = vpop.eup %4755  ;;  %4297 = vst [vmem:[%s7881_s7 + $0x28] sm:$0xff] %v3631_v14  ;;  %v3635_v55 = vmul.f32 %v4754_v6, %v3634_v60  ;;  %v3388_v12 = vmul.f32 1.442695, %v3315_v32  ;;  %v7521_v4 = vadd.f32 %v3162_v42, %v3029_v37 }
 0x4c2   :  { %3486 = vadd.xlane.f32.xlu0 %v7516_v21  ;;  %vm3657_vm15 = vcmp.eq.f32.partialorder %v3656_v27, 8.507059e+37 }
 0x4c3   :  { %v3636_v46 = vadd.f32 %v4754_v6, %v3635_v55  ;;  %4759 = vpow2.f32 %v3388_v12  ;;  %3268 = vmax.xlane.f32.xlu2 %v7521_v4 }
 0x4c4   :  { %v4758_v43 = vpop.eup %4757 }
 0x4c5   :  { %v3640_v58 = vsel %vm3639_vm10, %v4754_v6, %v3636_v46  ;;  %v3648_v36 = vmul.f32 %v4758_v43, %v3457_v19  ;;  %v3459_v57 = vpop.xlane.xlu1 %3458  ;;  %v3164_v28 = vpop.f32.mrf.mxu1  ;;  %vm3653_vm12 = vweird.f32 %v4758_v43 }
 0x4c6   :  { %v3645_v0 = vsel %vm3642_vm11, %v3644_v26, %v3640_v58  ;;  %4761 = vrcp.f32 %v3459_v57  ;;  %v3030_v49 = vpop.f32.mrf.mxu0  ;;  %v3241_v40 = vpop.xlane.xlu0 %3240  ;;  %vm3654_vm14 = vmor %vm3652_vm13, %vm3653_vm12  ;;  %v3671_v26 = vand.u32 2147483647, %v3459_v57  ;;  %v3673_v58 = vand.u32 2147483648, %v3459_v57 }
 0x4c7   :  { %v3646_v59 = vmul.f32 %v7337_v63, %v3645_v0  ;;  %v3649_v48 = vsub.f32 1.0, %v3648_v36  ;;  %v3031_v7 = vadd.f32 %v7425_v15, %v3030_v49  ;;  %v3316_v11 = vsub.f32 %v7359_v23, %v3241_v40 }
 0x4c8   :  { %v3659_v23 = vor.u32 1.1754944e-38, %v3658_v16  ;;  %vm3667_vm1 = vweird.f32 %v3459_v57  ;;  %vm3672_vm3 = vcmp.eq.f32.partialorder %v3671_v26, 8.507059e+37 }
 0x4c9   :  { %v7528_v61 = vpop.eup %4759  ;;  %4298 = vst [vmem:[%s7881_s7 + $0x30] sm:$0xff] %v3646_v59  ;;  %v3650_v6 = vmul.f32 %v4758_v43, %v3649_v48  ;;  %v7533_v42 = vadd.f32 %v3164_v28, %v3031_v7  ;;  %v3390_v38 = vmul.f32 1.442695, %v3316_v11 }
 0x4ca   :  { %3488 = vadd.xlane.f32.xlu1 %v7528_v61 }
 0x4cb   :  { %v3651_v63 = vadd.f32 %v4758_v43, %v3650_v6  ;;  %3270 = vmax.xlane.f32.xlu0 %v7533_v42  ;;  %4763 = vpow2.f32 %v3390_v38 }
 0x4cc   :  { %v4762_v29 = vpop.eup %4761  ;;  %v3461_v13 = vpop.xlane.xlu2 %3460 }
 0x4cd   :  { %v3655_v14 = vsel %vm3654_vm14, %v4758_v43, %v3651_v63  ;;  %v3663_v60 = vmul.f32 %v4762_v29, %v3459_v57  ;;  %4765 = vrcp.f32 %v3461_v13  ;;  %v3167_v32 = vpop.f32.mrf.mxu1  ;;  %vm3668_vm0 = vweird.f32 %v4762_v29 }
 0x4ce   :  { %v3660_v33 = vsel %vm3657_vm15, %v3659_v23, %v3655_v14  ;;  %v3033_v37 = vpop.f32.mrf.mxu0  ;;  %v3243_v55 = vpop.xlane.xlu1 %3242  ;;  %vm3669_vm2 = vmor %vm3667_vm1, %vm3668_vm0  ;;  %v3688_v57 = vand.u32 2147483648, %v3461_v13  ;;  %vm3682_vm5 = vweird.f32 %v3461_v13 }
 0x4cf   :  { %v3661_v8 = vmul.f32 %v7350_v52, %v3660_v33  ;;  %v3664_v12 = vsub.f32 1.0, %v3663_v60  ;;  %v3034_v19 = vadd.f32 %v7425_v15, %v3033_v37  ;;  %v3317_v46 = vsub.f32 %v7372_v3, %v3243_v55 }
 0x4d0   :  { %v3674_v3 = vor.u32 1.1754944e-38, %v3673_v58  ;;  %v3686_v60 = vand.u32 2147483647, %v3461_v13  ;;  %v3689_v55 = vor.u32 1.1754944e-38, %v3688_v57 }
 0x4d1   :  { %4299 = vst [vmem:[%s7881_s7 + $0x38] sm:$0xff] %v3661_v8  ;;  %v3665_v43 = vmul.f32 %v4762_v29, %v3664_v12  ;;  %v7543_v36 = vadd.f32 %v3167_v32, %v3034_v19  ;;  %v3392_v28 = vmul.f32 1.442695, %v3317_v46  ;;  %v7545_v0 = vpop.eup %4763 }
 0x4d2   :  { %3490 = vadd.xlane.f32.xlu2 %v7545_v0  ;;  %vm3687_vm7 = vcmp.eq.f32.partialorder %v3686_v60, 8.507059e+37 }
 0x4d3   :  { %v4766_v49 = vpop.eup %4765  ;;  %v3666_v52 = vadd.f32 %v4762_v29, %v3665_v43  ;;  %4767 = vpow2.f32 %v3392_v28  ;;  %3272 = vmax.xlane.f32.xlu1 %v7543_v36 }
 0x4d4   :  { %v3678_v40 = vmul.f32 %v4766_v49, %v3461_v13  ;;  %v3463_v59 = vpop.xlane.xlu0 %3462  ;;  %vm3683_vm4 = vweird.f32 %v4766_v49 }
 0x4d5   :  { %v3670_v48 = vsel %vm3669_vm2, %v4762_v29, %v3666_v52  ;;  %4769 = vrcp.f32 %v3463_v59  ;;  %v3169_v7 = vpop.f32.mrf.mxu1  ;;  %vm3684_vm6 = vmor %vm3682_vm5, %vm3683_vm4  ;;  %v3703_v28 = vand.u32 2147483648, %v3463_v59  ;;  %vm3697_vm9 = vweird.f32 %v3463_v59 }
 0x4d6   :  { %v3675_v16 = vsel %vm3672_vm3, %v3674_v3, %v3670_v48  ;;  %v3679_v11 = vsub.f32 1.0, %v3678_v40  ;;  %v3035_v6 = vpop.f32.mrf.mxu0  ;;  %v3245_v27 = vpop.xlane.xlu2 %3244  ;;  %v3701_v40 = vand.u32 2147483647, %v3463_v59 }
 0x4d7   :  { %v3676_v38 = vmul.f32 %v7357_v24, %v3675_v16  ;;  %v3036_v63 = vadd.f32 %v7425_v15, %v3035_v6  ;;  %v3318_v23 = vsub.f32 %v7381_v53, %v3245_v27  ;;  %v3704_v6 = vor.u32 1.1754944e-38, %v3703_v28 }
 0x4d8   :  { %v3680_v14 = vmul.f32 %v4766_v49, %v3679_v11  ;;  %vm3702_vm11 = vcmp.eq.f32.partialorder %v3701_v40, 8.507059e+37 }
 0x4d9   :  { %v7552_v32 = vpop.eup %4767  ;;  %4300 = vst [vmem:[%s7881_s7 + $0x40] sm:$0xff] %v3676_v38  ;;  %v7557_v29 = vadd.f32 %v3169_v7, %v3036_v63  ;;  %v3394_v33 = vmul.f32 1.442695, %v3318_v23 }
 0x4da   :  { %v3681_v37 = vadd.f32 %v4766_v49, %v3680_v14  ;;  %3492 = vadd.xlane.f32.xlu0 %v7552_v32 }
 0x4db   :  { %v4770_v24 = vpop.eup %4769  ;;  %4771 = vpow2.f32 %v3394_v33  ;;  %3274 = vmax.xlane.f32.xlu2 %v7557_v29 }
 0x4dc   :  { %v3685_v53 = vsel %vm3684_vm6, %v4766_v49, %v3681_v37  ;;  %v3693_v8 = vmul.f32 %v4770_v24, %v3463_v59  ;;  %v3465_v12 = vpop.xlane.xlu1 %3464  ;;  %vm3698_vm8 = vweird.f32 %v4770_v24 }
 0x4dd   :  { %v3690_v19 = vsel %vm3687_vm7, %v3689_v55, %v3685_v53  ;;  %4773 = vrcp.f32 %v3465_v12  ;;  %v3172_v46 = vpop.f32.mrf.mxu1  ;;  %vm3699_vm10 = vmor %vm3697_vm9, %vm3698_vm8  ;;  %v3718_v33 = vand.u32 2147483648, %v3465_v12  ;;  %v3716_v53 = vand.u32 2147483647, %v3465_v12 }
 0x4de   :  { %v3691_v26 = vmul.f32 %v7370_v47, %v3690_v19  ;;  %v3694_v58 = vsub.f32 1.0, %v3693_v8  ;;  %v3038_v43 = vpop.f32.mrf.mxu0  ;;  %v3247_v13 = vpop.xlane.xlu0 %3246  ;;  %vm3712_vm13 = vweird.f32 %v3465_v12 }
 0x4df   :  { %v3039_v52 = vadd.f32 %v7425_v15, %v3038_v43  ;;  %v3319_v3 = vsub.f32 %v7394_v17, %v3247_v13  ;;  %vm3717_vm15 = vcmp.eq.f32.partialorder %v3716_v53, 8.507059e+37 }
 0x4e0   :  { %4301 = vst [vmem:[%s7881_s7 + $0x48] sm:$0xff] %v3691_v26  ;;  %v3695_v49 = vmul.f32 %v4770_v24, %v3694_v58  ;;  %v3719_v58 = vor.u32 1.1754944e-38, %v3718_v33 }
 0x4e1   :  { %v7567_v48 = vpop.eup %4771  ;;  %v7569_v7 = vadd.f32 %v3172_v46, %v3039_v52  ;;  %v3396_v47 = vmul.f32 1.442695, %v3319_v3 }
 0x4e2   :  { %v3696_v16 = vadd.f32 %v4770_v24, %v3695_v49  ;;  %3494 = vadd.xlane.f32.xlu1 %v7567_v48 }
 0x4e3   :  { %v4774_v11 = vpop.eup %4773  ;;  %4775 = vpow2.f32 %v3396_v47  ;;  %3276 = vmax.xlane.f32.xlu0 %v7569_v7 }
 0x4e4   :  { %v3700_v17 = vsel %vm3699_vm10, %v4770_v24, %v3696_v16  ;;  %v3708_v27 = vmul.f32 %v4774_v11, %v3465_v12  ;;  %v3467_v38 = vpop.xlane.xlu2 %3466  ;;  %vm3713_vm12 = vweird.f32 %v4774_v11 }
 0x4e5   :  { %v3705_v57 = vsel %vm3702_vm11, %v3704_v6, %v3700_v17  ;;  %4777 = vrcp.f32 %v3467_v38  ;;  %v3174_v63 = vpop.f32.mrf.mxu1  ;;  %vm3714_vm14 = vmor %vm3712_vm13, %vm3713_vm12  ;;  %v3733_v12 = vand.u32 2147483648, %v3467_v38  ;;  %vm3727_vm1 = vweird.f32 %v3467_v38 }
 0x4e6   :  { %v3706_v23 = vmul.f32 %v7379_v54, %v3705_v57  ;;  %v3709_v14 = vsub.f32 1.0, %v3708_v27  ;;  %v3040_v60 = vpop.f32.mrf.mxu0  ;;  %v3249_v59 = vpop.xlane.xlu1 %3248 }
 0x4e7   :  { %v3041_v37 = vadd.f32 %v7425_v15, %v3040_v60  ;;  %v3320_v55 = vsub.f32 %v7403_v5, %v3249_v59  ;;  %v3734_v57 = vor.u32 1.1754944e-38, %v3733_v12 }
 0x4e8   :  { %4302 = vst [vmem:[%s7881_s7 + $0x50] sm:$0xff] %v3706_v23  ;;  %v3710_v24 = vmul.f32 %v4774_v11, %v3709_v14 }
 0x4e9   :  { %v7579_v8 = vpop.eup %4775  ;;  %v7581_v19 = vadd.f32 %v3174_v63, %v3041_v37  ;;  %v3398_v54 = vmul.f32 1.442695, %v3320_v55 }
 0x4ea   :  { %v3711_v46 = vadd.f32 %v4774_v11, %v3710_v24  ;;  %3496 = vadd.xlane.f32.xlu2 %v7579_v8 }
 0x4eb   :  { %v4778_v26 = vpop.eup %4777  ;;  %4779 = vpow2.f32 %v3398_v54  ;;  %3278 = vmax.xlane.f32.xlu1 %v7581_v19 }
 0x4ec   :  { %v3715_v5 = vsel %vm3714_vm14, %v4774_v11, %v3711_v46  ;;  %v3723_v43 = vmul.f32 %v4778_v26, %v3467_v38  ;;  %v3469_v13 = vpop.xlane.xlu0 %3468  ;;  %vm3728_vm0 = vweird.f32 %v4778_v26  ;;  %v3731_v11 = vand.u32 2147483647, %v3467_v38 }
 0x4ed   :  { %v3720_v28 = vsel %vm3717_vm15, %v3719_v58, %v3715_v5  ;;  %4781 = vrcp.f32 %v3469_v13  ;;  %v3177_v52 = vpop.f32.mrf.mxu1  ;;  %vm3729_vm2 = vmor %vm3727_vm1, %vm3728_vm0  ;;  %v3748_v24 = vand.u32 2147483648, %v3469_v13  ;;  %v3746_v46 = vand.u32 2147483647, %v3469_v13 }
 0x4ee   :  { %v3721_v3 = vmul.f32 %v7392_v10, %v3720_v28  ;;  %v3724_v49 = vsub.f32 1.0, %v3723_v43  ;;  %v3043_v40 = vpop.f32.mrf.mxu0  ;;  %vm3732_vm3 = vcmp.eq.f32.partialorder %v3731_v11, 8.507059e+37  ;;  %v7596_v14 = vpop.xlane.xlu2 %3250  ;;  %vm3742_vm5 = vweird.f32 %v3469_v13 }
 0x4ef   :  { %v3044_v47 = vadd.f32 %v7425_v15, %v3043_v40  ;;  %v3749_v43 = vor.u32 1.1754944e-38, %v3748_v24  ;;  %vm3747_vm7 = vcmp.eq.f32.partialorder %v3746_v46, 8.507059e+37 }
 0x4f0   :  { %4303 = vst [vmem:[%s7881_s7 + $0x58] sm:$0xff] %v3721_v3  ;;  %v3725_v16 = vmul.f32 %v4778_v26, %v3724_v49 }
 0x4f1   :  { %v7590_v6 = vpop.eup %4779  ;;  %v7592_v17 = vadd.f32 %v3177_v52, %v3044_v47 }
 0x4f2   :  { %v3726_v27 = vadd.f32 %v4778_v26, %v3725_v16  ;;  %3498 = vadd.xlane.f32.xlu0 %v7590_v6 }
 0x4f3   :  { %v4782_v10 = vpop.eup %4781  ;;  %3280 = vmax.xlane.f32.xlu2 %v7592_v17 }
 0x4f4   :  { %v3730_v63 = vsel %vm3729_vm2, %v4778_v26, %v3726_v27  ;;  %v3738_v23 = vmul.f32 %v4782_v10, %v3469_v13  ;;  %v3471_v60 = vpop.xlane.xlu1 %3470  ;;  %vm3743_vm4 = vweird.f32 %v4782_v10 }
 0x4f5   :  { %v3735_v59 = vsel %vm3732_vm3, %v3734_v57, %v3730_v63  ;;  %4783 = vrcp.f32 %v3471_v60  ;;  %v3179_v33 = vpop.f32.mrf.mxu1  ;;  %vm3744_vm6 = vmor %vm3742_vm5, %vm3743_vm4  ;;  %v3763_v11 = vand.u32 2147483648, %v3471_v60  ;;  %vm3757_vm9 = vweird.f32 %v3471_v60 }
 0x4f6   :  { %v3736_v37 = vmul.f32 %v7401_v1, %v3735_v59  ;;  %v3739_v55 = vsub.f32 1.0, %v3738_v23  ;;  %v3045_v38 = vpop.f32.mrf.mxu0  ;;  %v3253_v49 = vpop.xlane.xlu0 %3252 }
 0x4f7   :  { %v3046_v53 = vadd.f32 %v7425_v15, %v3045_v38  ;;  %v3764_v59 = vor.u32 1.1754944e-38, %v3763_v11 }
 0x4f8   :  { %4304 = vst [vmem:[%s7881_s7 + $0x60] sm:$0xff] %v3736_v37  ;;  %v3740_v54 = vmul.f32 %v4782_v10, %v3739_v55 }
 0x4f9   :  { %v7603_v26 = vadd.f32 %v3179_v33, %v3046_v53  ;;  %v3322_v33 = vsub.f32 %v7430_v39, %v3253_v49 }
 0x4fa   :  { %v3741_v58 = vadd.f32 %v4782_v10, %v3740_v54 }
 0x4fb   :  { %v4784_v5 = vpop.eup %4783  ;;  %3282 = vmax.xlane.f32.xlu0 %v7603_v26 }
 0x4fc   :  { %v3745_v1 = vsel %vm3744_vm6, %v4782_v10, %v3741_v58  ;;  %v3753_v28 = vmul.f32 %v4784_v5, %v3471_v60  ;;  %v3473_v52 = vpop.xlane.xlu2 %3472  ;;  %vm3758_vm8 = vweird.f32 %v4784_v5  ;;  %v3761_v10 = vand.u32 2147483647, %v3471_v60 }
 0x4fd   :  { %v3750_v3 = vsel %vm3747_vm7, %v3749_v43, %v3745_v1  ;;  %4785 = vrcp.f32 %v3473_v52  ;;  %v3182_v40 = vpop.f32.mrf.mxu1  ;;  %vm3759_vm10 = vmor %vm3757_vm9, %vm3758_vm8  ;;  %v3778_v60 = vand.u32 2147483648, %v3473_v52  ;;  %v3776_v39 = vand.u32 2147483647, %v3473_v52 }
 0x4fe   :  { %v3751_v12 = vmul.f32 %v7414_v44, %v3750_v3  ;;  %v3754_v47 = vsub.f32 1.0, %v3753_v28  ;;  %v3048_v16 = vpop.f32.mrf.mxu0  ;;  %vm3762_vm11 = vcmp.eq.f32.partialorder %v3761_v10, 8.507059e+37  ;;  %v3255_v55 = vpop.xlane.xlu1 %3254  ;;  %vm3772_vm13 = vweird.f32 %v3473_v52 }
 0x4ff   :  { %v3049_v13 = vadd.f32 %v7425_v15, %v3048_v16  ;;  %v3323_v49 = vsub.f32 %v7440_v62, %v3255_v55  ;;  %vm3777_vm15 = vcmp.eq.f32.partialorder %v3776_v39, 8.507059e+37  ;;  %v4936_v39 = vld [vmem:[%s7880_s6] ss:$0 sm:$0xff] }
 0x500   :  { %4305 = vst [vmem:[%s7881_s7 + $0x68] sm:$0xff] %v3751_v12  ;;  %v3755_v27 = vmul.f32 %v4784_v5, %v3754_v47 }
 0x501   :  { %v7611_v57 = vadd.f32 %v3182_v40, %v3049_v13 }
 0x502   :  { %v3756_v63 = vadd.f32 %v4784_v5, %v3755_v27 }
 0x503   :  { %v4786_v23 = vpop.eup %4785  ;;  %3284 = vmax.xlane.f32.xlu1 %v7611_v57 }
 0x504   :  { %v3760_v44 = vsel %vm3759_vm10, %v4784_v5, %v3756_v63  ;;  %v3768_v37 = vmul.f32 %v4786_v23, %v3473_v52  ;;  %v3402_v5 = vmul.f32 1.442695, %v3322_v33  ;;  %vm3773_vm12 = vweird.f32 %v4786_v23 }
 0x505   :  { %v3765_v38 = vsel %vm3762_vm11, %v3764_v59, %v3760_v44  ;;  %v3475_v24 = vpop.xlane.xlu0 %3474  ;;  %v3184_v53 = vpop.f32.mrf.mxu1  ;;  %vm3774_vm14 = vmor %vm3772_vm13, %vm3773_vm12  ;;  %v3404_v63 = vmul.f32 1.442695, %v3323_v49 }
 0x506   :  { %v3766_v54 = vmul.f32 %v7428_v56, %v3765_v38  ;;  %v3769_v46 = vsub.f32 1.0, %v3768_v37  ;;  %4787 = vrcp.f32 %v3475_v24  ;;  %v3050_v58 = vpop.f32.mrf.mxu0  ;;  %v3779_v56 = vor.u32 1.1754944e-38, %v3778_v60  ;;  %v7624_v11 = vpop.xlane.xlu2 %3256 }
 0x507   :  { %v3051_v43 = vadd.f32 %v7425_v15, %v3050_v58  ;;  %4789 = vpow2.f32 %v3402_v5  ;;  %v3791_v55 = vand.u32 2147483647, %v3475_v24  ;;  %vm3787_vm1 = vweird.f32 %v3475_v24 }
 0x508   :  { %4306 = vst [vmem:[%s7881_s7 + $0x70] sm:$0xff] %v3766_v54  ;;  %v3770_v1 = vmul.f32 %v4786_v23, %v3769_v46  ;;  %v3321_v54 = vsub.f32 %v7416_v20, %v7596_v14 }
 0x509   :  { %v7620_v28 = vadd.f32 %v3184_v53, %v3051_v43  ;;  %vm3792_vm3 = vcmp.eq.f32.partialorder %v3791_v55, 8.507059e+37 }
 0x50a   :  { %v3771_v3 = vadd.f32 %v4786_v23, %v3770_v1  ;;  %v3400_v20 = vmul.f32 1.442695, %v3321_v54 }
 0x50b   :  { %3286 = vmax.xlane.f32.xlu2 %v7620_v28 }
 0x50c   :  { %v4788_v40 = vpop.eup %4787  ;;  %v3775_v12 = vsel %vm3774_vm14, %v4786_v23, %v3771_v3  ;;  %v3793_v23 = vand.u32 2147483648, %v3475_v24 }
 0x50d   :  { %v3780_v47 = vsel %vm3777_vm15, %v3779_v56, %v3775_v12  ;;  %v3783_v16 = vmul.f32 %v4788_v40, %v3475_v24  ;;  %v7626_v13 = vpop.xlane.xlu1 %3476  ;;  %v3187_v10 = vpop.f32.mrf.mxu1  ;;  %vm3788_vm0 = vweird.f32 %v4788_v40 }
 0x50e   :  { %v3781_v27 = vmul.f32 %v7438_v41, %v3780_v47  ;;  %4791 = vrcp.f32 %v7626_v13  ;;  %v3053_v52 = vpop.f32.mrf.mxu0  ;;  %v3259_v44 = vpop.xlane.xlu0 %3258  ;;  %vm3789_vm2 = vmor %vm3787_vm1, %vm3788_vm0  ;;  %v3808_v49 = vand.u32 2147483648, %v7626_v13  ;;  %vm3802_vm5 = vweird.f32 %v7626_v13 }
 0x50f   :  { %v3784_v62 = vsub.f32 1.0, %v3783_v16  ;;  %v3054_v59 = vadd.f32 %v7425_v15, %v3053_v52  ;;  %v3325_v33 = vsub.f32 %v7461_v35, %v3259_v44  ;;  %v7637_v38 = vpop.eup %4789  ;;  %4793 = vpow2.f32 %v3404_v63 }
 0x510   :  { %4307 = vst [vmem:[%s7881_s7 + $0x78] sm:$0xff] %v3781_v27  ;;  %v3794_v35 = vor.u32 1.1754944e-38, %v3793_v23 }
 0x511   :  { %v3785_v37 = vmul.f32 %v4788_v40, %v3784_v62  ;;  %v7635_v41 = vadd.f32 %v3187_v10, %v3054_v59  ;;  %v3408_v53 = vmul.f32 1.442695, %v3325_v33  ;;  %v3324_v62 = vsub.f32 %v7449_v25, %v7624_v11 }
 0x512   :  { %v3809_v59 = vor.u32 1.1754944e-38, %v3808_v49 }
 0x513   :  { %v3786_v15 = vadd.f32 %v4788_v40, %v3785_v37  ;;  %3288 = vmax.xlane.f32.xlu0 %v7635_v41  ;;  %3502 = vadd.xlane.f32.xlu2 %v7637_v38  ;;  %4795 = vpow2.f32 %v3408_v53  ;;  %v3406_v53 = vmul.f32 1.442695, %v3324_v62 }
 0x514   :  { %v4792_v46 = vpop.eup %4791 }
 0x515   :  { %v3790_v58 = vsel %vm3789_vm2, %v4788_v40, %v3786_v15  ;;  %v3798_v60 = vmul.f32 %v4792_v46, %v7626_v13  ;;  %v3479_v43 = vpop.xlane.xlu2 %3478  ;;  %v3189_v40 = vpop.f32.mrf.mxu1  ;;  %vm3803_vm4 = vweird.f32 %v4792_v46 }
 0x516   :  { %v3795_v5 = vsel %vm3792_vm3, %v3794_v35, %v3790_v58  ;;  %4797 = vrcp.f32 %v3479_v43  ;;  %v3055_v1 = vpop.f32.mrf.mxu0  ;;  %v3261_v56 = vpop.xlane.xlu1 %3260  ;;  %vm3804_vm6 = vmor %vm3802_vm5, %vm3803_vm4  ;;  %v3823_v54 = vand.u32 2147483648, %v3479_v43  ;;  %v3821_v11 = vand.u32 2147483647, %v3479_v43 }
 0x517   :  { %v3796_v14 = vmul.f32 %v7447_v9, %v3795_v5  ;;  %v3799_v24 = vsub.f32 1.0, %v3798_v60  ;;  %v3056_v3 = vadd.f32 %v4936_v39, %v3055_v1  ;;  %v3326_v12 = vsub.f32 %v7473_v50, %v3261_v56  ;;  %v7650_v47 = vpop.eup %4793 }
 0x518   :  { %v3806_v9 = vand.u32 2147483647, %v7626_v13  ;;  %4799 = vpow2.f32 %v3400_v20  ;;  %vm3817_vm9 = vweird.f32 %v3479_v43  ;;  %v3824_v5 = vor.u32 1.1754944e-38, %v3823_v54 }
 0x519   :  { %4308 = vst [vmem:[%s7881_s7 + $0x80] sm:$0xff] %v3796_v14  ;;  %v3800_v16 = vmul.f32 %v4792_v46, %v3799_v24  ;;  %v7656_v27 = vadd.f32 %v3189_v40, %v3056_v3  ;;  %v7658_v52 = vpop.eup %4795  ;;  %v3410_v10 = vmul.f32 1.442695, %v3326_v12  ;;  %vm3822_vm11 = vcmp.eq.f32.partialorder %v3821_v11, 8.507059e+37 }
 0x51a   :  { %vm3807_vm7 = vcmp.eq.f32.partialorder %v3806_v9, 8.507059e+37 }
 0x51b   :  { %v3801_v63 = vadd.f32 %v4792_v46, %v3800_v16  ;;  %3290 = vmax.xlane.f32.xlu1 %v7656_v27  ;;  %3504 = vadd.xlane.f32.xlu0 %v7650_v47  ;;  %4801 = vpow2.f32 %v3410_v10 }
 0x51c   :  { %v4798_v50 = vpop.eup %4797  ;;  %3508 = vadd.xlane.f32.xlu2 %v7658_v52 }
 0x51d   :  { %v3805_v44 = vsel %vm3804_vm6, %v4792_v46, %v3801_v63  ;;  %v3813_v23 = vmul.f32 %v4798_v50, %v3479_v43  ;;  %v3481_v33 = vpop.xlane.xlu0 %3480  ;;  %vm3818_vm8 = vweird.f32 %v4798_v50 }
 0x51e   :  { %v3810_v37 = vsel %vm3807_vm7, %v3809_v59, %v3805_v44  ;;  %4803 = vrcp.f32 %v3481_v33  ;;  %v3263_v15 = vpop.xlane.xlu2 %3262  ;;  %v7667_v35 = vpop.eup %4799  ;;  %vm3819_vm10 = vmor %vm3817_vm9, %vm3818_vm8  ;;  %v3836_v12 = vand.u32 2147483647, %v3481_v33  ;;  %vm3832_vm13 = vweird.f32 %v3481_v33 }
 0x51f   :  { %v3811_v13 = vmul.f32 %v7456_v22, %v3810_v37  ;;  %v3814_v55 = vsub.f32 1.0, %v3813_v23  ;;  %v3327_v60 = vsub.f32 %v7485_v31, %v3263_v15  ;;  %4805 = vpow2.f32 %v3406_v53 }
 0x520   :  { %v3838_v31 = vand.u32 2147483648, %v3481_v33  ;;  %vm3837_vm15 = vcmp.eq.f32.partialorder %v3836_v12, 8.507059e+37 }
 0x521   :  { %4309 = vst [vmem:[%s7881_s7 + $0x88] sm:$0xff] %v3811_v13  ;;  %v3815_v25 = vmul.f32 %v4798_v50, %v3814_v55  ;;  %v7672_v46 = vpop.eup %4801  ;;  %v3412_v43 = vmul.f32 1.442695, %v3327_v60 }
 0x522   :  { %v3839_v63 = vor.u32 1.1754944e-38, %v3838_v31 }
 0x523   :  { %v3816_v58 = vadd.f32 %v4798_v50, %v3815_v25  ;;  %3500 = vadd.xlane.f32.xlu1 %v7667_v35  ;;  %3510 = vadd.xlane.f32.xlu0 %v7672_v46 }
 0x524   :  { %v4804_v22 = vpop.eup %4803 }
 0x525   :  { %v3820_v1 = vsel %vm3819_vm10, %v4798_v50, %v3816_v58  ;;  %v3828_v20 = vmul.f32 %v4804_v22, %v3481_v33  ;;  %v3483_v14 = vpop.xlane.xlu1 %3482  ;;  %vm3833_vm12 = vweird.f32 %v4804_v22  ;;  %v7682_v16 = vpop.eup %4805 }
 0x526   :  { %v3825_v24 = vsel %vm3822_vm11, %v3824_v5, %v3820_v1  ;;  %4807 = vrcp.f32 %v3483_v14  ;;  %v3265_v56 = vpop.xlane.xlu0 %3264  ;;  %vm3834_vm14 = vmor %vm3832_vm13, %vm3833_vm12  ;;  %v3853_v13 = vand.u32 2147483648, %v3483_v14  ;;  %v3851_v54 = vand.u32 2147483647, %v3483_v14 }
 0x527   :  { %v3826_v39 = vmul.f32 %v7468_v18, %v3825_v24  ;;  %v3829_v3 = vsub.f32 1.0, %v3828_v20  ;;  %v3328_v49 = vsub.f32 %v7497_v2, %v3265_v56  ;;  %4809 = vpow2.f32 %v3412_v43 }
 0x528   :  { %vm3847_vm1 = vweird.f32 %v3483_v14  ;;  %vm3852_vm3 = vcmp.eq.f32.partialorder %v3851_v54, 8.507059e+37 }
 0x529   :  { %4310 = vst [vmem:[%s7881_s7 + $0x90] sm:$0xff] %v3826_v39  ;;  %v3830_v40 = vmul.f32 %v4804_v22, %v3829_v3  ;;  %v3414_v9 = vmul.f32 1.442695, %v3328_v49 }
 0x52b   :  { %v3831_v10 = vadd.f32 %v4804_v22, %v3830_v40  ;;  %3506 = vadd.xlane.f32.xlu1 %v7682_v16  ;;  %4811 = vpow2.f32 %v3414_v9 }
 0x52c   :  { %v4808_v18 = vpop.eup %4807 }
 0x52d   :  { %v3835_v2 = vsel %vm3834_vm14, %v4804_v22, %v3831_v10  ;;  %v3843_v50 = vmul.f32 %v4808_v18, %v3483_v14  ;;  %v3485_v62 = vpop.xlane.xlu2 %3484  ;;  %v7687_v55 = vpop.eup %4809  ;;  %vm3848_vm0 = vweird.f32 %v4808_v18 }
 0x52e   :  { %v3840_v59 = vsel %vm3837_vm15, %v3839_v63, %v3835_v2  ;;  %4813 = vrcp.f32 %v3485_v62  ;;  %v3267_v37 = vpop.xlane.xlu1 %3266  ;;  %vm3849_vm2 = vmor %vm3847_vm1, %vm3848_vm0  ;;  %v3868_v39 = vand.u32 2147483648, %v3485_v62  ;;  %v3866_v43 = vand.u32 2147483647, %v3485_v62 }
 0x52f   :  { %v3841_v44 = vmul.f32 %v7480_v45, %v3840_v59  ;;  %v3844_v23 = vsub.f32 1.0, %v3843_v50  ;;  %v3329_v33 = vsub.f32 %v7509_v51, %v3267_v37  ;;  %v3854_v51 = vor.u32 1.1754944e-38, %v3853_v13 }
 0x530   :  { %vm3862_vm5 = vweird.f32 %v3485_v62  ;;  %v3869_v40 = vor.u32 1.1754944e-38, %v3868_v39  ;;  %vm3867_vm7 = vcmp.eq.f32.partialorder %v3866_v43, 8.507059e+37 }
 0x531   :  { %4311 = vst [vmem:[%s7881_s7 + $0x98] sm:$0xff] %v3841_v44  ;;  %v3845_v53 = vmul.f32 %v4808_v18, %v3844_v23  ;;  %v7692_v15 = vpop.eup %4811  ;;  %v3416_v25 = vmul.f32 1.442695, %v3329_v33 }
 0x532   :  { %3514 = vadd.xlane.f32.xlu2 %v7692_v15 }
 0x533   :  { %v3846_v11 = vadd.f32 %v4808_v18, %v3845_v53  ;;  %3512 = vadd.xlane.f32.xlu1 %v7687_v55  ;;  %4815 = vpow2.f32 %v3416_v25 }
 0x534   :  { %v4814_v45 = vpop.eup %4813 }
 0x535   :  { %v3850_v58 = vsel %vm3849_vm2, %v4808_v18, %v3846_v11  ;;  %v3858_v60 = vmul.f32 %v4814_v45, %v3485_v62  ;;  %v3487_v22 = vpop.xlane.xlu0 %3486  ;;  %vm3863_vm4 = vweird.f32 %v4814_v45 }
 0x536   :  { %v3855_v5 = vsel %vm3852_vm3, %v3854_v51, %v3850_v58  ;;  %4817 = vrcp.f32 %v3487_v22  ;;  %v3269_v24 = vpop.xlane.xlu2 %3268  ;;  %vm3864_vm6 = vmor %vm3862_vm5, %vm3863_vm4  ;;  %v3883_v59 = vand.u32 2147483648, %v3487_v22  ;;  %v3881_v44 = vand.u32 2147483647, %v3487_v22 }
 0x537   :  { %v3856_v1 = vmul.f32 %v7492_v34, %v3855_v5  ;;  %v3859_v20 = vsub.f32 1.0, %v3858_v60  ;;  %v3330_v14 = vsub.f32 %v7521_v4, %v3269_v24  ;;  %vm3877_vm9 = vweird.f32 %v3487_v22 }
 0x538   :  { %v3884_v33 = vor.u32 1.1754944e-38, %v3883_v59  ;;  %vm3882_vm11 = vcmp.eq.f32.partialorder %v3881_v44, 8.507059e+37 }
 0x539   :  { %4312 = vst [vmem:[%s7881_s7 + $0xa0] sm:$0xff] %v3856_v1  ;;  %v3860_v3 = vmul.f32 %v4814_v45, %v3859_v20  ;;  %v7701_v56 = vpop.eup %4815  ;;  %v3418_v31 = vmul.f32 1.442695, %v3330_v14 }
 0x53a   :  { %3516 = vadd.xlane.f32.xlu0 %v7701_v56 }
 0x53b   :  { %v3861_v49 = vadd.f32 %v4814_v45, %v3860_v3  ;;  %4819 = vpow2.f32 %v3418_v31 }
 0x53c   :  { %v4818_v34 = vpop.eup %4817 }
 0x53d   :  { %v3865_v12 = vsel %vm3864_vm6, %v4814_v45, %v3861_v49  ;;  %v3873_v4 = vmul.f32 %v4818_v34, %v3487_v22  ;;  %v3489_v9 = vpop.xlane.xlu1 %3488  ;;  %vm3878_vm8 = vweird.f32 %v4818_v34 }
 0x53e   :  { %v3870_v10 = vsel %vm3867_vm7, %v3869_v40, %v3865_v12  ;;  %4821 = vrcp.f32 %v3489_v9  ;;  %v3271_v18 = vpop.xlane.xlu0 %3270  ;;  %vm3879_vm10 = vmor %vm3877_vm9, %vm3878_vm8  ;;  %v3898_v58 = vand.u32 2147483648, %v3489_v9  ;;  %v3896_v1 = vand.u32 2147483647, %v3489_v9 }
 0x53f   :  { %v3871_v63 = vmul.f32 %v7504_v30, %v3870_v10  ;;  %v3874_v2 = vsub.f32 1.0, %v3873_v4  ;;  %v3331_v50 = vsub.f32 %v7533_v42, %v3271_v18  ;;  %vm3892_vm13 = vweird.f32 %v3489_v9 }
 0x540   :  { %vm3897_vm15 = vcmp.eq.f32.partialorder %v3896_v1, 8.507059e+37 }
 0x541   :  { %4313 = vst [vmem:[%s7881_s7 + $0xa8] sm:$0xff] %v3871_v63  ;;  %v3875_v62 = vmul.f32 %v4818_v34, %v3874_v2  ;;  %v3420_v23 = vmul.f32 1.442695, %v3331_v50  ;;  %v7709_v37 = vpop.eup %4819 }
 0x542   :  { %3518 = vadd.xlane.f32.xlu1 %v7709_v37 }
 0x543   :  { %v3876_v13 = vadd.f32 %v4818_v34, %v3875_v62  ;;  %4823 = vpow2.f32 %v3420_v23 }
 0x544   :  { %v4822_v30 = vpop.eup %4821 }
 0x545   :  { %v3880_v42 = vsel %vm3879_vm10, %v4818_v34, %v3876_v13  ;;  %v3888_v53 = vmul.f32 %v4822_v30, %v3489_v9  ;;  %v3491_v25 = vpop.xlane.xlu2 %3490  ;;  %vm3893_vm12 = vweird.f32 %v4822_v30 }
 0x546   :  { %v3885_v54 = vsel %vm3882_vm11, %v3884_v33, %v3880_v42  ;;  %v3273_v11 = vpop.xlane.xlu1 %3272  ;;  %4825 = vrcp.f32 %v3491_v25  ;;  %vm3894_vm14 = vmor %vm3892_vm13, %vm3893_vm12  ;;  %v3913_v12 = vand.u32 2147483648, %v3491_v25  ;;  %v3911_v10 = vand.u32 2147483647, %v3491_v25 }
 0x547   :  { %v3886_v45 = vmul.f32 %v7516_v21, %v3885_v54  ;;  %v3889_v51 = vsub.f32 1.0, %v3888_v53  ;;  %v3332_v60 = vsub.f32 %v7543_v36, %v3273_v11  ;;  %v3899_v21 = vor.u32 1.1754944e-38, %v3898_v58 }
 0x548   :  { %vm3907_vm1 = vweird.f32 %v3491_v25  ;;  %vm3912_vm3 = vcmp.eq.f32.partialorder %v3911_v10, 8.507059e+37 }
 0x549   :  { %v7714_v22 = vpop.eup %4823  ;;  %4314 = vst [vmem:[%s7881_s7 + $0xb0] sm:$0xff] %v3886_v45  ;;  %v3890_v5 = vmul.f32 %v4822_v30, %v3889_v51  ;;  %v3422_v20 = vmul.f32 1.442695, %v3332_v60 }
 0x54a   :  { %3520 = vadd.xlane.f32.xlu2 %v7714_v22 }
 0x54b   :  { %v3891_v24 = vadd.f32 %v4822_v30, %v3890_v5  ;;  %4827 = vpow2.f32 %v3422_v20 }
 0x54c   :  { %v4826_v39 = vpop.eup %4825 }
 0x54d   :  { %v3895_v14 = vsel %vm3894_vm14, %v4822_v30, %v3891_v24  ;;  %v3493_v36 = vpop.xlane.xlu0 %3492  ;;  %v3903_v43 = vmul.f32 %v4826_v39, %v3491_v25  ;;  %vm3908_vm0 = vweird.f32 %v4826_v39 }
 0x54e   :  { %v3900_v3 = vsel %vm3897_vm15, %v3899_v21, %v3895_v14  ;;  %4829 = vrcp.f32 %v3493_v36  ;;  %v3275_v31 = vpop.xlane.xlu2 %3274  ;;  %vm3909_vm2 = vmor %vm3907_vm1, %vm3908_vm0  ;;  %v3928_v33 = vand.u32 2147483648, %v3493_v36  ;;  %v3926_v53 = vand.u32 2147483647, %v3493_v36 }
 0x54f   :  { %v3901_v49 = vmul.f32 %v7528_v61, %v3900_v3  ;;  %v3904_v34 = vsub.f32 1.0, %v3903_v43  ;;  %v3333_v40 = vsub.f32 %v7557_v29, %v3275_v31  ;;  %v3914_v61 = vor.u32 1.1754944e-38, %v3913_v12 }
 0x550   :  { %vm3922_vm5 = vweird.f32 %v3493_v36  ;;  %vm3927_vm7 = vcmp.eq.f32.partialorder %v3926_v53, 8.507059e+37 }
 0x551   :  { %4315 = vst [vmem:[%s7881_s7 + $0xb8] sm:$0xff] %v3901_v49  ;;  %v7725_v4 = vpop.eup %4827  ;;  %v3905_v9 = vmul.f32 %v4826_v39, %v3904_v34  ;;  %v3424_v18 = vmul.f32 1.442695, %v3333_v40 }
 0x552   :  { %3522 = vadd.xlane.f32.xlu0 %v7725_v4 }
 0x553   :  { %v3906_v2 = vadd.f32 %v4826_v39, %v3905_v9  ;;  %4831 = vpow2.f32 %v3424_v18 }
 0x554   :  { %v4830_v63 = vpop.eup %4829 }
 0x555   :  { %v3918_v29 = vmul.f32 %v4830_v63, %v3493_v36  ;;  %v3495_v50 = vpop.xlane.xlu1 %3494  ;;  %v3910_v59 = vsel %vm3909_vm2, %v4826_v39, %v3906_v2  ;;  %vm3923_vm4 = vweird.f32 %v4830_v63 }
 0x556   :  { %4833 = vrcp.f32 %v3495_v50  ;;  %v3277_v62 = vpop.xlane.xlu0 %3276  ;;  %v3915_v44 = vsel %vm3912_vm3, %v3914_v61, %v3910_v59  ;;  %vm3924_vm6 = vmor %vm3922_vm5, %vm3923_vm4  ;;  %v3943_v21 = vand.u32 2147483648, %v3495_v50  ;;  %v3941_v36 = vand.u32 2147483647, %v3495_v50 }
 0x557   :  { %v3919_v23 = vsub.f32 1.0, %v3918_v29  ;;  %v3334_v13 = vsub.f32 %v7569_v7, %v3277_v62  ;;  %v3916_v30 = vmul.f32 %v7545_v0, %v3915_v44  ;;  %v3929_v7 = vor.u32 1.1754944e-38, %v3928_v33 }
 0x558   :  { %vm3937_vm9 = vweird.f32 %v3495_v50  ;;  %v3944_v31 = vor.u32 1.1754944e-38, %v3943_v21  ;;  %vm3942_vm11 = vcmp.eq.f32.partialorder %v3941_v36, 8.507059e+37 }
 0x559   :  { %v3920_v42 = vmul.f32 %v4830_v63, %v3919_v23  ;;  %v3426_v54 = vmul.f32 1.442695, %v3334_v13  ;;  %v7730_v25 = vpop.eup %4831  ;;  %4316 = vst [vmem:[%s7881_s7 + $0xc0] sm:$0xff] %v3916_v30 }
 0x55a   :  { %3524 = vadd.xlane.f32.xlu1 %v7730_v25 }
 0x55b   :  { %v3921_v11 = vadd.f32 %v4830_v63, %v3920_v42  ;;  %4835 = vpow2.f32 %v3426_v54 }
 0x55c   :  { %v4834_v45 = vpop.eup %4833 }
 0x55d   :  { %v3925_v0 = vsel %vm3924_vm6, %v4830_v63, %v3921_v11  ;;  %v3933_v51 = vmul.f32 %v4834_v45, %v3495_v50  ;;  %v3497_v58 = vpop.xlane.xlu2 %3496  ;;  %vm3938_vm8 = vweird.f32 %v4834_v45 }
 0x55e   :  { %v3930_v60 = vsel %vm3927_vm7, %v3929_v7, %v3925_v0  ;;  %4837 = vrcp.f32 %v3497_v58  ;;  %v3279_v5 = vpop.xlane.xlu1 %3278  ;;  %vm3939_vm10 = vmor %vm3937_vm9, %vm3938_vm8  ;;  %v3958_v63 = vand.u32 2147483648, %v3497_v58  ;;  %v3956_v29 = vand.u32 2147483647, %v3497_v58 }
 0x55f   :  { %v3931_v1 = vmul.f32 %v7552_v32, %v3930_v60  ;;  %v3934_v20 = vsub.f32 1.0, %v3933_v51  ;;  %v3335_v24 = vsub.f32 %v7581_v19, %v3279_v5  ;;  %vm3952_vm13 = vweird.f32 %v3497_v58 }
 0x560   :  { %v3959_v62 = vor.u32 1.1754944e-38, %v3958_v63  ;;  %vm3957_vm15 = vcmp.eq.f32.partialorder %v3956_v29, 8.507059e+37 }
 0x561   :  { %v7738_v39 = vpop.eup %4835  ;;  %4317 = vst [vmem:[%s7881_s7 + $0xc8] sm:$0xff] %v3931_v1  ;;  %v3935_v14 = vmul.f32 %v4834_v45, %v3934_v20  ;;  %v3428_v3 = vmul.f32 1.442695, %v3335_v24 }
 0x562   :  { %3526 = vadd.xlane.f32.xlu2 %v7738_v39 }
 0x563   :  { %v3936_v43 = vadd.f32 %v4834_v45, %v3935_v14  ;;  %4839 = vpow2.f32 %v3428_v3 }
 0x564   :  { %v4838_v32 = vpop.eup %4837 }
 0x565   :  { %v3940_v19 = vsel %vm3939_vm10, %v4834_v45, %v3936_v43  ;;  %v3948_v49 = vmul.f32 %v4838_v32, %v3497_v58  ;;  %v3499_v34 = vpop.xlane.xlu0 %3498  ;;  %vm3953_vm12 = vweird.f32 %v4838_v32 }
 0x566   :  { %v3945_v40 = vsel %vm3942_vm11, %v3944_v31, %v3940_v19  ;;  %4841 = vrcp.f32 %v3499_v34  ;;  %v3281_v12 = vpop.xlane.xlu2 %3280  ;;  %vm3954_vm14 = vmor %vm3952_vm13, %vm3953_vm12  ;;  %v3973_v53 = vand.u32 2147483648, %v3499_v34  ;;  %v3971_v45 = vand.u32 2147483647, %v3499_v34 }
 0x567   :  { %v3946_v9 = vmul.f32 %v7567_v48, %v3945_v40  ;;  %v3949_v10 = vsub.f32 1.0, %v3948_v49  ;;  %v3336_v18 = vsub.f32 %v7592_v17, %v3281_v12  ;;  %vm3967_vm1 = vweird.f32 %v3499_v34 }
 0x568   :  { %vm3972_vm3 = vcmp.eq.f32.partialorder %v3971_v45, 8.507059e+37 }
 0x569   :  { %v7746_v2 = vpop.eup %4839  ;;  %4318 = vst [vmem:[%s7881_s7 + $0xd0] sm:$0xff] %v3946_v9  ;;  %v3950_v61 = vmul.f32 %v4838_v32, %v3949_v10  ;;  %v3430_v50 = vmul.f32 1.442695, %v3336_v18 }
 0x56a   :  { %3528 = vadd.xlane.f32.xlu0 %v7746_v2 }
 0x56b   :  { %v3951_v59 = vadd.f32 %v4838_v32, %v3950_v61  ;;  %4843 = vpow2.f32 %v3430_v50 }
 0x56c   :  { %v4842_v48 = vpop.eup %4841 }
 0x56d   :  { %v3955_v17 = vsel %vm3954_vm14, %v4838_v32, %v3951_v59  ;;  %v3963_v44 = vmul.f32 %v4842_v48, %v3499_v34  ;;  %vm3968_vm0 = vweird.f32 %v4842_v48 }
 0x56e   :  { %v3960_v23 = vsel %vm3957_vm15, %v3959_v62, %v3955_v17  ;;  %v3283_v13 = vpop.xlane.xlu0 %3282  ;;  %vm3969_vm2 = vmor %vm3967_vm1, %vm3968_vm0 }
 0x56f   :  { %v3961_v30 = vmul.f32 %v7579_v8, %v3960_v23  ;;  %v3964_v33 = vsub.f32 1.0, %v3963_v44  ;;  %v3337_v42 = vsub.f32 %v7603_v26, %v3283_v13  ;;  %v3974_v8 = vor.u32 1.1754944e-38, %v3973_v53 }
 0x571   :  { %v7754_v54 = vpop.eup %4843  ;;  %4319 = vst [vmem:[%s7881_s7 + $0xd8] sm:$0xff] %v3961_v30  ;;  %v3965_v11 = vmul.f32 %v4842_v48, %v3964_v33  ;;  %v3432_v7 = vmul.f32 1.442695, %v3337_v42 }
 0x572   :  { %3530 = vadd.xlane.f32.xlu1 %v7754_v54 }
 0x573   :  { %v3966_v0 = vadd.f32 %v4842_v48, %v3965_v11  ;;  %4845 = vpow2.f32 %v3432_v7 }
 0x575   :  { %v3970_v51 = vsel %vm3969_vm2, %v4842_v48, %v3966_v0 }
 0x576   :  { %v3975_v26 = vsel %vm3972_vm3, %v3974_v8, %v3970_v51  ;;  %v3285_v58 = vpop.xlane.xlu1 %3284 }
 0x577   :  { %v3976_v60 = vmul.f32 %v7590_v6, %v3975_v26  ;;  %v3338_v5 = vsub.f32 %v7611_v57, %v3285_v58 }
 0x579   :  { %v7762_v1 = vpop.eup %4845  ;;  %4320 = vst [vmem:[%s7881_s7 + $0xe0] sm:$0xff] %v3976_v60  ;;  %v3434_v20 = vmul.f32 1.442695, %v3338_v5 }
 0x57a   :  { %3532 = vadd.xlane.f32.xlu2 %v7762_v1 }
 0x57b   :  { %4847 = vpow2.f32 %v3434_v20 }
 0x57e   :  { %v3287_v24 = vpop.xlane.xlu2 %3286 }
 0x57f   :  { %v3339_v21 = vsub.f32 %v7620_v28, %v3287_v24 }
 0x581   :  { %v7769_v14 = vpop.eup %4847  ;;  %v3436_v36 = vmul.f32 1.442695, %v3339_v21 }
 0x582   :  { %3534 = vadd.xlane.f32.xlu0 %v7769_v14 }
 0x583   :  { %4849 = vpow2.f32 %v3436_v36 }
 0x586   :  { %v3503_v6 = vpop.xlane.xlu2 %3502  ;;  %v3289_v57 = vpop.xlane.xlu0 %3288 }
 0x587   :  { %4851 = vrcp.f32 %v3503_v6  ;;  %v3340_v3 = vsub.f32 %v7635_v41, %v3289_v57  ;;  %v4003_v9 = vand.u32 2147483648, %v3503_v6  ;;  %v4001_v63 = vand.u32 2147483647, %v3503_v6 }
 0x588   :  { %vm3997_vm5 = vweird.f32 %v3503_v6 }
 0x589   :  { %v7773_v43 = vpop.eup %4849  ;;  %v3438_v32 = vmul.f32 1.442695, %v3340_v3  ;;  %v4004_v50 = vor.u32 1.1754944e-38, %v4003_v9  ;;  %vm4002_vm7 = vcmp.eq.f32.partialorder %v4001_v63, 8.507059e+37 }
 0x58a   :  { %3536 = vadd.xlane.f32.xlu1 %v7773_v43 }
 0x58b   :  { %4853 = vpow2.f32 %v3438_v32 }
 0x58d   :  { %v4852_v31 = vpop.eup %4851 }
 0x58e   :  { %v3993_v19 = vmul.f32 %v4852_v31, %v3503_v6  ;;  %v3291_v28 = vpop.xlane.xlu1 %3290  ;;  %v3505_v49 = vpop.xlane.xlu0 %3504  ;;  %vm3998_vm4 = vweird.f32 %v4852_v31 }
 0x58f   :  { %v3341_v34 = vsub.f32 %v7656_v27, %v3291_v28  ;;  %v3509_v40 = vpop.xlane.xlu2 %3508  ;;  %4855 = vrcp.f32 %v3505_v49  ;;  %vm3999_vm6 = vmor %vm3997_vm5, %vm3998_vm4  ;;  %v4018_v53 = vand.u32 2147483648, %v3505_v49  ;;  %v4016_v7 = vand.u32 2147483647, %v3505_v49 }
 0x590   :  { %v3994_v12 = vsub.f32 1.0, %v3993_v19  ;;  %4857 = vrcp.f32 %v3509_v40  ;;  %v4048_v11 = vand.u32 2147483648, %v3509_v40  ;;  %vm4012_vm10 = vweird.f32 %v3505_v49 }
 0x591   :  { %v3440_v10 = vmul.f32 1.442695, %v3341_v34  ;;  %v7777_v18 = vpop.eup %4853  ;;  %vm4042_vm11 = vweird.f32 %v3509_v40  ;;  %v4019_v58 = vor.u32 1.1754944e-38, %v4018_v53  ;;  %vm4017_vm14 = vcmp.eq.f32.partialorder %v4016_v7, 8.507059e+37 }
 0x592   :  { %v3995_v41 = vmul.f32 %v4852_v31, %v3994_v12  ;;  %3538 = vadd.xlane.f32.xlu2 %v7777_v18  ;;  %v4049_v60 = vor.u32 1.1754944e-38, %v4048_v11 }
 0x593   :  { %4859 = vpow2.f32 %v3440_v10 }
 0x594   :  { %v3996_v61 = vadd.f32 %v4852_v31, %v3995_v41 }
 0x595   :  { %v4856_v29 = vpop.eup %4855 }
 0x596   :  { %v4858_v27 = vpop.eup %4857  ;;  %v4000_v59 = vsel %vm3999_vm6, %v4852_v31, %v3996_v61  ;;  %v4008_v48 = vmul.f32 %v4856_v29, %v3505_v49  ;;  %v3501_v62 = vpop.xlane.xlu1 %3500  ;;  %vm4013_vm8 = vweird.f32 %v4856_v29 }
 0x597   :  { %v7780_v17 = vpop.xlane.xlu0 %3510  ;;  %v4005_v44 = vsel %vm4002_vm7, %v4004_v50, %v4000_v59  ;;  %v4038_v23 = vmul.f32 %v4858_v27, %v3509_v40  ;;  %4861 = vrcp.f32 %v3501_v62  ;;  %vm4043_vm9 = vweird.f32 %v4858_v27  ;;  %vm4014_vm12 = vmor %vm4012_vm10, %vm4013_vm8 }
 0x598   :  { %v4006_v13 = vmul.f32 %v7637_v38, %v4005_v44  ;;  %v4009_v30 = vsub.f32 1.0, %v4008_v48  ;;  %4863 = vrcp.f32 %v7780_v17  ;;  %v4046_v38 = vand.u32 2147483647, %v3509_v40  ;;  %vm4044_vm13 = vmor %vm4042_vm11, %vm4043_vm9 }
 0x599   :  { %v7783_v33 = vpop.eup %4859  ;;  %v4039_v42 = vsub.f32 1.0, %v4038_v23  ;;  %v3988_v28 = vand.u32 2147483648, %v3501_v62  ;;  %v3986_v34 = vand.u32 2147483647, %v3501_v62  ;;  %vm3982_vm1 = vweird.f32 %v3501_v62 }
 0x59a   :  { %4322 = vst [vmem:[%s7881_s7 + $0xf0] sm:$0xff] %v4006_v13  ;;  %v4010_v45 = vmul.f32 %v4856_v29, %v4009_v30  ;;  %3540 = vadd.xlane.f32.xlu0 %v7783_v33  ;;  %vm4047_vm15 = vcmp.eq.f32.partialorder %v4046_v38, 8.507059e+37  ;;  %vm4057_vm4 = vweird.f32 %v7780_v17 }
 0x59b   :  { %v4040_v0 = vmul.f32 %v4858_v27, %v4039_v42  ;;  %v3989_v41 = vor.u32 1.1754944e-38, %v3988_v28  ;;  %vm3987_vm5 = vcmp.eq.f32.partialorder %v3986_v34, 8.507059e+37 }
 0x59c   :  { %v4011_v8 = vadd.f32 %v4856_v29, %v4010_v45 }
 0x59d   :  { %v4862_v51 = vpop.eup %4861  ;;  %v4041_v26 = vadd.f32 %v4858_v27, %v4040_v0 }
 0x59e   :  { %v4015_v5 = vsel %vm4014_vm12, %v4856_v29, %v4011_v8  ;;  %v3978_v20 = vmul.f32 %v4862_v51, %v3501_v62  ;;  %v3507_v24 = vpop.xlane.xlu1 %3506  ;;  %v4864_v21 = vpop.eup %4863  ;;  %vm3983_vm0 = vweird.f32 %v4862_v51 }
 0x59f   :  { %v4045_v36 = vsel %vm4044_vm13, %v4858_v27, %v4041_v26  ;;  %v4020_v6 = vsel %vm4017_vm14, %v4019_v58, %v4015_v5  ;;  %4865 = vrcp.f32 %v3507_v24  ;;  %v4053_v31 = vmul.f32 %v4864_v21, %v7780_v17  ;;  %vm3984_vm3 = vmor %vm3982_vm1, %vm3983_vm0 }
 0x5a0   :  { %v4050_v57 = vsel %vm4047_vm15, %v4049_v60, %v4045_v36  ;;  %v4021_v3 = vmul.f32 %v7650_v47, %v4020_v6  ;;  %v3979_v32 = vsub.f32 1.0, %v3978_v20  ;;  %v4063_v47 = vand.u32 2147483648, %v7780_v17 }
 0x5a1   :  { %v4051_v19 = vmul.f32 %v7658_v52, %v4050_v57  ;;  %v4054_v40 = vsub.f32 1.0, %v4053_v31  ;;  %vm4058_vm2 = vweird.f32 %v4864_v21  ;;  %v4061_v52 = vand.u32 2147483647, %v7780_v17 }
 0x5a2   :  { %4323 = vst [vmem:[%s7881_s7 + $0xf8] sm:$0xff] %v4021_v3  ;;  %v3980_v49 = vmul.f32 %v4862_v51, %v3979_v32  ;;  %vm4059_vm6 = vmor %vm4057_vm4, %vm4058_vm2  ;;  %v4064_v48 = vor.u32 1.1754944e-38, %v4063_v47  ;;  %v4033_v30 = vand.u32 2147483648, %v3507_v24  ;;  %v4031_v53 = vand.u32 2147483647, %v3507_v24 }
 0x5a3   :  { %4325 = vst [vmem:[%s7881_s7 + $0x108] sm:$0xff] %v4051_v19  ;;  %v4055_v9 = vmul.f32 %v4864_v21, %v4054_v40  ;;  %vm4062_vm7 = vcmp.eq.f32.partialorder %v4061_v52, 8.507059e+37  ;;  %vm4027_vm9 = vweird.f32 %v3507_v24 }
 0x5a4   :  { %v3981_v12 = vadd.f32 %v4862_v51, %v3980_v49  ;;  %v4034_v45 = vor.u32 1.1754944e-38, %v4033_v30  ;;  %vm4032_vm11 = vcmp.eq.f32.partialorder %v4031_v53, 8.507059e+37 }
 0x5a5   :  { %v4866_v10 = vpop.eup %4865  ;;  %v4056_v61 = vadd.f32 %v4864_v21, %v4055_v9  ;;  %v3515_v50 = vpop.xlane.xlu2 %3514 }
 0x5a6   :  { %v3985_v63 = vsel %vm3984_vm3, %v4862_v51, %v3981_v12  ;;  %v4023_v29 = vmul.f32 %v4866_v10, %v3507_v24  ;;  %v3513_v27 = vpop.xlane.xlu1 %3512  ;;  %4867 = vrcp.f32 %v3515_v50  ;;  %vm4028_vm8 = vweird.f32 %v4866_v10 }
 0x5a7   :  { %v3990_v59 = vsel %vm3987_vm5, %v3989_v41, %v3985_v63  ;;  %v4060_v44 = vsel %vm4059_vm6, %v4864_v21, %v4056_v61  ;;  %4869 = vrcp.f32 %v3513_v27  ;;  %vm4029_vm10 = vmor %vm4027_vm9, %vm4028_vm8  ;;  %v4091_v60 = vand.u32 2147483647, %v3515_v50 }
 0x5a8   :  { %v3991_v62 = vmul.f32 %v7667_v35, %v3990_v59  ;;  %v4024_v23 = vsub.f32 1.0, %v4023_v29  ;;  %v4065_v13 = vsel %vm4062_vm7, %v4064_v48, %v4060_v44  ;;  %v4093_v5 = vand.u32 2147483648, %v3515_v50 }
 0x5a9   :  { %v4066_v17 = vmul.f32 %v7672_v46, %v4065_v13  ;;  %vm4087_vm13 = vweird.f32 %v3515_v50  ;;  %v4078_v21 = vand.u32 2147483648, %v3513_v27  ;;  %v4076_v57 = vand.u32 2147483647, %v3513_v27 }
 0x5aa   :  { %4321 = vst [vmem:[%s7881_s7 + $0xe8] sm:$0xff] %v3991_v62  ;;  %v4025_v42 = vmul.f32 %v4866_v10, %v4024_v23  ;;  %vm4092_vm0 = vcmp.eq.f32.partialorder %v4091_v60, 8.507059e+37  ;;  %vm4072_vm1 = vweird.f32 %v3513_v27 }
 0x5ab   :  { %4326 = vst [vmem:[%s7881_s7 + $0x110] sm:$0xff] %v4066_v17  ;;  %v4079_v34 = vor.u32 1.1754944e-38, %v4078_v21  ;;  %vm4077_vm3 = vcmp.eq.f32.partialorder %v4076_v57, 8.507059e+37 }
 0x5ac   :  { %v4026_v35 = vadd.f32 %v4866_v10, %v4025_v42  ;;  %v4868_v11 = vpop.eup %4867 }
 0x5ad   :  { %v4083_v0 = vmul.f32 %v4868_v11, %v3515_v50  ;;  %v3517_v38 = vpop.xlane.xlu0 %3516  ;;  %v4870_v8 = vpop.eup %4869  ;;  %vm4088_vm12 = vweird.f32 %v4868_v11 }
 0x5ae   :  { %v4030_v7 = vsel %vm4029_vm10, %v4866_v10, %v4026_v35  ;;  %4871 = vrcp.f32 %v3517_v38  ;;  %v4068_v58 = vmul.f32 %v4870_v8, %v3513_v27  ;;  %vm4073_vm14 = vweird.f32 %v4870_v8  ;;  %vm4089_vm15 = vmor %vm4087_vm13, %vm4088_vm12 }
 0x5af   :  { %v4035_v51 = vsel %vm4032_vm11, %v4034_v45, %v4030_v7  ;;  %v4084_v26 = vsub.f32 1.0, %v4083_v0  ;;  %vm4074_vm2 = vmor %vm4072_vm1, %vm4073_vm14  ;;  %v4108_v52 = vand.u32 2147483648, %v3517_v38  ;;  %v4106_v63 = vand.u32 2147483647, %v3517_v38 }
 0x5b0   :  { %v4036_v46 = vmul.f32 %v7682_v16, %v4035_v51  ;;  %v4069_v24 = vsub.f32 1.0, %v4068_v58  ;;  %v4094_v16 = vor.u32 1.1754944e-38, %v4093_v5  ;;  %vm4102_vm5 = vweird.f32 %v3517_v38 }
 0x5b1   :  { %v4085_v20 = vmul.f32 %v4868_v11, %v4084_v26  ;;  %v4109_v29 = vor.u32 1.1754944e-38, %v4108_v52  ;;  %vm4107_vm7 = vcmp.eq.f32.partialorder %v4106_v63, 8.507059e+37 }
 0x5b2   :  { %4324 = vst [vmem:[%s7881_s7 + $0x100] sm:$0xff] %v4036_v46  ;;  %v4070_v6 = vmul.f32 %v4870_v8, %v4069_v24 }
 0x5b3   :  { %v4086_v36 = vadd.f32 %v4868_v11, %v4085_v20 }
 0x5b4   :  { %v4872_v3 = vpop.eup %4871  ;;  %v4071_v31 = vadd.f32 %v4870_v8, %v4070_v6 }
 0x5b5   :  { %v4090_v32 = vsel %vm4089_vm15, %v4868_v11, %v4086_v36  ;;  %v4098_v19 = vmul.f32 %v4872_v3, %v3517_v38  ;;  %v3519_v28 = vpop.xlane.xlu1 %3518  ;;  %vm4103_vm4 = vweird.f32 %v4872_v3 }
 0x5b6   :  { %v4095_v49 = vsel %vm4092_vm0, %v4094_v16, %v4090_v32  ;;  %4873 = vrcp.f32 %v3519_v28  ;;  %v4075_v47 = vsel %vm4074_vm2, %v4870_v8, %v4071_v31  ;;  %vm4104_vm6 = vmor %vm4102_vm5, %vm4103_vm4  ;;  %v4123_v44 = vand.u32 2147483648, %v3519_v28 }
 0x5b7   :  { %v4096_v40 = vmul.f32 %v7692_v15, %v4095_v49  ;;  %v4099_v12 = vsub.f32 1.0, %v4098_v19  ;;  %v4080_v9 = vsel %vm4077_vm3, %v4079_v34, %v4075_v47  ;;  %v4121_v13 = vand.u32 2147483647, %v3519_v28 }
 0x5b8   :  { %v4081_v10 = vmul.f32 %v7687_v55, %v4080_v9  ;;  %vm4117_vm9 = vweird.f32 %v3519_v28  ;;  %v4124_v42 = vor.u32 1.1754944e-38, %v4123_v44 }
 0x5b9   :  { %4328 = vst [vmem:[%s7881_s7 + $0x120] sm:$0xff] %v4096_v40  ;;  %v4100_v41 = vmul.f32 %v4872_v3, %v4099_v12  ;;  %vm4122_vm11 = vcmp.eq.f32.partialorder %v4121_v13, 8.507059e+37 }
 0x5ba   :  { %4327 = vst [vmem:[%s7881_s7 + $0x118] sm:$0xff] %v4081_v10 }
 0x5bb   :  { %v4101_v61 = vadd.f32 %v4872_v3, %v4100_v41 }
 0x5bc   :  { %v4874_v15 = vpop.eup %4873 }
 0x5bd   :  { %v3521_v50 = vpop.xlane.xlu2 %3520  ;;  %v4105_v27 = vsel %vm4104_vm6, %v4872_v3, %v4101_v61  ;;  %v4113_v59 = vmul.f32 %v4874_v15, %v3519_v28  ;;  %vm4118_vm8 = vweird.f32 %v4874_v15 }
 0x5be   :  { %4875 = vrcp.f32 %v3521_v50  ;;  %v4110_v48 = vsel %vm4107_vm7, %v4109_v29, %v4105_v27  ;;  %vm4119_vm10 = vmor %vm4117_vm9, %vm4118_vm8  ;;  %v4138_v0 = vand.u32 2147483648, %v3521_v50  ;;  %v4136_v8 = vand.u32 2147483647, %v3521_v50 }
 0x5bf   :  { %v4111_v55 = vmul.f32 %v7701_v56, %v4110_v48  ;;  %v4114_v62 = vsub.f32 1.0, %v4113_v59  ;;  %vm4132_vm13 = vweird.f32 %v3521_v50 }
 0x5c0   :  { %v4139_v46 = vor.u32 1.1754944e-38, %v4138_v0  ;;  %vm4137_vm15 = vcmp.eq.f32.partialorder %v4136_v8, 8.507059e+37 }
 0x5c1   :  { %4329 = vst [vmem:[%s7881_s7 + $0x128] sm:$0xff] %v4111_v55  ;;  %v4115_v23 = vmul.f32 %v4874_v15, %v4114_v62 }
 0x5c3   :  { %v4116_v17 = vadd.f32 %v4874_v15, %v4115_v23 }
 0x5c4   :  { %v4876_v30 = vpop.eup %4875 }
 0x5c5   :  { %v4128_v53 = vmul.f32 %v4876_v30, %v3521_v50  ;;  %v4120_v35 = vsel %vm4119_vm10, %v4874_v15, %v4116_v17  ;;  %v3523_v11 = vpop.xlane.xlu0 %3522  ;;  %vm4133_vm12 = vweird.f32 %v4876_v30 }
 0x5c6   :  { %v4125_v45 = vsel %vm4122_vm11, %v4124_v42, %v4120_v35  ;;  %4877 = vrcp.f32 %v3523_v11  ;;  %vm4134_vm14 = vmor %vm4132_vm13, %vm4133_vm12  ;;  %v4153_v21 = vand.u32 2147483648, %v3523_v11  ;;  %v4151_v6 = vand.u32 2147483647, %v3523_v11 }
 0x5c7   :  { %v4129_v56 = vsub.f32 1.0, %v4128_v53  ;;  %v4126_v7 = vmul.f32 %v7709_v37, %v4125_v45  ;;  %vm4147_vm1 = vweird.f32 %v3523_v11 }
 0x5c8   :  { %v4154_v16 = vor.u32 1.1754944e-38, %v4153_v21  ;;  %vm4152_vm3 = vcmp.eq.f32.partialorder %v4151_v6, 8.507059e+37 }
 0x5c9   :  { %v4130_v38 = vmul.f32 %v4876_v30, %v4129_v56  ;;  %4330 = vst [vmem:[%s7881_s7 + $0x130] sm:$0xff] %v4126_v7 }
 0x5cb   :  { %v4131_v51 = vadd.f32 %v4876_v30, %v4130_v38 }
 0x5cc   :  { %v4878_v26 = vpop.eup %4877 }
 0x5cd   :  { %v4135_v58 = vsel %vm4134_vm14, %v4876_v30, %v4131_v51  ;;  %v4143_v5 = vmul.f32 %v4878_v26, %v3523_v11  ;;  %v3525_v20 = vpop.xlane.xlu1 %3524  ;;  %vm4148_vm0 = vweird.f32 %v4878_v26 }
 0x5ce   :  { %v4140_v60 = vsel %vm4137_vm15, %v4139_v46, %v4135_v58  ;;  %4879 = vrcp.f32 %v3525_v20  ;;  %vm4149_vm2 = vmor %vm4147_vm1, %vm4148_vm0  ;;  %v4168_v34 = vand.u32 2147483648, %v3525_v20  ;;  %v4166_v47 = vand.u32 2147483647, %v3525_v20 }
 0x5cf   :  { %v4141_v37 = vmul.f32 %v7714_v22, %v4140_v60  ;;  %v4144_v24 = vsub.f32 1.0, %v4143_v5  ;;  %vm4162_vm5 = vweird.f32 %v3525_v20 }
 0x5d0   :  { %v4169_v52 = vor.u32 1.1754944e-38, %v4168_v34  ;;  %vm4167_vm7 = vcmp.eq.f32.partialorder %v4166_v47, 8.507059e+37 }
 0x5d1   :  { %4331 = vst [vmem:[%s7881_s7 + $0x138] sm:$0xff] %v4141_v37  ;;  %v4145_v36 = vmul.f32 %v4878_v26, %v4144_v24 }
 0x5d3   :  { %v4146_v57 = vadd.f32 %v4878_v26, %v4145_v36 }
 0x5d4   :  { %v4880_v3 = vpop.eup %4879 }
 0x5d5   :  { %v3527_v32 = vpop.xlane.xlu2 %3526  ;;  %v4150_v31 = vsel %vm4149_vm2, %v4878_v26, %v4146_v57  ;;  %v4158_v19 = vmul.f32 %v4880_v3, %v3525_v20  ;;  %vm4163_vm4 = vweird.f32 %v4880_v3 }
 0x5d6   :  { %4881 = vrcp.f32 %v3527_v32  ;;  %v4155_v22 = vsel %vm4152_vm3, %v4154_v16, %v4150_v31  ;;  %vm4164_vm6 = vmor %vm4162_vm5, %vm4163_vm4  ;;  %v4183_v29 = vand.u32 2147483648, %v3527_v32  ;;  %v4181_v27 = vand.u32 2147483647, %v3527_v32 }
 0x5d7   :  { %v4156_v28 = vmul.f32 %v7725_v4, %v4155_v22  ;;  %v4159_v49 = vsub.f32 1.0, %v4158_v19  ;;  %vm4177_vm9 = vweird.f32 %v3527_v32 }
 0x5d8   :  { %v4184_v55 = vor.u32 1.1754944e-38, %v4183_v29  ;;  %vm4182_vm11 = vcmp.eq.f32.partialorder %v4181_v27, 8.507059e+37 }
 0x5d9   :  { %4332 = vst [vmem:[%s7881_s7 + $0x140] sm:$0xff] %v4156_v28  ;;  %v4160_v40 = vmul.f32 %v4880_v3, %v4159_v49 }
 0x5db   :  { %v4161_v9 = vadd.f32 %v4880_v3, %v4160_v40 }
 0x5dc   :  { %v4882_v12 = vpop.eup %4881 }
 0x5dd   :  { %v4173_v10 = vmul.f32 %v4882_v12, %v3527_v32  ;;  %v3529_v41 = vpop.xlane.xlu0 %3528  ;;  %v4165_v63 = vsel %vm4164_vm6, %v4880_v3, %v4161_v9  ;;  %vm4178_vm8 = vweird.f32 %v4882_v12 }
 0x5de   :  { %4883 = vrcp.f32 %v3529_v41  ;;  %v4170_v4 = vsel %vm4167_vm7, %v4169_v52, %v4165_v63  ;;  %vm4179_vm10 = vmor %vm4177_vm9, %vm4178_vm8  ;;  %v4198_v17 = vand.u32 2147483648, %v3529_v41  ;;  %v4196_v53 = vand.u32 2147483647, %v3529_v41 }
 0x5df   :  { %v4174_v61 = vsub.f32 1.0, %v4173_v10  ;;  %v4171_v15 = vmul.f32 %v7730_v25, %v4170_v4  ;;  %vm4192_vm13 = vweird.f32 %v3529_v41 }
 0x5e0   :  { %v4199_v45 = vor.u32 1.1754944e-38, %v4198_v17  ;;  %vm4197_vm15 = vcmp.eq.f32.partialorder %v4196_v53, 8.507059e+37 }
 0x5e1   :  { %v4175_v50 = vmul.f32 %v4882_v12, %v4174_v61  ;;  %4333 = vst [vmem:[%s7881_s7 + $0x148] sm:$0xff] %v4171_v15 }
 0x5e3   :  { %v4176_v59 = vadd.f32 %v4882_v12, %v4175_v50 }
 0x5e4   :  { %v4884_v48 = vpop.eup %4883 }
 0x5e5   :  { %v4180_v62 = vsel %vm4179_vm10, %v4882_v12, %v4176_v59  ;;  %v4188_v44 = vmul.f32 %v4884_v48, %v3529_v41  ;;  %v3531_v23 = vpop.xlane.xlu1 %3530  ;;  %vm4193_vm12 = vweird.f32 %v4884_v48 }
 0x5e6   :  { %v4185_v13 = vsel %vm4182_vm11, %v4184_v55, %v4180_v62  ;;  %4885 = vrcp.f32 %v3531_v23  ;;  %vm4194_vm14 = vmor %vm4192_vm13, %vm4193_vm12  ;;  %v4213_v51 = vand.u32 2147483648, %v3531_v23  ;;  %v4211_v26 = vand.u32 2147483647, %v3531_v23 }
 0x5e7   :  { %v4186_v25 = vmul.f32 %v7738_v39, %v4185_v13  ;;  %v4189_v30 = vsub.f32 1.0, %v4188_v44  ;;  %vm4207_vm1 = vweird.f32 %v3531_v23 }
 0x5e8   :  { %v4214_v5 = vor.u32 1.1754944e-38, %v4213_v51  ;;  %vm4212_vm3 = vcmp.eq.f32.partialorder %v4211_v26, 8.507059e+37 }
 0x5e9   :  { %4334 = vst [vmem:[%s7881_s7 + $0x150] sm:$0xff] %v4186_v25  ;;  %v4190_v42 = vmul.f32 %v4884_v48, %v4189_v30 }
 0x5eb   :  { %v4191_v35 = vadd.f32 %v4884_v48, %v4190_v42 }
 0x5ec   :  { %v4886_v11 = vpop.eup %4885 }
 0x5ed   :  { %v4195_v56 = vsel %vm4194_vm14, %v4884_v48, %v4191_v35  ;;  %v4203_v7 = vmul.f32 %v4886_v11, %v3531_v23  ;;  %v3533_v0 = vpop.xlane.xlu2 %3532  ;;  %vm4208_vm0 = vweird.f32 %v4886_v11 }
 0x5ee   :  { %v4200_v38 = vsel %vm4197_vm15, %v4199_v45, %v4195_v56  ;;  %4887 = vrcp.f32 %v3533_v0  ;;  %vm4209_vm2 = vmor %vm4207_vm1, %vm4208_vm0  ;;  %v4228_v6 = vand.u32 2147483648, %v3533_v0  ;;  %v4226_v3 = vand.u32 2147483647, %v3533_v0 }
 0x5ef   :  { %v4201_v39 = vmul.f32 %v7746_v2, %v4200_v38  ;;  %v4204_v8 = vsub.f32 1.0, %v4203_v7  ;;  %vm4222_vm5 = vweird.f32 %v3533_v0 }
 0x5f0   :  { %v4229_v31 = vor.u32 1.1754944e-38, %v4228_v6  ;;  %vm4227_vm7 = vcmp.eq.f32.partialorder %v4226_v3, 8.507059e+37 }
 0x5f1   :  { %4335 = vst [vmem:[%s7881_s7 + $0x158] sm:$0xff] %v4201_v39  ;;  %v4205_v46 = vmul.f32 %v4886_v11, %v4204_v8 }
 0x5f3   :  { %v4206_v58 = vadd.f32 %v4886_v11, %v4205_v46 }
 0x5f4   :  { %v4888_v60 = vpop.eup %4887 }
 0x5f5   :  { %v4210_v20 = vsel %vm4209_vm2, %v4886_v11, %v4206_v58  ;;  %v4218_v37 = vmul.f32 %v4888_v60, %v3533_v0  ;;  %v3535_v24 = vpop.xlane.xlu0 %3534  ;;  %vm4223_vm4 = vweird.f32 %v4888_v60 }
 0x5f6   :  { %v4215_v21 = vsel %vm4212_vm3, %v4214_v5, %v4210_v20  ;;  %4889 = vrcp.f32 %v3535_v24  ;;  %vm4224_vm6 = vmor %vm4222_vm5, %vm4223_vm4  ;;  %v4243_v40 = vand.u32 2147483648, %v3535_v24  ;;  %v4241_v12 = vand.u32 2147483647, %v3535_v24 }
 0x5f7   :  { %v4216_v2 = vmul.f32 %v7754_v54, %v4215_v21  ;;  %v4219_v36 = vsub.f32 1.0, %v4218_v37  ;;  %vm4237_vm9 = vweird.f32 %v3535_v24 }
 0x5f8   :  { %v4244_v10 = vor.u32 1.1754944e-38, %v4243_v40  ;;  %vm4242_vm11 = vcmp.eq.f32.partialorder %v4241_v12, 8.507059e+37 }
 0x5f9   :  { %4336 = vst [vmem:[%s7881_s7 + $0x160] sm:$0xff] %v4216_v2  ;;  %v4220_v57 = vmul.f32 %v4888_v60, %v4219_v36 }
 0x5fb   :  { %v4221_v16 = vadd.f32 %v4888_v60, %v4220_v57 }
 0x5fc   :  { %v4890_v32 = vpop.eup %4889 }
 0x5fd   :  { %v4225_v19 = vsel %vm4224_vm6, %v4888_v60, %v4221_v16  ;;  %v4233_v22 = vmul.f32 %v4890_v32, %v3535_v24  ;;  %v3537_v28 = vpop.xlane.xlu1 %3536  ;;  %vm4238_vm8 = vweird.f32 %v4890_v32 }
 0x5fe   :  { %v4230_v49 = vsel %vm4227_vm7, %v4229_v31, %v4225_v19  ;;  %4891 = vrcp.f32 %v3537_v28  ;;  %vm4239_vm10 = vmor %vm4237_vm9, %vm4238_vm8  ;;  %v4258_v29 = vand.u32 2147483648, %v3537_v28  ;;  %v4256_v27 = vand.u32 2147483647, %v3537_v28 }
 0x5ff   :  { %v4231_v54 = vmul.f32 %v7762_v1, %v4230_v49  ;;  %v4234_v34 = vsub.f32 1.0, %v4233_v22  ;;  %vm4252_vm13 = vweird.f32 %v3537_v28 }
 0x600   :  { %v4259_v48 = vor.u32 1.1754944e-38, %v4258_v29  ;;  %vm4257_vm15 = vcmp.eq.f32.partialorder %v4256_v27, 8.507059e+37 }
 0x601   :  { %4337 = vst [vmem:[%s7881_s7 + $0x168] sm:$0xff] %v4231_v54  ;;  %v4235_v47 = vmul.f32 %v4890_v32, %v4234_v34 }
 0x603   :  { %v4236_v9 = vadd.f32 %v4890_v32, %v4235_v47 }
 0x604   :  { %v4892_v52 = vpop.eup %4891 }
 0x605   :  { %v4240_v41 = vsel %vm4239_vm10, %v4890_v32, %v4236_v9  ;;  %v4248_v63 = vmul.f32 %v4892_v52, %v3537_v28  ;;  %v3539_v61 = vpop.xlane.xlu2 %3538  ;;  %vm4253_vm12 = vweird.f32 %v4892_v52 }
 0x606   :  { %v4245_v4 = vsel %vm4242_vm11, %v4244_v10, %v4240_v41  ;;  %4893 = vrcp.f32 %v3539_v61  ;;  %vm4254_vm14 = vmor %vm4252_vm13, %vm4253_vm12  ;;  %v4273_v30 = vand.u32 2147483648, %v3539_v61  ;;  %v4271_v42 = vand.u32 2147483647, %v3539_v61 }
 0x607   :  { %v4246_v1 = vmul.f32 %v7769_v14, %v4245_v4  ;;  %v4249_v15 = vsub.f32 1.0, %v4248_v63  ;;  %vm4267_vm1 = vweird.f32 %v3539_v61 }
 0x608   :  { %v4274_v11 = vor.u32 1.1754944e-38, %v4273_v30  ;;  %vm4272_vm3 = vcmp.eq.f32.partialorder %v4271_v42, 8.507059e+37 }
 0x609   :  { %4338 = vst [vmem:[%s7881_s7 + $0x170] sm:$0xff] %v4246_v1  ;;  %v4250_v50 = vmul.f32 %v4892_v52, %v4249_v15 }
 0x60b   :  { %v4251_v59 = vadd.f32 %v4892_v52, %v4250_v50 }
 0x60c   :  { %v4894_v55 = vpop.eup %4893 }
 0x60d   :  { %v4255_v62 = vsel %vm4254_vm14, %v4892_v52, %v4251_v59  ;;  %v3541_v44 = vpop.xlane.xlu0 %3540  ;;  %v4263_v14 = vmul.f32 %v4894_v55, %v3539_v61  ;;  %vm4268_vm0 = vweird.f32 %v4894_v55 }
 0x60e   :  { %v4260_v23 = vsel %vm4257_vm15, %v4259_v48, %v4255_v62  ;;  %4895 = vrcp.f32 %v3541_v44  ;;  %vm4269_vm2 = vmor %vm4267_vm1, %vm4268_vm0  ;;  %v4288_v38 = vand.u32 2147483648, %v3541_v44  ;;  %v4286_v8 = vand.u32 2147483647, %v3541_v44 }
 0x60f   :  { %v4261_v13 = vmul.f32 %v7773_v43, %v4260_v23  ;;  %v4264_v25 = vsub.f32 1.0, %v4263_v14  ;;  %vm4282_vm5 = vweird.f32 %v3541_v44 }
 0x610   :  { %v4289_v46 = vor.u32 1.1754944e-38, %v4288_v38  ;;  %vm4287_vm7 = vcmp.eq.f32.partialorder %v4286_v8, 8.507059e+37 }
 0x611   :  { %4339 = vst [vmem:[%s7881_s7 + $0x178] sm:$0xff] %v4261_v13  ;;  %v4265_v17 = vmul.f32 %v4894_v55, %v4264_v25 }
 0x613   :  { %v4266_v35 = vadd.f32 %v4894_v55, %v4265_v17 }
 0x614   :  { %v4896_v53 = vpop.eup %4895 }
 0x615   :  { %v4278_v45 = vmul.f32 %v4896_v53, %v3541_v44  ;;  %v4270_v56 = vsel %vm4269_vm2, %v4894_v55, %v4266_v35  ;;  %vm4283_vm4 = vweird.f32 %v4896_v53 }
 0x616   :  { %v4275_v7 = vsel %vm4272_vm3, %v4274_v11, %v4270_v56  ;;  %vm4284_vm6 = vmor %vm4282_vm5, %vm4283_vm4 }
 0x617   :  { %v4279_v0 = vsub.f32 1.0, %v4278_v45  ;;  %v4276_v43 = vmul.f32 %v7777_v18, %v4275_v7 }
 0x619   :  { %v4280_v39 = vmul.f32 %v4896_v53, %v4279_v0  ;;  %4340 = vst [vmem:[%s7881_s7 + $0x180] sm:$0xff] %v4276_v43 }
 0x61b   :  { %v4281_v51 = vadd.f32 %v4896_v53, %v4280_v39 }
 0x61d   :  { %v4285_v26 = vsel %vm4284_vm6, %v4896_v53, %v4281_v51 }
 0x61e   :  { %v4290_v58 = vsel %vm4287_vm7, %v4289_v46, %v4285_v26 }
 0x61f   :  { %v4291_v60 = vmul.f32 %v7783_v33, %v4290_v58 }
 0x621   :  { %4341 = vst [vmem:[%s7881_s7 + $0x188] sm:$0xff] %v4291_v60 }

</bundles_post_ra>
